<compile_context>
chip_gen: v7x
topology: tpu7x:2x2x1
jax: 0.10.0
libtpu: 0.0.40
codegen_flags: <defaults>
</compile_context>

<pallas_src>
import functools
import math

import jax
import jax.numpy as jnp
from jax.experimental import pallas as pl
from jax.experimental.pallas import tpu as pltpu

LN_EPS = 1e-5  # nn.LayerNorm default


# ---------------------------------------------------------------------------
# in-kernel helpers (traced inside the Pallas kernels, f32 math)
# ---------------------------------------------------------------------------
def _layernorm(x, gamma, beta):
    # sum / sum-of-squares form: shorter reduce dependency chain than mean ->
    # (x-mu)^2 -> mean.
    mu = jnp.mean(x, axis=-1, keepdims=True)
    ms = jnp.mean(x * x, axis=-1, keepdims=True)
    var = ms - mu * mu
    return (x - mu) * jax.lax.rsqrt(var + LN_EPS) * gamma + beta


def _gelu_exact(x):
    # nn.GELU() default (erf-based); erf via Abramowitz & Stegun 7.1.26
    # (|abs err| <= 1.5e-7).  Exact reciprocal here for parity with torch;
    # approximate reciprocal is reserved for the softmax denominator.
    a1, a2, a3, a4, a5 = 0.254829592, -0.284496736, 1.421413741, -1.453152027, 1.061405429
    p = 0.3275911
    z = jnp.abs(x) * 0.7071067811865476
    t = 1.0 / (1.0 + p * z)
    poly = ((((a5 * t + a4) * t + a3) * t + a2) * t + a1) * t
    erf_abs = 1.0 - poly * jnp.exp(-z * z)
    erf = jnp.where(x >= 0.0, erf_abs, -erf_abs)
    return 0.5 * x * (1.0 + erf)


# ---------------------------------------------------------------------------
# kernel 1: LN1 + QKV projection + head-axis causal attention
#           grid = (B, T_pad // Tq)
# ---------------------------------------------------------------------------
def _ln_qkv_attn_kernel(x_ref, g_ref, b_ref, wqkv_ref, bqkv_ref, o_ref, *,
                        num_heads, head_dim, scale):
    H, Dh = num_heads, head_dim
    D = H * Dh
    f32 = jnp.float32

    x = x_ref[0]                                               # (Tq, D) f32
    h = _layernorm(x, g_ref[...], b_ref[...])
    # bf16 MXU matmul, f32 accumulation
    qkv = jnp.dot(h.astype(wqkv_ref.dtype), wqkv_ref[...],
                  preferred_element_type=f32) + bqkv_ref[...]  # (Tq, 3D)
    q = qkv[:, 0 * D:1 * D]
    k = qkv[:, 1 * D:2 * D]
    v = qkv[:, 2 * D:3 * D]

    # 0/1 helper matrices (hoisted constants, built in-registers):
    #   seg_sum (D, H): column i sums lanes [i*Dh, (i+1)*Dh)   (per-head reduce)
    #   expand  (H, D): row i broadcasts one value over lanes [i*Dh, (i+1)*Dh)
    d_row = jax.lax.broadcasted_iota(jnp.int32, (D, H), 0)
    h_col = jax.lax.broadcasted_iota(jnp.int32, (D, H), 1)
    seg_sum = jnp.logical_and(d_row >= h_col * Dh,
                              d_row < (h_col + 1) * Dh).astype(f32)
    h_row = jax.lax.broadcasted_iota(jnp.int32, (H, D), 0)
    d_col = jax.lax.broadcasted_iota(jnp.int32, (H, D), 1)
    expand = jnp.logical_and(d_col >= h_row * Dh,
                             d_col < (h_row + 1) * Dh).astype(f32)

    # --- scores, packed lane-dense as (Tq, H*H), j-major (lane = j*H + i) ---
    s_cols = []
    for j in range(H):
        k_rep = jnp.concatenate([k[:, j * Dh:(j + 1) * Dh]] * H, axis=1)   # (Tq, D)
        s_cols.append(jnp.dot(q * k_rep, seg_sum,
                              preferred_element_type=f32) * scale)         # (Tq, H)
    scores = jnp.concatenate(s_cols, axis=1)                               # (Tq, H*H)

    # causal mask over heads: key-head j attends only if j <= query-head i
    lane_i = jax.lax.broadcasted_iota(jnp.int32, (1, H), 1)
    neg = jnp.concatenate(
        [jnp.where(lane_i >= j, 0.0, -1e30) for j in range(H)], axis=1)    # (1, H*H)
    masked = scores + neg

    # per-query-head max / exp / sum -- full lane occupancy
    m = masked[:, 0:H]
    for j in range(1, H):
        m = jnp.maximum(m, masked[:, j * H:(j + 1) * H])                   # (Tq, H)
    e = jnp.exp(masked - jnp.concatenate([m] * H, axis=1))                 # (Tq, H*H)
    denom = e[:, 0:H]
    for j in range(1, H):
        denom = denom + e[:, j * H:(j + 1) * H]                            # (Tq, H)
    inv = pl.reciprocal(denom, approx=True)                                # EUP slot

    # weighted V: H full-width accumulation steps (not H^2 narrow ones)
    acc = None
    for j in range(H):
        w = jnp.dot(e[:, j * H:(j + 1) * H], expand,
                    preferred_element_type=f32)                            # (Tq, D)
        v_rep = jnp.concatenate([v[:, j * Dh:(j + 1) * Dh]] * H, axis=1)   # (Tq, D)
        term = w * v_rep
        acc = term if acc is None else acc + term
    out = acc * jnp.dot(inv, expand, preferred_element_type=f32)           # normalize once

    # slab i of (H, Tq, Dh) == torch out.transpose(2,1) layout -> wrapper
    # reshape to (T, D) is a free row-major reinterpretation.
    # TODO(synk): for Dh < 128 these are partial-lane stores; acceptable here,
    # revisit output packing if the wall-compute gap shows up at ViT scale.
    for i in range(H):
        o_ref[0, i] = out[:, i * Dh:(i + 1) * Dh].astype(o_ref.dtype)


# ---------------------------------------------------------------------------
# kernel 2: out_proj + residual + LN2 + MLP(GELU) + residual
#           grid = (B, T_pad // Tt)
# ---------------------------------------------------------------------------
def _proj_res_ln_mlp_kernel(a_ref, x_ref, wo_ref, bo_ref, g2_ref, beta2_ref,
                            w1_ref, b1_ref, w2_ref, b2_ref, o_ref):
    x = x_ref[0]                                               # (Tt, D) f32
    x1 = (x + jnp.dot(a_ref[0], wo_ref[...],                   # bf16 @ bf16 -> f32
                      preferred_element_type=jnp.float32) + bo_ref[...])
    h2 = _layernorm(x1, g2_ref[...], beta2_ref[...])
    z = jnp.dot(h2.astype(w1_ref.dtype), w1_ref[...],
                preferred_element_type=jnp.float32) + b1_ref[...]          # (Tt, M)
    z = _gelu_exact(z)
    o_ref[0] = (x1 + jnp.dot(z.astype(w2_ref.dtype), w2_ref[...],
                             preferred_element_type=jnp.float32) + b2_ref[...])


# ---------------------------------------------------------------------------
# wrapper helpers
# ---------------------------------------------------------------------------
def _row_tile(T, target=256):
    """Row tile (multiple of 8, <= target) and padded sequence length."""
    t8 = -(-T // 8) * 8
    if t8 <= target:
        return t8, t8
    n = -(-t8 // target)
    tile = -(-t8 // (n * 8)) * 8
    return tile, tile * n


def _vmem_limit(nbytes):
    # explicit scoped-VMEM request with 2x headroom, clamped to sane bounds
    return int(min(max(2 * nbytes, 32 * 1024 * 1024), 128 * 1024 * 1024))


# ---------------------------------------------------------------------------
# wrapper
# ---------------------------------------------------------------------------
@functools.partial(jax.jit, static_argnums=(2, 3))
def block_forward(x, params, num_heads, single_buffer_weights=True):
    B, T, D = x.shape
    H = num_heads
    assert D % H == 0, "hidden dim must be divisible by num_heads"
    Dh = D // H
    M = params['w1'].shape[1]
    f32, bf16 = jnp.float32, jnp.bfloat16

    # bf16 weights in HBM: halves weight DMA bytes + native MXU dtype.
    wqkv = params['wqkv'].astype(bf16)
    wo = params['wo'].astype(bf16)
    w1 = params['w1'].astype(bf16)
    w2 = params['w2'].astype(bf16)

    Tt, T_pad = _row_tile(T)
    n_t = T_pad // Tt
    x_p = x if T_pad == T else jnp.pad(x, ((0, 0), (0, T_pad - T), (0, 0)))

    wbuf = 1 if single_buffer_weights else 2
    wkw = dict(pipeline_mode=pl.Buffered(1)) if single_buffer_weights else {}

    # --- kernel 1: LN1 + QKV + head-axis attention --------------------------
    k1_bytes = (2 * Tt * D * 4 + wbuf * D * 3 * D * 2 + 2 * Tt * D * 2
                + Tt * 3 * D * 4 + 8 * Tt * D * 4 + 6 * Tt * H * H * 4
                + 4 * (3 * D + 4 * D))
    ce1 = pl.CostEstimate(
        flops=int(2 * B * T_pad * D * 3 * D + 4 * B * T_pad * H * H * Dh),
        transcendentals=int(B * T_pad * H * H),
        bytes_accessed=int(B * T_pad * D * 4 + D * 3 * D * 2 + B * T_pad * D * 2))

    attn4 = pl.pallas_call(
        functools.partial(_ln_qkv_attn_kernel, num_heads=H, head_dim=Dh,
                          scale=1.0 / math.sqrt(Dh)),
        out_shape=jax.ShapeDtypeStruct((B, H, T_pad, Dh), bf16),
        grid=(B, n_t),
        in_specs=[
            pl.BlockSpec((1, Tt, D), lambda b, t: (b, t, 0)),          # x
            pl.BlockSpec((1, D), lambda b, t: (0, 0)),                 # ln1 gamma
            pl.BlockSpec((1, D), lambda b, t: (0, 0)),                 # ln1 beta
            pl.BlockSpec((D, 3 * D), lambda b, t: (0, 0), **wkw),      # Wqkv (bf16)
            pl.BlockSpec((1, 3 * D), lambda b, t: (0, 0)),             # bqkv
        ],
        out_specs=pl.BlockSpec((1, H, Tt, Dh), lambda b, t: (b, 0, t, 0)),
        compiler_params=pltpu.CompilerParams(
            dimension_semantics=("parallel", "parallel"),
            vmem_limit_bytes=_vmem_limit(k1_bytes)),
        cost_estimate=ce1,
    )(x_p, params['ln1_g'], params['ln1_b'], wqkv, params['bqkv'])

    # PyTorch: out.transpose(2,1).contiguous().view(B,T,D).
    # (B,H,T,Dh) row-major == (B,T,D) row-major -> free reshape when no padding.
    if T_pad == T:
        attn_flat = attn4.reshape(B, T_pad, D)
    else:
        attn_flat = attn4[:, :, :T, :].reshape(B, T, D)
        attn_flat = jnp.pad(attn_flat, ((0, 0), (0, T_pad - T), (0, 0)))

    # --- kernel 2: out_proj + residual + LN2 + MLP + residual ---------------
    k2_bytes = (2 * Tt * D * 2 + 2 * Tt * D * 4
                + wbuf * (D * D + 2 * D * M) * 2
                + 2 * Tt * D * 4 + 3 * Tt * M * 4 + 2 * Tt * D * 4
                + 4 * (4 * D + M))
    ce2 = pl.CostEstimate(
        flops=int(2 * B * T_pad * (D * D + 2 * D * M)),
        transcendentals=int(B * T_pad * M),
        bytes_accessed=int(B * T_pad * D * 10 + (D * D + 2 * D * M) * 2))

    out = pl.pallas_call(
        _proj_res_ln_mlp_kernel,
        out_shape=jax.ShapeDtypeStruct((B, T_pad, D), f32),
        grid=(B, n_t),
        in_specs=[
            pl.BlockSpec((1, Tt, D), lambda b, t: (b, t, 0)),          # attn (bf16)
            pl.BlockSpec((1, Tt, D), lambda b, t: (b, t, 0)),          # residual x
            pl.BlockSpec((D, D), lambda b, t: (0, 0), **wkw),          # Wo (bf16)
            pl.BlockSpec((1, D), lambda b, t: (0, 0)),                 # bo
            pl.BlockSpec((1, D), lambda b, t: (0, 0)),                 # ln2 gamma
            pl.BlockSpec((1, D), lambda b, t: (0, 0)),                 # ln2 beta
            pl.BlockSpec((D, M), lambda b, t: (0, 0), **wkw),          # W1 (bf16)
            pl.BlockSpec((1, M), lambda b, t: (0, 0)),                 # b1
            pl.BlockSpec((M, D), lambda b, t: (0, 0), **wkw),          # W2 (bf16)
            pl.BlockSpec((1, D), lambda b, t: (0, 0)),                 # b2
        ],
        out_specs=pl.BlockSpec((1, Tt, D), lambda b, t: (b, t, 0)),
        compiler_params=pltpu.CompilerParams(
            dimension_semantics=("parallel", "parallel"),
            vmem_limit_bytes=_vmem_limit(k2_bytes)),
        cost_estimate=ce2,
    )(attn_flat, x_p, wo, params['bo'], params['ln2_g'], params['ln2_b'],
      w1, params['b1'], w2, params['b2'])

    return out if T_pad == T else out[:, :T, :]


# ---------------------------------------------------------------------------
# pure-JAX f32 reference (same semantics as the PyTorch module) for self-check
# ---------------------------------------------------------------------------
def block_reference(x, params, num_heads):
    B, T, D = x.shape
    H = num_heads
    Dh = D // H

    def ln(y, g, b):
        mu = y.mean(-1, keepdims=True)
        var = ((y - mu) ** 2).mean(-1, keepdims=True)
        return (y - mu) / jnp.sqrt(var + LN_EPS) * g + b

    h = ln(x, params['ln1_g'][0], params['ln1_b'][0])
    qkv = h @ params['wqkv'] + params['bqkv'][0]
    q, k, v = jnp.split(qkv, 3, axis=-1)
    q = q.reshape(B, T, H, Dh)
    k = k.reshape(B, T, H, Dh)
    v = v.reshape(B, T, H, Dh)
    s = jnp.einsum('btid,btjd->btij', q, k) / math.sqrt(Dh)
    mask = jnp.tril(jnp.ones((H, H), dtype=bool))
    s = jnp.where(mask, s, -jnp.inf)
    p = jax.nn.softmax(s, axis=-1)
    o = jnp.einsum('btij,btjd->btid', p, v)
    o = o.transpose(0, 2, 1, 3).reshape(B, T, D)
    x1 = x + (o @ params['wo'] + params['bo'][0])
    h2 = ln(x1, params['ln2_g'][0], params['ln2_b'][0])
    z = jax.nn.gelu(h2 @ params['w1'] + params['b1'][0], approximate=False)
    return x1 + (z @ params['w2'] + params['b2'][0])


# ---------------------------------------------------------------------------
if __name__ == "__main__":
    B, T, D, H = 2, 8, 32, 4          # batch, seq, hidden, heads
    M = 4 * D                          # mlp hidden (mlp_ratio=4)
    std = 0.02
    keys = jax.random.split(jax.random.PRNGKey(0), 10)
    f32 = jnp.float32

    params = dict(
        ln1_g=jnp.ones((1, D), f32), ln1_b=jnp.zeros((1, D), f32),
        wqkv=jax.random.normal(keys[0], (D, 3 * D), f32) * std,
        bqkv=jax.random.normal(keys[1], (1, 3 * D), f32) * std,
        wo=jax.random.normal(keys[2], (D, D), f32) * std,
        bo=jax.random.normal(keys[3], (1, D), f32) * std,
        ln2_g=jnp.ones((1, D), f32), ln2_b=jnp.zeros((1, D), f32),
        w1=jax.random.normal(keys[4], (D, M), f32) * std,
        b1=jax.random.normal(keys[5], (1, M), f32) * std,
        w2=jax.random.normal(keys[6], (M, D), f32) * std,
        b2=jax.random.normal(keys[7], (1, D), f32) * std,
    )
    x = jax.random.normal(keys[8], (B, T, D), f32)

    try:
        out = jax.block_until_ready(block_forward(x, params, H, True))
    except Exception:
        # fallback: identical kernels without single-buffered weight blocks
        out = jax.block_until_ready(block_forward(x, params, H, False))

    ref = block_reference(x, params, H)

    assert out.shape == (B, T, D) and out.dtype == jnp.float32
    max_err = float(jnp.max(jnp.abs(out - ref)))
    assert jnp.allclose(out, ref, atol=5e-3, rtol=5e-3), f"max abs err {max_err}"
    print("KERNEL_OK")
</pallas_src>

<mosaic_0001>
module attributes {stable_mosaic.version = 11 : i64} {
  func.func @_ln_qkv_attn_kernel(%arg0: i32, %arg1: i32, %arg2: memref<1x8x32xf32, #tpu.memory_space<vmem>>, %arg3: memref<1x32xf32, #tpu.memory_space<vmem>>, %arg4: memref<1x32xf32, #tpu.memory_space<vmem>>, %arg5: memref<32x96xbf16, #tpu.memory_space<vmem>>, %arg6: memref<1x96xf32, #tpu.memory_space<vmem>>, %arg7: memref<1x4x8x8xbf16, #tpu.memory_space<vmem>>) attributes {dimension_semantics = [#tpu.dimension_semantics<parallel>, #tpu.dimension_semantics<parallel>], iteration_bounds = array<i64: 2, 1>, scalar_prefetch = 0 : i64, scratch_operands = 0 : i64, tpu.core_type = #tpu.core_type<tc>, window_params = [{transform_indices = @transform_0, window_bounds = array<i64: 1, 8, 32>}, {pipeline_mode = #tpu.pipeline_mode<synchronous>, transform_indices = @transform_1, window_bounds = array<i64: 1, 32>}, {pipeline_mode = #tpu.pipeline_mode<synchronous>, transform_indices = @transform_2, window_bounds = array<i64: 1, 32>}, {pipeline_mode = #tpu.pipeline_mode<synchronous>, transform_indices = @transform_3, window_bounds = array<i64: 32, 96>}, {pipeline_mode = #tpu.pipeline_mode<synchronous>, transform_indices = @transform_4, window_bounds = array<i64: 1, 96>}, {transform_indices = @transform_5, window_bounds = array<i64: 1, 4, 8, 8>}]} {
    %c0 = arith.constant 0 : index
    %c0_0 = arith.constant 0 : index
    %c0_1 = arith.constant 0 : index
    %0 = vector.load %arg2[%c0, %c0_0, %c0_1] : memref<1x8x32xf32, #tpu.memory_space<vmem>>, vector<1x8x32xf32>
    %1 = vector.shape_cast %0 : vector<1x8x32xf32> to vector<8x32xf32>
    %c0_2 = arith.constant 0 : index
    %c0_3 = arith.constant 0 : index
    %2 = vector.load %arg3[%c0_2, %c0_3] : memref<1x32xf32, #tpu.memory_space<vmem>>, vector<1x32xf32>
    %c0_4 = arith.constant 0 : index
    %c0_5 = arith.constant 0 : index
    %3 = vector.load %arg4[%c0_4, %c0_5] : memref<1x32xf32, #tpu.memory_space<vmem>>, vector<1x32xf32>
    %cst = arith.constant dense<0.000000e+00> : vector<8xf32>
    %4 = vector.multi_reduction <add>, %1, %cst [1] : vector<8x32xf32> to vector<8xf32>
    %5 = vector.shape_cast %4 : vector<8xf32> to vector<8x1xf32>
    %cst_6 = arith.constant 3.200000e+01 : f32
    %6 = vector.broadcast %cst_6 : f32 to vector<8x1xf32>
    %7 = arith.divf %5, %6 : vector<8x1xf32>
    %8 = arith.mulf %1, %1 : vector<8x32xf32>
    %cst_7 = arith.constant dense<0.000000e+00> : vector<8xf32>
    %9 = vector.multi_reduction <add>, %8, %cst_7 [1] : vector<8x32xf32> to vector<8xf32>
    %10 = vector.shape_cast %9 : vector<8xf32> to vector<8x1xf32>
    %cst_8 = arith.constant 3.200000e+01 : f32
    %11 = vector.broadcast %cst_8 : f32 to vector<8x1xf32>
    %12 = arith.divf %10, %11 : vector<8x1xf32>
    %13 = arith.mulf %7, %7 : vector<8x1xf32>
    %14 = arith.subf %12, %13 : vector<8x1xf32>
    %15 = vector.broadcast %7 : vector<8x1xf32> to vector<8x32xf32>
    %16 = arith.subf %1, %15 : vector<8x32xf32>
    %cst_9 = arith.constant 9.99999974E-6 : f32
    %17 = vector.broadcast %cst_9 : f32 to vector<8x1xf32>
    %18 = arith.addf %14, %17 : vector<8x1xf32>
    %19 = math.rsqrt %18 : vector<8x1xf32>
    %20 = vector.broadcast %19 : vector<8x1xf32> to vector<8x32xf32>
    %21 = arith.mulf %16, %20 : vector<8x32xf32>
    %22 = vector.broadcast %2 : vector<1x32xf32> to vector<8x32xf32>
    %23 = arith.mulf %21, %22 : vector<8x32xf32>
    %24 = vector.broadcast %3 : vector<1x32xf32> to vector<8x32xf32>
    %25 = arith.addf %23, %24 : vector<8x32xf32>
    %26 = arith.truncf %25 : vector<8x32xf32> to vector<8x32xbf16>
    %c0_10 = arith.constant 0 : index
    %c0_11 = arith.constant 0 : index
    %27 = vector.load %arg5[%c0_10, %c0_11] : memref<32x96xbf16, #tpu.memory_space<vmem>>, vector<32x96xbf16>
    %cst_12 = arith.constant dense<0.000000e+00> : vector<8x96xf32>
    %28 = tpu.matmul %26, %27, %cst_12 {dimension_numbers = #tpu.dot_dimension_numbers<[1], [0], [0], [1], [0, 0, 1, 1], [], []>} : vector<8x32xbf16>, vector<32x96xbf16>, vector<8x96xf32> -> vector<8x96xf32>
    %c0_13 = arith.constant 0 : index
    %c0_14 = arith.constant 0 : index
    %29 = vector.load %arg6[%c0_13, %c0_14] : memref<1x96xf32, #tpu.memory_space<vmem>>, vector<1x96xf32>
    %30 = vector.broadcast %29 : vector<1x96xf32> to vector<8x96xf32>
    %31 = arith.addf %28, %30 : vector<8x96xf32>
    %32 = vector.extract_strided_slice %31 {offsets = [0, 0], sizes = [8, 32], strides = [1, 1]} : vector<8x96xf32> to vector<8x32xf32>
    %33 = vector.extract_strided_slice %31 {offsets = [0, 32], sizes = [8, 32], strides = [1, 1]} : vector<8x96xf32> to vector<8x32xf32>
    %34 = vector.extract_strided_slice %31 {offsets = [0, 64], sizes = [8, 32], strides = [1, 1]} : vector<8x96xf32> to vector<8x32xf32>
    %35 = tpu.iota {dimensions = array<i32: 0>} : vector<32x4xi32>
    %36 = tpu.iota {dimensions = array<i32: 1>} : vector<32x4xi32>
    %c8_i32 = arith.constant 8 : i32
    %37 = vector.broadcast %c8_i32 : i32 to vector<32x4xi32>
    %38 = arith.muli %36, %37 : vector<32x4xi32>
    %39 = arith.cmpi sge, %35, %38 : vector<32x4xi32>
    %c1_i32 = arith.constant 1 : i32
    %40 = vector.broadcast %c1_i32 : i32 to vector<32x4xi32>
    %41 = arith.addi %36, %40 : vector<32x4xi32>
    %c8_i32_15 = arith.constant 8 : i32
    %42 = vector.broadcast %c8_i32_15 : i32 to vector<32x4xi32>
    %43 = arith.muli %41, %42 : vector<32x4xi32>
    %44 = arith.cmpi slt, %35, %43 : vector<32x4xi32>
    %45 = arith.andi %39, %44 : vector<32x4xi1>
    %46 = arith.extui %45 : vector<32x4xi1> to vector<32x4xi32>
    %47 = arith.sitofp %46 : vector<32x4xi32> to vector<32x4xf32>
    %48 = tpu.iota {dimensions = array<i32: 0>} : vector<4x32xi32>
    %49 = tpu.iota {dimensions = array<i32: 1>} : vector<4x32xi32>
    %c8_i32_16 = arith.constant 8 : i32
    %50 = vector.broadcast %c8_i32_16 : i32 to vector<4x32xi32>
    %51 = arith.muli %48, %50 : vector<4x32xi32>
    %52 = arith.cmpi sge, %49, %51 : vector<4x32xi32>
    %c1_i32_17 = arith.constant 1 : i32
    %53 = vector.broadcast %c1_i32_17 : i32 to vector<4x32xi32>
    %54 = arith.addi %48, %53 : vector<4x32xi32>
    %c8_i32_18 = arith.constant 8 : i32
    %55 = vector.broadcast %c8_i32_18 : i32 to vector<4x32xi32>
    %56 = arith.muli %54, %55 : vector<4x32xi32>
    %57 = arith.cmpi slt, %49, %56 : vector<4x32xi32>
    %58 = arith.andi %52, %57 : vector<4x32xi1>
    %59 = arith.extui %58 : vector<4x32xi1> to vector<4x32xi32>
    %60 = arith.sitofp %59 : vector<4x32xi32> to vector<4x32xf32>
    %61 = vector.extract_strided_slice %33 {offsets = [0, 0], sizes = [8, 8], strides = [1, 1]} : vector<8x32xf32> to vector<8x8xf32>
    %62 = tpu.concatenate %61, %61, %61, %61 in 1 : vector<8x8xf32>, vector<8x8xf32>, vector<8x8xf32>, vector<8x8xf32> -> vector<8x32xf32>
    %63 = arith.mulf %32, %62 : vector<8x32xf32>
    %cst_19 = arith.constant dense<0.000000e+00> : vector<8x4xf32>
    %64 = tpu.matmul %63, %47, %cst_19 {dimension_numbers = #tpu.dot_dimension_numbers<[1], [0], [0], [1], [0, 0, 1, 1], [], []>} : vector<8x32xf32>, vector<32x4xf32>, vector<8x4xf32> -> vector<8x4xf32>
    %cst_20 = arith.constant 0.353553385 : f32
    %65 = vector.broadcast %cst_20 : f32 to vector<8x4xf32>
    %66 = arith.mulf %64, %65 : vector<8x4xf32>
    %67 = vector.extract_strided_slice %33 {offsets = [0, 8], sizes = [8, 8], strides = [1, 1]} : vector<8x32xf32> to vector<8x8xf32>
    %68 = tpu.concatenate %67, %67, %67, %67 in 1 : vector<8x8xf32>, vector<8x8xf32>, vector<8x8xf32>, vector<8x8xf32> -> vector<8x32xf32>
    %69 = arith.mulf %32, %68 : vector<8x32xf32>
    %cst_21 = arith.constant dense<0.000000e+00> : vector<8x4xf32>
    %70 = tpu.matmul %69, %47, %cst_21 {dimension_numbers = #tpu.dot_dimension_numbers<[1], [0], [0], [1], [0, 0, 1, 1], [], []>} : vector<8x32xf32>, vector<32x4xf32>, vector<8x4xf32> -> vector<8x4xf32>
    %cst_22 = arith.constant 0.353553385 : f32
    %71 = vector.broadcast %cst_22 : f32 to vector<8x4xf32>
    %72 = arith.mulf %70, %71 : vector<8x4xf32>
    %73 = vector.extract_strided_slice %33 {offsets = [0, 16], sizes = [8, 8], strides = [1, 1]} : vector<8x32xf32> to vector<8x8xf32>
    %74 = tpu.concatenate %73, %73, %73, %73 in 1 : vector<8x8xf32>, vector<8x8xf32>, vector<8x8xf32>, vector<8x8xf32> -> vector<8x32xf32>
    %75 = arith.mulf %32, %74 : vector<8x32xf32>
    %cst_23 = arith.constant dense<0.000000e+00> : vector<8x4xf32>
    %76 = tpu.matmul %75, %47, %cst_23 {dimension_numbers = #tpu.dot_dimension_numbers<[1], [0], [0], [1], [0, 0, 1, 1], [], []>} : vector<8x32xf32>, vector<32x4xf32>, vector<8x4xf32> -> vector<8x4xf32>
    %cst_24 = arith.constant 0.353553385 : f32
    %77 = vector.broadcast %cst_24 : f32 to vector<8x4xf32>
    %78 = arith.mulf %76, %77 : vector<8x4xf32>
    %79 = vector.extract_strided_slice %33 {offsets = [0, 24], sizes = [8, 8], strides = [1, 1]} : vector<8x32xf32> to vector<8x8xf32>
    %80 = tpu.concatenate %79, %79, %79, %79 in 1 : vector<8x8xf32>, vector<8x8xf32>, vector<8x8xf32>, vector<8x8xf32> -> vector<8x32xf32>
    %81 = arith.mulf %32, %80 : vector<8x32xf32>
    %cst_25 = arith.constant dense<0.000000e+00> : vector<8x4xf32>
    %82 = tpu.matmul %81, %47, %cst_25 {dimension_numbers = #tpu.dot_dimension_numbers<[1], [0], [0], [1], [0, 0, 1, 1], [], []>} : vector<8x32xf32>, vector<32x4xf32>, vector<8x4xf32> -> vector<8x4xf32>
    %cst_26 = arith.constant 0.353553385 : f32
    %83 = vector.broadcast %cst_26 : f32 to vector<8x4xf32>
    %84 = arith.mulf %82, %83 : vector<8x4xf32>
    %85 = tpu.concatenate %66, %72, %78, %84 in 1 : vector<8x4xf32>, vector<8x4xf32>, vector<8x4xf32>, vector<8x4xf32> -> vector<8x16xf32>
    %86 = tpu.iota {dimensions = array<i32: 1>} : vector<1x4xi32>
    %c0_i32 = arith.constant 0 : i32
    %87 = vector.broadcast %c0_i32 : i32 to vector<1x4xi32>
    %88 = arith.cmpi sge, %86, %87 : vector<1x4xi32>
    %cst_27 = arith.constant 0.000000e+00 : f32
    %cst_28 = arith.constant -1.000000e+30 : f32
    %89 = vector.broadcast %cst_27 : f32 to vector<1x4xf32>
    %90 = vector.broadcast %cst_28 : f32 to vector<1x4xf32>
    %91 = arith.select %88, %89, %90 : vector<1x4xi1>, vector<1x4xf32>
    %c1_i32_29 = arith.constant 1 : i32
    %92 = vector.broadcast %c1_i32_29 : i32 to vector<1x4xi32>
    %93 = arith.cmpi sge, %86, %92 : vector<1x4xi32>
    %cst_30 = arith.constant 0.000000e+00 : f32
    %cst_31 = arith.constant -1.000000e+30 : f32
    %94 = vector.broadcast %cst_30 : f32 to vector<1x4xf32>
    %95 = vector.broadcast %cst_31 : f32 to vector<1x4xf32>
    %96 = arith.select %93, %94, %95 : vector<1x4xi1>, vector<1x4xf32>
    %c2_i32 = arith.constant 2 : i32
    %97 = vector.broadcast %c2_i32 : i32 to vector<1x4xi32>
    %98 = arith.cmpi sge, %86, %97 : vector<1x4xi32>
    %cst_32 = arith.constant 0.000000e+00 : f32
    %cst_33 = arith.constant -1.000000e+30 : f32
    %99 = vector.broadcast %cst_32 : f32 to vector<1x4xf32>
    %100 = vector.broadcast %cst_33 : f32 to vector<1x4xf32>
    %101 = arith.select %98, %99, %100 : vector<1x4xi1>, vector<1x4xf32>
    %c3_i32 = arith.constant 3 : i32
    %102 = vector.broadcast %c3_i32 : i32 to vector<1x4xi32>
    %103 = arith.cmpi sge, %86, %102 : vector<1x4xi32>
    %cst_34 = arith.constant 0.000000e+00 : f32
    %cst_35 = arith.constant -1.000000e+30 : f32
    %104 = vector.broadcast %cst_34 : f32 to vector<1x4xf32>
    %105 = vector.broadcast %cst_35 : f32 to vector<1x4xf32>
    %106 = arith.select %103, %104, %105 : vector<1x4xi1>, vector<1x4xf32>
    %107 = tpu.concatenate %91, %96, %101, %106 in 1 : vector<1x4xf32>, vector<1x4xf32>, vector<1x4xf32>, vector<1x4xf32> -> vector<1x16xf32>
    %108 = vector.broadcast %107 : vector<1x16xf32> to vector<8x16xf32>
    %109 = arith.addf %85, %108 : vector<8x16xf32>
    %110 = vector.extract_strided_slice %109 {offsets = [0, 0], sizes = [8, 4], strides = [1, 1]} : vector<8x16xf32> to vector<8x4xf32>
    %111 = vector.extract_strided_slice %109 {offsets = [0, 4], sizes = [8, 4], strides = [1, 1]} : vector<8x16xf32> to vector<8x4xf32>
    %112 = arith.maximumf %110, %111 : vector<8x4xf32>
    %113 = vector.extract_strided_slice %109 {offsets = [0, 8], sizes = [8, 4], strides = [1, 1]} : vector<8x16xf32> to vector<8x4xf32>
    %114 = arith.maximumf %112, %113 : vector<8x4xf32>
    %115 = vector.extract_strided_slice %109 {offsets = [0, 12], sizes = [8, 4], strides = [1, 1]} : vector<8x16xf32> to vector<8x4xf32>
    %116 = arith.maximumf %114, %115 : vector<8x4xf32>
    %117 = tpu.concatenate %116, %116, %116, %116 in 1 : vector<8x4xf32>, vector<8x4xf32>, vector<8x4xf32>, vector<8x4xf32> -> vector<8x16xf32>
    %118 = arith.subf %109, %117 : vector<8x16xf32>
    %119 = math.exp %118 : vector<8x16xf32>
    %120 = vector.extract_strided_slice %119 {offsets = [0, 0], sizes = [8, 4], strides = [1, 1]} : vector<8x16xf32> to vector<8x4xf32>
    %121 = vector.extract_strided_slice %119 {offsets = [0, 4], sizes = [8, 4], strides = [1, 1]} : vector<8x16xf32> to vector<8x4xf32>
    %122 = arith.addf %120, %121 : vector<8x4xf32>
    %123 = vector.extract_strided_slice %119 {offsets = [0, 8], sizes = [8, 4], strides = [1, 1]} : vector<8x16xf32> to vector<8x4xf32>
    %124 = arith.addf %122, %123 : vector<8x4xf32>
    %125 = vector.extract_strided_slice %119 {offsets = [0, 12], sizes = [8, 4], strides = [1, 1]} : vector<8x16xf32> to vector<8x4xf32>
    %126 = arith.addf %124, %125 : vector<8x4xf32>
    %127 = tpu.reciprocal %126 {approx = true} : vector<8x4xf32> -> vector<8x4xf32>
    %128 = vector.extract_strided_slice %119 {offsets = [0, 0], sizes = [8, 4], strides = [1, 1]} : vector<8x16xf32> to vector<8x4xf32>
    %cst_36 = arith.constant dense<0.000000e+00> : vector<8x32xf32>
    %129 = tpu.matmul %128, %60, %cst_36 {dimension_numbers = #tpu.dot_dimension_numbers<[1], [0], [0], [1], [0, 0, 1, 1], [], []>} : vector<8x4xf32>, vector<4x32xf32>, vector<8x32xf32> -> vector<8x32xf32>
    %130 = vector.extract_strided_slice %34 {offsets = [0, 0], sizes = [8, 8], strides = [1, 1]} : vector<8x32xf32> to vector<8x8xf32>
    %131 = tpu.concatenate %130, %130, %130, %130 in 1 : vector<8x8xf32>, vector<8x8xf32>, vector<8x8xf32>, vector<8x8xf32> -> vector<8x32xf32>
    %132 = arith.mulf %129, %131 : vector<8x32xf32>
    %133 = vector.extract_strided_slice %119 {offsets = [0, 4], sizes = [8, 4], strides = [1, 1]} : vector<8x16xf32> to vector<8x4xf32>
    %cst_37 = arith.constant dense<0.000000e+00> : vector<8x32xf32>
    %134 = tpu.matmul %133, %60, %cst_37 {dimension_numbers = #tpu.dot_dimension_numbers<[1], [0], [0], [1], [0, 0, 1, 1], [], []>} : vector<8x4xf32>, vector<4x32xf32>, vector<8x32xf32> -> vector<8x32xf32>
    %135 = vector.extract_strided_slice %34 {offsets = [0, 8], sizes = [8, 8], strides = [1, 1]} : vector<8x32xf32> to vector<8x8xf32>
    %136 = tpu.concatenate %135, %135, %135, %135 in 1 : vector<8x8xf32>, vector<8x8xf32>, vector<8x8xf32>, vector<8x8xf32> -> vector<8x32xf32>
    %137 = arith.mulf %134, %136 : vector<8x32xf32>
    %138 = arith.addf %132, %137 : vector<8x32xf32>
    %139 = vector.extract_strided_slice %119 {offsets = [0, 8], sizes = [8, 4], strides = [1, 1]} : vector<8x16xf32> to vector<8x4xf32>
    %cst_38 = arith.constant dense<0.000000e+00> : vector<8x32xf32>
    %140 = tpu.matmul %139, %60, %cst_38 {dimension_numbers = #tpu.dot_dimension_numbers<[1], [0], [0], [1], [0, 0, 1, 1], [], []>} : vector<8x4xf32>, vector<4x32xf32>, vector<8x32xf32> -> vector<8x32xf32>
    %141 = vector.extract_strided_slice %34 {offsets = [0, 16], sizes = [8, 8], strides = [1, 1]} : vector<8x32xf32> to vector<8x8xf32>
    %142 = tpu.concatenate %141, %141, %141, %141 in 1 : vector<8x8xf32>, vector<8x8xf32>, vector<8x8xf32>, vector<8x8xf32> -> vector<8x32xf32>
    %143 = arith.mulf %140, %142 : vector<8x32xf32>
    %144 = arith.addf %138, %143 : vector<8x32xf32>
    %145 = vector.extract_strided_slice %119 {offsets = [0, 12], sizes = [8, 4], strides = [1, 1]} : vector<8x16xf32> to vector<8x4xf32>
    %cst_39 = arith.constant dense<0.000000e+00> : vector<8x32xf32>
    %146 = tpu.matmul %145, %60, %cst_39 {dimension_numbers = #tpu.dot_dimension_numbers<[1], [0], [0], [1], [0, 0, 1, 1], [], []>} : vector<8x4xf32>, vector<4x32xf32>, vector<8x32xf32> -> vector<8x32xf32>
    %147 = vector.extract_strided_slice %34 {offsets = [0, 24], sizes = [8, 8], strides = [1, 1]} : vector<8x32xf32> to vector<8x8xf32>
    %148 = tpu.concatenate %147, %147, %147, %147 in 1 : vector<8x8xf32>, vector<8x8xf32>, vector<8x8xf32>, vector<8x8xf32> -> vector<8x32xf32>
    %149 = arith.mulf %146, %148 : vector<8x32xf32>
    %150 = arith.addf %144, %149 : vector<8x32xf32>
    %cst_40 = arith.constant dense<0.000000e+00> : vector<8x32xf32>
    %151 = tpu.matmul %127, %60, %cst_40 {dimension_numbers = #tpu.dot_dimension_numbers<[1], [0], [0], [1], [0, 0, 1, 1], [], []>} : vector<8x4xf32>, vector<4x32xf32>, vector<8x32xf32> -> vector<8x32xf32>
    %152 = arith.mulf %150, %151 : vector<8x32xf32>
    %153 = vector.extract_strided_slice %152 {offsets = [0, 0], sizes = [8, 8], strides = [1, 1]} : vector<8x32xf32> to vector<8x8xf32>
    %154 = arith.truncf %153 : vector<8x8xf32> to vector<8x8xbf16>
    %c0_41 = arith.constant 0 : index
    %c0_42 = arith.constant 0 : index
    %c0_43 = arith.constant 0 : index
    %c0_44 = arith.constant 0 : index
    %155 = vector.load %arg7[%c0_41, %c0_42, %c0_43, %c0_44] : memref<1x4x8x8xbf16, #tpu.memory_space<vmem>>, vector<1x1x8x8xbf16>
    %156 = vector.shape_cast %155 : vector<1x1x8x8xbf16> to vector<8x8xbf16>
    %157 = vector.shape_cast %154 : vector<8x8xbf16> to vector<1x1x8x8xbf16>
    tpu.vector_store %arg7[%c0_41, %c0_42, %c0_43, %c0_44], %157 {strides = array<i32>} : memref<1x4x8x8xbf16, #tpu.memory_space<vmem>>, vector<1x1x8x8xbf16>,
    %158 = vector.extract_strided_slice %152 {offsets = [0, 8], sizes = [8, 8], strides = [1, 1]} : vector<8x32xf32> to vector<8x8xf32>
    %159 = arith.truncf %158 : vector<8x8xf32> to vector<8x8xbf16>
    %c0_45 = arith.constant 0 : index
    %c1 = arith.constant 1 : index
    %c0_46 = arith.constant 0 : index
    %c0_47 = arith.constant 0 : index
    %160 = vector.load %arg7[%c0_45, %c1, %c0_46, %c0_47] : memref<1x4x8x8xbf16, #tpu.memory_space<vmem>>, vector<1x1x8x8xbf16>
    %161 = vector.shape_cast %160 : vector<1x1x8x8xbf16> to vector<8x8xbf16>
    %162 = vector.shape_cast %159 : vector<8x8xbf16> to vector<1x1x8x8xbf16>
    tpu.vector_store %arg7[%c0_45, %c1, %c0_46, %c0_47], %162 {strides = array<i32>} : memref<1x4x8x8xbf16, #tpu.memory_space<vmem>>, vector<1x1x8x8xbf16>,
    %163 = vector.extract_strided_slice %152 {offsets = [0, 16], sizes = [8, 8], strides = [1, 1]} : vector<8x32xf32> to vector<8x8xf32>
    %164 = arith.truncf %163 : vector<8x8xf32> to vector<8x8xbf16>
    %c0_48 = arith.constant 0 : index
    %c2 = arith.constant 2 : index
    %c0_49 = arith.constant 0 : index
    %c0_50 = arith.constant 0 : index
    %165 = vector.load %arg7[%c0_48, %c2, %c0_49, %c0_50] : memref<1x4x8x8xbf16, #tpu.memory_space<vmem>>, vector<1x1x8x8xbf16>
    %166 = vector.shape_cast %165 : vector<1x1x8x8xbf16> to vector<8x8xbf16>
    %167 = vector.shape_cast %164 : vector<8x8xbf16> to vector<1x1x8x8xbf16>
    tpu.vector_store %arg7[%c0_48, %c2, %c0_49, %c0_50], %167 {strides = array<i32>} : memref<1x4x8x8xbf16, #tpu.memory_space<vmem>>, vector<1x1x8x8xbf16>,
    %168 = vector.extract_strided_slice %152 {offsets = [0, 24], sizes = [8, 8], strides = [1, 1]} : vector<8x32xf32> to vector<8x8xf32>
    %169 = arith.truncf %168 : vector<8x8xf32> to vector<8x8xbf16>
    %c0_51 = arith.constant 0 : index
    %c3 = arith.constant 3 : index
    %c0_52 = arith.constant 0 : index
    %c0_53 = arith.constant 0 : index
    %170 = vector.load %arg7[%c0_51, %c3, %c0_52, %c0_53] : memref<1x4x8x8xbf16, #tpu.memory_space<vmem>>, vector<1x1x8x8xbf16>
    %171 = vector.shape_cast %170 : vector<1x1x8x8xbf16> to vector<8x8xbf16>
    %172 = vector.shape_cast %169 : vector<8x8xbf16> to vector<1x1x8x8xbf16>
    tpu.vector_store %arg7[%c0_51, %c3, %c0_52, %c0_53], %172 {strides = array<i32>} : memref<1x4x8x8xbf16, #tpu.memory_space<vmem>>, vector<1x1x8x8xbf16>,
    return
  }
  func.func @transform_0(%arg0: i32, %arg1: i32) -> (i32, i32, i32) {
    %c0_i32 = arith.constant 0 : i32
    %c0_i32_0 = arith.constant 0 : i32
    return %arg0, %arg1, %c0_i32 : i32, i32, i32
  }
  func.func @transform_1(%arg0: i32, %arg1: i32) -> (i32, i32) {
    %c0_i32 = arith.constant 0 : i32
    %c0_i32_0 = arith.constant 0 : i32
    %c0_i32_1 = arith.constant 0 : i32
    return %c0_i32, %c0_i32_0 : i32, i32
  }
  func.func @transform_2(%arg0: i32, %arg1: i32) -> (i32, i32) {
    %c0_i32 = arith.constant 0 : i32
    %c0_i32_0 = arith.constant 0 : i32
    %c0_i32_1 = arith.constant 0 : i32
    return %c0_i32, %c0_i32_0 : i32, i32
  }
  func.func @transform_3(%arg0: i32, %arg1: i32) -> (i32, i32) {
    %c0_i32 = arith.constant 0 : i32
    %c0_i32_0 = arith.constant 0 : i32
    %c0_i32_1 = arith.constant 0 : i32
    return %c0_i32, %c0_i32_0 : i32, i32
  }
  func.func @transform_4(%arg0: i32, %arg1: i32) -> (i32, i32) {
    %c0_i32 = arith.constant 0 : i32
    %c0_i32_0 = arith.constant 0 : i32
    %c0_i32_1 = arith.constant 0 : i32
    return %c0_i32, %c0_i32_0 : i32, i32
  }
  func.func @transform_5(%arg0: i32, %arg1: i32) -> (i32, i32, i32, i32) {
    %c0_i32 = arith.constant 0 : i32
    %c0_i32_0 = arith.constant 0 : i32
    %c0_i32_1 = arith.constant 0 : i32
    return %arg0, %c0_i32, %arg1, %c0_i32_0 : i32, i32, i32, i32
  }
}

module attributes {stable_mosaic.version = 11 : i64} {
  func.func @_proj_res_ln_mlp_kernel(%arg0: i32, %arg1: i32, %arg2: memref<1x8x32xbf16, #tpu.memory_space<vmem>>, %arg3: memref<1x8x32xf32, #tpu.memory_space<vmem>>, %arg4: memref<32x32xbf16, #tpu.memory_space<vmem>>, %arg5: memref<1x32xf32, #tpu.memory_space<vmem>>, %arg6: memref<1x32xf32, #tpu.memory_space<vmem>>, %arg7: memref<1x32xf32, #tpu.memory_space<vmem>>, %arg8: memref<32x128xbf16, #tpu.memory_space<vmem>>, %arg9: memref<1x128xf32, #tpu.memory_space<vmem>>, %arg10: memref<128x32xbf16, #tpu.memory_space<vmem>>, %arg11: memref<1x32xf32, #tpu.memory_space<vmem>>, %arg12: memref<1x8x32xf32, #tpu.memory_space<vmem>>) attributes {dimension_semantics = [#tpu.dimension_semantics<parallel>, #tpu.dimension_semantics<parallel>], iteration_bounds = array<i64: 2, 1>, scalar_prefetch = 0 : i64, scratch_operands = 0 : i64, tpu.core_type = #tpu.core_type<tc>, window_params = [{transform_indices = @transform_0, window_bounds = array<i64: 1, 8, 32>}, {transform_indices = @transform_1, window_bounds = array<i64: 1, 8, 32>}, {pipeline_mode = #tpu.pipeline_mode<synchronous>, transform_indices = @transform_2, window_bounds = array<i64: 32, 32>}, {pipeline_mode = #tpu.pipeline_mode<synchronous>, transform_indices = @transform_3, window_bounds = array<i64: 1, 32>}, {pipeline_mode = #tpu.pipeline_mode<synchronous>, transform_indices = @transform_4, window_bounds = array<i64: 1, 32>}, {pipeline_mode = #tpu.pipeline_mode<synchronous>, transform_indices = @transform_5, window_bounds = array<i64: 1, 32>}, {pipeline_mode = #tpu.pipeline_mode<synchronous>, transform_indices = @transform_6, window_bounds = array<i64: 32, 128>}, {pipeline_mode = #tpu.pipeline_mode<synchronous>, transform_indices = @transform_7, window_bounds = array<i64: 1, 128>}, {pipeline_mode = #tpu.pipeline_mode<synchronous>, transform_indices = @transform_8, window_bounds = array<i64: 128, 32>}, {pipeline_mode = #tpu.pipeline_mode<synchronous>, transform_indices = @transform_9, window_bounds = array<i64: 1, 32>}, {transform_indices = @transform_10, window_bounds = array<i64: 1, 8, 32>}]} {
    %c0 = arith.constant 0 : index
    %c0_0 = arith.constant 0 : index
    %c0_1 = arith.constant 0 : index
    %0 = vector.load %arg3[%c0, %c0_0, %c0_1] : memref<1x8x32xf32, #tpu.memory_space<vmem>>, vector<1x8x32xf32>
    %1 = vector.shape_cast %0 : vector<1x8x32xf32> to vector<8x32xf32>
    %c0_2 = arith.constant 0 : index
    %c0_3 = arith.constant 0 : index
    %c0_4 = arith.constant 0 : index
    %2 = vector.load %arg2[%c0_2, %c0_3, %c0_4] : memref<1x8x32xbf16, #tpu.memory_space<vmem>>, vector<1x8x32xbf16>
    %3 = vector.shape_cast %2 : vector<1x8x32xbf16> to vector<8x32xbf16>
    %c0_5 = arith.constant 0 : index
    %c0_6 = arith.constant 0 : index
    %4 = vector.load %arg4[%c0_5, %c0_6] : memref<32x32xbf16, #tpu.memory_space<vmem>>, vector<32x32xbf16>
    %cst = arith.constant dense<0.000000e+00> : vector<8x32xf32>
    %5 = tpu.matmul %3, %4, %cst {dimension_numbers = #tpu.dot_dimension_numbers<[1], [0], [0], [1], [0, 0, 1, 1], [], []>} : vector<8x32xbf16>, vector<32x32xbf16>, vector<8x32xf32> -> vector<8x32xf32>
    %6 = arith.addf %1, %5 : vector<8x32xf32>
    %c0_7 = arith.constant 0 : index
    %c0_8 = arith.constant 0 : index
    %7 = vector.load %arg5[%c0_7, %c0_8] : memref<1x32xf32, #tpu.memory_space<vmem>>, vector<1x32xf32>
    %8 = vector.broadcast %7 : vector<1x32xf32> to vector<8x32xf32>
    %9 = arith.addf %6, %8 : vector<8x32xf32>
    %c0_9 = arith.constant 0 : index
    %c0_10 = arith.constant 0 : index
    %10 = vector.load %arg6[%c0_9, %c0_10] : memref<1x32xf32, #tpu.memory_space<vmem>>, vector<1x32xf32>
    %c0_11 = arith.constant 0 : index
    %c0_12 = arith.constant 0 : index
    %11 = vector.load %arg7[%c0_11, %c0_12] : memref<1x32xf32, #tpu.memory_space<vmem>>, vector<1x32xf32>
    %cst_13 = arith.constant dense<0.000000e+00> : vector<8xf32>
    %12 = vector.multi_reduction <add>, %9, %cst_13 [1] : vector<8x32xf32> to vector<8xf32>
    %13 = vector.shape_cast %12 : vector<8xf32> to vector<8x1xf32>
    %cst_14 = arith.constant 3.200000e+01 : f32
    %14 = vector.broadcast %cst_14 : f32 to vector<8x1xf32>
    %15 = arith.divf %13, %14 : vector<8x1xf32>
    %16 = arith.mulf %9, %9 : vector<8x32xf32>
    %cst_15 = arith.constant dense<0.000000e+00> : vector<8xf32>
    %17 = vector.multi_reduction <add>, %16, %cst_15 [1] : vector<8x32xf32> to vector<8xf32>
    %18 = vector.shape_cast %17 : vector<8xf32> to vector<8x1xf32>
    %cst_16 = arith.constant 3.200000e+01 : f32
    %19 = vector.broadcast %cst_16 : f32 to vector<8x1xf32>
    %20 = arith.divf %18, %19 : vector<8x1xf32>
    %21 = arith.mulf %15, %15 : vector<8x1xf32>
    %22 = arith.subf %20, %21 : vector<8x1xf32>
    %23 = vector.broadcast %15 : vector<8x1xf32> to vector<8x32xf32>
    %24 = arith.subf %9, %23 : vector<8x32xf32>
    %cst_17 = arith.constant 9.99999974E-6 : f32
    %25 = vector.broadcast %cst_17 : f32 to vector<8x1xf32>
    %26 = arith.addf %22, %25 : vector<8x1xf32>
    %27 = math.rsqrt %26 : vector<8x1xf32>
    %28 = vector.broadcast %27 : vector<8x1xf32> to vector<8x32xf32>
    %29 = arith.mulf %24, %28 : vector<8x32xf32>
    %30 = vector.broadcast %10 : vector<1x32xf32> to vector<8x32xf32>
    %31 = arith.mulf %29, %30 : vector<8x32xf32>
    %32 = vector.broadcast %11 : vector<1x32xf32> to vector<8x32xf32>
    %33 = arith.addf %31, %32 : vector<8x32xf32>
    %34 = arith.truncf %33 : vector<8x32xf32> to vector<8x32xbf16>
    %c0_18 = arith.constant 0 : index
    %c0_19 = arith.constant 0 : index
    %35 = vector.load %arg8[%c0_18, %c0_19] : memref<32x128xbf16, #tpu.memory_space<vmem>>, vector<32x128xbf16>
    %cst_20 = arith.constant dense<0.000000e+00> : vector<8x128xf32>
    %36 = tpu.matmul %34, %35, %cst_20 {dimension_numbers = #tpu.dot_dimension_numbers<[1], [0], [0], [1], [0, 0, 1, 1], [], []>} : vector<8x32xbf16>, vector<32x128xbf16>, vector<8x128xf32> -> vector<8x128xf32>
    %c0_21 = arith.constant 0 : index
    %c0_22 = arith.constant 0 : index
    %37 = vector.load %arg9[%c0_21, %c0_22] : memref<1x128xf32, #tpu.memory_space<vmem>>, vector<1x128xf32>
    %38 = vector.broadcast %37 : vector<1x128xf32> to vector<8x128xf32>
    %39 = arith.addf %36, %38 : vector<8x128xf32>
    %40 = math.absf %39 : vector<8x128xf32>
    %cst_23 = arith.constant 0.707106769 : f32
    %41 = vector.broadcast %cst_23 : f32 to vector<8x128xf32>
    %42 = arith.mulf %40, %41 : vector<8x128xf32>
    %cst_24 = arith.constant 0.327591091 : f32
    %43 = vector.broadcast %cst_24 : f32 to vector<8x128xf32>
    %44 = arith.mulf %43, %42 : vector<8x128xf32>
    %cst_25 = arith.constant 1.000000e+00 : f32
    %45 = vector.broadcast %cst_25 : f32 to vector<8x128xf32>
    %46 = arith.addf %45, %44 : vector<8x128xf32>
    %cst_26 = arith.constant 1.000000e+00 : f32
    %47 = vector.broadcast %cst_26 : f32 to vector<8x128xf32>
    %48 = arith.divf %47, %46 : vector<8x128xf32>
    %cst_27 = arith.constant 1.06140542 : f32
    %49 = vector.broadcast %cst_27 : f32 to vector<8x128xf32>
    %50 = arith.mulf %49, %48 : vector<8x128xf32>
    %cst_28 = arith.constant -1.45315206 : f32
    %51 = vector.broadcast %cst_28 : f32 to vector<8x128xf32>
    %52 = arith.addf %50, %51 : vector<8x128xf32>
    %53 = arith.mulf %52, %48 : vector<8x128xf32>
    %cst_29 = arith.constant 1.42141378 : f32
    %54 = vector.broadcast %cst_29 : f32 to vector<8x128xf32>
    %55 = arith.addf %53, %54 : vector<8x128xf32>
    %56 = arith.mulf %55, %48 : vector<8x128xf32>
    %cst_30 = arith.constant -0.284496725 : f32
    %57 = vector.broadcast %cst_30 : f32 to vector<8x128xf32>
    %58 = arith.addf %56, %57 : vector<8x128xf32>
    %59 = arith.mulf %58, %48 : vector<8x128xf32>
    %cst_31 = arith.constant 0.254829586 : f32
    %60 = vector.broadcast %cst_31 : f32 to vector<8x128xf32>
    %61 = arith.addf %59, %60 : vector<8x128xf32>
    %62 = arith.mulf %61, %48 : vector<8x128xf32>
    %cst_32 = arith.constant 0.000000e+00 : f32
    %63 = vector.broadcast %cst_32 : f32 to vector<8x128xf32>
    %64 = arith.subf %63, %42 : vector<8x128xf32>
    %65 = arith.mulf %64, %42 : vector<8x128xf32>
    %66 = math.exp %65 : vector<8x128xf32>
    %67 = arith.mulf %62, %66 : vector<8x128xf32>
    %cst_33 = arith.constant 1.000000e+00 : f32
    %68 = vector.broadcast %cst_33 : f32 to vector<8x128xf32>
    %69 = arith.subf %68, %67 : vector<8x128xf32>
    %cst_34 = arith.constant 0.000000e+00 : f32
    %70 = vector.broadcast %cst_34 : f32 to vector<8x128xf32>
    %71 = arith.cmpf oge, %39, %70 : vector<8x128xf32>
    %cst_35 = arith.constant 0.000000e+00 : f32
    %72 = vector.broadcast %cst_35 : f32 to vector<8x128xf32>
    %73 = arith.subf %72, %69 : vector<8x128xf32>
    %74 = arith.select %71, %69, %73 : vector<8x128xi1>, vector<8x128xf32>
    %cst_36 = arith.constant 5.000000e-01 : f32
    %75 = vector.broadcast %cst_36 : f32 to vector<8x128xf32>
    %76 = arith.mulf %75, %39 : vector<8x128xf32>
    %cst_37 = arith.constant 1.000000e+00 : f32
    %77 = vector.broadcast %cst_37 : f32 to vector<8x128xf32>
    %78 = arith.addf %77, %74 : vector<8x128xf32>
    %79 = arith.mulf %76, %78 : vector<8x128xf32>
    %80 = arith.truncf %79 : vector<8x128xf32> to vector<8x128xbf16>
    %c0_38 = arith.constant 0 : index
    %c0_39 = arith.constant 0 : index
    %81 = vector.load %arg10[%c0_38, %c0_39] : memref<128x32xbf16, #tpu.memory_space<vmem>>, vector<128x32xbf16>
    %cst_40 = arith.constant dense<0.000000e+00> : vector<8x32xf32>
    %82 = tpu.matmul %80, %81, %cst_40 {dimension_numbers = #tpu.dot_dimension_numbers<[1], [0], [0], [1], [0, 0, 1, 1], [], []>} : vector<8x128xbf16>, vector<128x32xbf16>, vector<8x32xf32> -> vector<8x32xf32>
    %83 = arith.addf %9, %82 : vector<8x32xf32>
    %c0_41 = arith.constant 0 : index
    %c0_42 = arith.constant 0 : index
    %84 = vector.load %arg11[%c0_41, %c0_42] : memref<1x32xf32, #tpu.memory_space<vmem>>, vector<1x32xf32>
    %85 = vector.broadcast %84 : vector<1x32xf32> to vector<8x32xf32>
    %86 = arith.addf %83, %85 : vector<8x32xf32>
    %c0_43 = arith.constant 0 : index
    %c0_44 = arith.constant 0 : index
    %c0_45 = arith.constant 0 : index
    %87 = vector.load %arg12[%c0_43, %c0_44, %c0_45] : memref<1x8x32xf32, #tpu.memory_space<vmem>>, vector<1x8x32xf32>
    %88 = vector.shape_cast %87 : vector<1x8x32xf32> to vector<8x32xf32>
    %89 = vector.shape_cast %86 : vector<8x32xf32> to vector<1x8x32xf32>
    tpu.vector_store %arg12[%c0_43, %c0_44, %c0_45], %89 {strides = array<i32>} : memref<1x8x32xf32, #tpu.memory_space<vmem>>, vector<1x8x32xf32>,
    return
  }
  func.func @transform_0(%arg0: i32, %arg1: i32) -> (i32, i32, i32) {
    %c0_i32 = arith.constant 0 : i32
    %c0_i32_0 = arith.constant 0 : i32
    return %arg0, %arg1, %c0_i32 : i32, i32, i32
  }
  func.func @transform_1(%arg0: i32, %arg1: i32) -> (i32, i32, i32) {
    %c0_i32 = arith.constant 0 : i32
    %c0_i32_0 = arith.constant 0 : i32
    return %arg0, %arg1, %c0_i32 : i32, i32, i32
  }
  func.func @transform_2(%arg0: i32, %arg1: i32) -> (i32, i32) {
    %c0_i32 = arith.constant 0 : i32
    %c0_i32_0 = arith.constant 0 : i32
    %c0_i32_1 = arith.constant 0 : i32
    return %c0_i32, %c0_i32_0 : i32, i32
  }
  func.func @transform_3(%arg0: i32, %arg1: i32) -> (i32, i32) {
    %c0_i32 = arith.constant 0 : i32
    %c0_i32_0 = arith.constant 0 : i32
    %c0_i32_1 = arith.constant 0 : i32
    return %c0_i32, %c0_i32_0 : i32, i32
  }
  func.func @transform_4(%arg0: i32, %arg1: i32) -> (i32, i32) {
    %c0_i32 = arith.constant 0 : i32
    %c0_i32_0 = arith.constant 0 : i32
    %c0_i32_1 = arith.constant 0 : i32
    return %c0_i32, %c0_i32_0 : i32, i32
  }
  func.func @transform_5(%arg0: i32, %arg1: i32) -> (i32, i32) {
    %c0_i32 = arith.constant 0 : i32
    %c0_i32_0 = arith.constant 0 : i32
    %c0_i32_1 = arith.constant 0 : i32
    return %c0_i32, %c0_i32_0 : i32, i32
  }
  func.func @transform_6(%arg0: i32, %arg1: i32) -> (i32, i32) {
    %c0_i32 = arith.constant 0 : i32
    %c0_i32_0 = arith.constant 0 : i32
    %c0_i32_1 = arith.constant 0 : i32
    return %c0_i32, %c0_i32_0 : i32, i32
  }
  func.func @transform_7(%arg0: i32, %arg1: i32) -> (i32, i32) {
    %c0_i32 = arith.constant 0 : i32
    %c0_i32_0 = arith.constant 0 : i32
    %c0_i32_1 = arith.constant 0 : i32
    return %c0_i32, %c0_i32_0 : i32, i32
  }
  func.func @transform_8(%arg0: i32, %arg1: i32) -> (i32, i32) {
    %c0_i32 = arith.constant 0 : i32
    %c0_i32_0 = arith.constant 0 : i32
    %c0_i32_1 = arith.constant 0 : i32
    return %c0_i32, %c0_i32_0 : i32, i32
  }
  func.func @transform_9(%arg0: i32, %arg1: i32) -> (i32, i32) {
    %c0_i32 = arith.constant 0 : i32
    %c0_i32_0 = arith.constant 0 : i32
    %c0_i32_1 = arith.constant 0 : i32
    return %c0_i32, %c0_i32_0 : i32, i32
  }
  func.func @transform_10(%arg0: i32, %arg1: i32) -> (i32, i32, i32) {
    %c0_i32 = arith.constant 0 : i32
    %c0_i32_0 = arith.constant 0 : i32
    return %arg0, %arg1, %c0_i32 : i32, i32, i32
  }
}

module attributes {stable_mosaic.version = 11 : i64} {
  func.func @_proj_res_ln_mlp_kernel(%arg0: i32, %arg1: i32, %arg2: memref<1x8x32xbf16, #tpu.memory_space<vmem>>, %arg3: memref<1x8x32xf32, #tpu.memory_space<vmem>>, %arg4: memref<32x32xbf16, #tpu.memory_space<vmem>>, %arg5: memref<1x32xf32, #tpu.memory_space<vmem>>, %arg6: memref<1x32xf32, #tpu.memory_space<vmem>>, %arg7: memref<1x32xf32, #tpu.memory_space<vmem>>, %arg8: memref<32x128xbf16, #tpu.memory_space<vmem>>, %arg9: memref<1x128xf32, #tpu.memory_space<vmem>>, %arg10: memref<128x32xbf16, #tpu.memory_space<vmem>>, %arg11: memref<1x32xf32, #tpu.memory_space<vmem>>, %arg12: memref<1x8x32xf32, #tpu.memory_space<vmem>>) attributes {dimension_semantics = [#tpu.dimension_semantics<parallel>, #tpu.dimension_semantics<parallel>], iteration_bounds = array<i64: 2, 1>, scalar_prefetch = 0 : i64, scratch_operands = 0 : i64, tpu.core_type = #tpu.core_type<tc>, window_params = [{transform_indices = @transform_0, window_bounds = array<i64: 1, 8, 32>}, {transform_indices = @transform_1, window_bounds = array<i64: 1, 8, 32>}, {pipeline_mode = #tpu.pipeline_mode<synchronous>, transform_indices = @transform_2, window_bounds = array<i64: 32, 32>}, {pipeline_mode = #tpu.pipeline_mode<synchronous>, transform_indices = @transform_3, window_bounds = array<i64: 1, 32>}, {pipeline_mode = #tpu.pipeline_mode<synchronous>, transform_indices = @transform_4, window_bounds = array<i64: 1, 32>}, {pipeline_mode = #tpu.pipeline_mode<synchronous>, transform_indices = @transform_5, window_bounds = array<i64: 1, 32>}, {pipeline_mode = #tpu.pipeline_mode<synchronous>, transform_indices = @transform_6, window_bounds = array<i64: 32, 128>}, {pipeline_mode = #tpu.pipeline_mode<synchronous>, transform_indices = @transform_7, window_bounds = array<i64: 1, 128>}, {pipeline_mode = #tpu.pipeline_mode<synchronous>, transform_indices = @transform_8, window_bounds = array<i64: 128, 32>}, {pipeline_mode = #tpu.pipeline_mode<synchronous>, transform_indices = @transform_9, window_bounds = array<i64: 1, 32>}, {transform_indices = @transform_10, window_bounds = array<i64: 1, 8, 32>}]} {
    %c0 = arith.constant 0 : index
    %c0_0 = arith.constant 0 : index
    %c0_1 = arith.constant 0 : index
    %0 = vector.load %arg3[%c0, %c0_0, %c0_1] : memref<1x8x32xf32, #tpu.memory_space<vmem>>, vector<1x8x32xf32>
    %1 = vector.shape_cast %0 : vector<1x8x32xf32> to vector<8x32xf32>
    %c0_2 = arith.constant 0 : index
    %c0_3 = arith.constant 0 : index
    %c0_4 = arith.constant 0 : index
    %2 = vector.load %arg2[%c0_2, %c0_3, %c0_4] : memref<1x8x32xbf16, #tpu.memory_space<vmem>>, vector<1x8x32xbf16>
    %3 = vector.shape_cast %2 : vector<1x8x32xbf16> to vector<8x32xbf16>
    %c0_5 = arith.constant 0 : index
    %c0_6 = arith.constant 0 : index
    %4 = vector.load %arg4[%c0_5, %c0_6] : memref<32x32xbf16, #tpu.memory_space<vmem>>, vector<32x32xbf16>
    %cst = arith.constant dense<0.000000e+00> : vector<8x32xf32>
    %5 = tpu.matmul %3, %4, %cst {dimension_numbers = #tpu.dot_dimension_numbers<[1], [0], [0], [1], [0, 0, 1, 1], [], []>} : vector<8x32xbf16>, vector<32x32xbf16>, vector<8x32xf32> -> vector<8x32xf32>
    %6 = arith.addf %1, %5 : vector<8x32xf32>
    %c0_7 = arith.constant 0 : index
    %c0_8 = arith.constant 0 : index
    %7 = vector.load %arg5[%c0_7, %c0_8] : memref<1x32xf32, #tpu.memory_space<vmem>>, vector<1x32xf32>
    %8 = vector.broadcast %7 : vector<1x32xf32> to vector<8x32xf32>
    %9 = arith.addf %6, %8 : vector<8x32xf32>
    %c0_9 = arith.constant 0 : index
    %c0_10 = arith.constant 0 : index
    %10 = vector.load %arg6[%c0_9, %c0_10] : memref<1x32xf32, #tpu.memory_space<vmem>>, vector<1x32xf32>
    %c0_11 = arith.constant 0 : index
    %c0_12 = arith.constant 0 : index
    %11 = vector.load %arg7[%c0_11, %c0_12] : memref<1x32xf32, #tpu.memory_space<vmem>>, vector<1x32xf32>
    %cst_13 = arith.constant dense<0.000000e+00> : vector<8xf32>
    %12 = vector.multi_reduction <add>, %9, %cst_13 [1] : vector<8x32xf32> to vector<8xf32>
    %13 = vector.shape_cast %12 : vector<8xf32> to vector<8x1xf32>
    %cst_14 = arith.constant 3.200000e+01 : f32
    %14 = vector.broadcast %cst_14 : f32 to vector<8x1xf32>
    %15 = arith.divf %13, %14 : vector<8x1xf32>
    %16 = arith.mulf %9, %9 : vector<8x32xf32>
    %cst_15 = arith.constant dense<0.000000e+00> : vector<8xf32>
    %17 = vector.multi_reduction <add>, %16, %cst_15 [1] : vector<8x32xf32> to vector<8xf32>
    %18 = vector.shape_cast %17 : vector<8xf32> to vector<8x1xf32>
    %cst_16 = arith.constant 3.200000e+01 : f32
    %19 = vector.broadcast %cst_16 : f32 to vector<8x1xf32>
    %20 = arith.divf %18, %19 : vector<8x1xf32>
    %21 = arith.mulf %15, %15 : vector<8x1xf32>
    %22 = arith.subf %20, %21 : vector<8x1xf32>
    %23 = vector.broadcast %15 : vector<8x1xf32> to vector<8x32xf32>
    %24 = arith.subf %9, %23 : vector<8x32xf32>
    %cst_17 = arith.constant 9.99999974E-6 : f32
    %25 = vector.broadcast %cst_17 : f32 to vector<8x1xf32>
    %26 = arith.addf %22, %25 : vector<8x1xf32>
    %27 = math.rsqrt %26 : vector<8x1xf32>
    %28 = vector.broadcast %27 : vector<8x1xf32> to vector<8x32xf32>
    %29 = arith.mulf %24, %28 : vector<8x32xf32>
    %30 = vector.broadcast %10 : vector<1x32xf32> to vector<8x32xf32>
    %31 = arith.mulf %29, %30 : vector<8x32xf32>
    %32 = vector.broadcast %11 : vector<1x32xf32> to vector<8x32xf32>
    %33 = arith.addf %31, %32 : vector<8x32xf32>
    %34 = arith.truncf %33 : vector<8x32xf32> to vector<8x32xbf16>
    %c0_18 = arith.constant 0 : index
    %c0_19 = arith.constant 0 : index
    %35 = vector.load %arg8[%c0_18, %c0_19] : memref<32x128xbf16, #tpu.memory_space<vmem>>, vector<32x128xbf16>
    %cst_20 = arith.constant dense<0.000000e+00> : vector<8x128xf32>
    %36 = tpu.matmul %34, %35, %cst_20 {dimension_numbers = #tpu.dot_dimension_numbers<[1], [0], [0], [1], [0, 0, 1, 1], [], []>} : vector<8x32xbf16>, vector<32x128xbf16>, vector<8x128xf32> -> vector<8x128xf32>
    %c0_21 = arith.constant 0 : index
    %c0_22 = arith.constant 0 : index
    %37 = vector.load %arg9[%c0_21, %c0_22] : memref<1x128xf32, #tpu.memory_space<vmem>>, vector<1x128xf32>
    %38 = vector.broadcast %37 : vector<1x128xf32> to vector<8x128xf32>
    %39 = arith.addf %36, %38 : vector<8x128xf32>
    %40 = math.absf %39 : vector<8x128xf32>
    %cst_23 = arith.constant 0.707106769 : f32
    %41 = vector.broadcast %cst_23 : f32 to vector<8x128xf32>
    %42 = arith.mulf %40, %41 : vector<8x128xf32>
    %cst_24 = arith.constant 0.327591091 : f32
    %43 = vector.broadcast %cst_24 : f32 to vector<8x128xf32>
    %44 = arith.mulf %43, %42 : vector<8x128xf32>
    %cst_25 = arith.constant 1.000000e+00 : f32
    %45 = vector.broadcast %cst_25 : f32 to vector<8x128xf32>
    %46 = arith.addf %45, %44 : vector<8x128xf32>
    %cst_26 = arith.constant 1.000000e+00 : f32
    %47 = vector.broadcast %cst_26 : f32 to vector<8x128xf32>
    %48 = arith.divf %47, %46 : vector<8x128xf32>
    %cst_27 = arith.constant 1.06140542 : f32
    %49 = vector.broadcast %cst_27 : f32 to vector<8x128xf32>
    %50 = arith.mulf %49, %48 : vector<8x128xf32>
    %cst_28 = arith.constant -1.45315206 : f32
    %51 = vector.broadcast %cst_28 : f32 to vector<8x128xf32>
    %52 = arith.addf %50, %51 : vector<8x128xf32>
    %53 = arith.mulf %52, %48 : vector<8x128xf32>
    %cst_29 = arith.constant 1.42141378 : f32
    %54 = vector.broadcast %cst_29 : f32 to vector<8x128xf32>
    %55 = arith.addf %53, %54 : vector<8x128xf32>
    %56 = arith.mulf %55, %48 : vector<8x128xf32>
    %cst_30 = arith.constant -0.284496725 : f32
    %57 = vector.broadcast %cst_30 : f32 to vector<8x128xf32>
    %58 = arith.addf %56, %57 : vector<8x128xf32>
    %59 = arith.mulf %58, %48 : vector<8x128xf32>
    %cst_31 = arith.constant 0.254829586 : f32
    %60 = vector.broadcast %cst_31 : f32 to vector<8x128xf32>
    %61 = arith.addf %59, %60 : vector<8x128xf32>
    %62 = arith.mulf %61, %48 : vector<8x128xf32>
    %cst_32 = arith.constant 0.000000e+00 : f32
    %63 = vector.broadcast %cst_32 : f32 to vector<8x128xf32>
    %64 = arith.subf %63, %42 : vector<8x128xf32>
    %65 = arith.mulf %64, %42 : vector<8x128xf32>
    %66 = math.exp %65 : vector<8x128xf32>
    %67 = arith.mulf %62, %66 : vector<8x128xf32>
    %cst_33 = arith.constant 1.000000e+00 : f32
    %68 = vector.broadcast %cst_33 : f32 to vector<8x128xf32>
    %69 = arith.subf %68, %67 : vector<8x128xf32>
    %cst_34 = arith.constant 0.000000e+00 : f32
    %70 = vector.broadcast %cst_34 : f32 to vector<8x128xf32>
    %71 = arith.cmpf oge, %39, %70 : vector<8x128xf32>
    %cst_35 = arith.constant 0.000000e+00 : f32
    %72 = vector.broadcast %cst_35 : f32 to vector<8x128xf32>
    %73 = arith.subf %72, %69 : vector<8x128xf32>
    %74 = arith.select %71, %69, %73 : vector<8x128xi1>, vector<8x128xf32>
    %cst_36 = arith.constant 5.000000e-01 : f32
    %75 = vector.broadcast %cst_36 : f32 to vector<8x128xf32>
    %76 = arith.mulf %75, %39 : vector<8x128xf32>
    %cst_37 = arith.constant 1.000000e+00 : f32
    %77 = vector.broadcast %cst_37 : f32 to vector<8x128xf32>
    %78 = arith.addf %77, %74 : vector<8x128xf32>
    %79 = arith.mulf %76, %78 : vector<8x128xf32>
    %80 = arith.truncf %79 : vector<8x128xf32> to vector<8x128xbf16>
    %c0_38 = arith.constant 0 : index
    %c0_39 = arith.constant 0 : index
    %81 = vector.load %arg10[%c0_38, %c0_39] : memref<128x32xbf16, #tpu.memory_space<vmem>>, vector<128x32xbf16>
    %cst_40 = arith.constant dense<0.000000e+00> : vector<8x32xf32>
    %82 = tpu.matmul %80, %81, %cst_40 {dimension_numbers = #tpu.dot_dimension_numbers<[1], [0], [0], [1], [0, 0, 1, 1], [], []>} : vector<8x128xbf16>, vector<128x32xbf16>, vector<8x32xf32> -> vector<8x32xf32>
    %83 = arith.addf %9, %82 : vector<8x32xf32>
    %c0_41 = arith.constant 0 : index
    %c0_42 = arith.constant 0 : index
    %84 = vector.load %arg11[%c0_41, %c0_42] : memref<1x32xf32, #tpu.memory_space<vmem>>, vector<1x32xf32>
    %85 = vector.broadcast %84 : vector<1x32xf32> to vector<8x32xf32>
    %86 = arith.addf %83, %85 : vector<8x32xf32>
    %c0_43 = arith.constant 0 : index
    %c0_44 = arith.constant 0 : index
    %c0_45 = arith.constant 0 : index
    %87 = vector.load %arg12[%c0_43, %c0_44, %c0_45] : memref<1x8x32xf32, #tpu.memory_space<vmem>>, vector<1x8x32xf32>
    %88 = vector.shape_cast %87 : vector<1x8x32xf32> to vector<8x32xf32>
    %89 = vector.shape_cast %86 : vector<8x32xf32> to vector<1x8x32xf32>
    tpu.vector_store %arg12[%c0_43, %c0_44, %c0_45], %89 {strides = array<i32>} : memref<1x8x32xf32, #tpu.memory_space<vmem>>, vector<1x8x32xf32>,
    return
  }
  func.func @transform_0(%arg0: i32, %arg1: i32) -> (i32, i32, i32) {
    %c0_i32 = arith.constant 0 : i32
    %c0_i32_0 = arith.constant 0 : i32
    return %arg0, %arg1, %c0_i32 : i32, i32, i32
  }
  func.func @transform_1(%arg0: i32, %arg1: i32) -> (i32, i32, i32) {
    %c0_i32 = arith.constant 0 : i32
    %c0_i32_0 = arith.constant 0 : i32
    return %arg0, %arg1, %c0_i32 : i32, i32, i32
  }
  func.func @transform_2(%arg0: i32, %arg1: i32) -> (i32, i32) {
    %c0_i32 = arith.constant 0 : i32
    %c0_i32_0 = arith.constant 0 : i32
    %c0_i32_1 = arith.constant 0 : i32
    return %c0_i32, %c0_i32_0 : i32, i32
  }
  func.func @transform_3(%arg0: i32, %arg1: i32) -> (i32, i32) {
    %c0_i32 = arith.constant 0 : i32
    %c0_i32_0 = arith.constant 0 : i32
    %c0_i32_1 = arith.constant 0 : i32
    return %c0_i32, %c0_i32_0 : i32, i32
  }
  func.func @transform_4(%arg0: i32, %arg1: i32) -> (i32, i32) {
    %c0_i32 = arith.constant 0 : i32
    %c0_i32_0 = arith.constant 0 : i32
    %c0_i32_1 = arith.constant 0 : i32
    return %c0_i32, %c0_i32_0 : i32, i32
  }
  func.func @transform_5(%arg0: i32, %arg1: i32) -> (i32, i32) {
    %c0_i32 = arith.constant 0 : i32
    %c0_i32_0 = arith.constant 0 : i32
    %c0_i32_1 = arith.constant 0 : i32
    return %c0_i32, %c0_i32_0 : i32, i32
  }
  func.func @transform_6(%arg0: i32, %arg1: i32) -> (i32, i32) {
    %c0_i32 = arith.constant 0 : i32
    %c0_i32_0 = arith.constant 0 : i32
    %c0_i32_1 = arith.constant 0 : i32
    return %c0_i32, %c0_i32_0 : i32, i32
  }
  func.func @transform_7(%arg0: i32, %arg1: i32) -> (i32, i32) {
    %c0_i32 = arith.constant 0 : i32
    %c0_i32_0 = arith.constant 0 : i32
    %c0_i32_1 = arith.constant 0 : i32
    return %c0_i32, %c0_i32_0 : i32, i32
  }
  func.func @transform_8(%arg0: i32, %arg1: i32) -> (i32, i32) {
    %c0_i32 = arith.constant 0 : i32
    %c0_i32_0 = arith.constant 0 : i32
    %c0_i32_1 = arith.constant 0 : i32
    return %c0_i32, %c0_i32_0 : i32, i32
  }
  func.func @transform_9(%arg0: i32, %arg1: i32) -> (i32, i32) {
    %c0_i32 = arith.constant 0 : i32
    %c0_i32_0 = arith.constant 0 : i32
    %c0_i32_1 = arith.constant 0 : i32
    return %c0_i32, %c0_i32_0 : i32, i32
  }
  func.func @transform_10(%arg0: i32, %arg1: i32) -> (i32, i32, i32) {
    %c0_i32 = arith.constant 0 : i32
    %c0_i32_0 = arith.constant 0 : i32
    return %arg0, %arg1, %c0_i32 : i32, i32, i32
  }
}

module attributes {stable_mosaic.version = 11 : i64} {
  func.func @_ln_qkv_attn_kernel(%arg0: i32, %arg1: i32, %arg2: memref<1x8x32xf32, #tpu.memory_space<vmem>>, %arg3: memref<1x32xf32, #tpu.memory_space<vmem>>, %arg4: memref<1x32xf32, #tpu.memory_space<vmem>>, %arg5: memref<32x96xbf16, #tpu.memory_space<vmem>>, %arg6: memref<1x96xf32, #tpu.memory_space<vmem>>, %arg7: memref<1x4x8x8xbf16, #tpu.memory_space<vmem>>) attributes {dimension_semantics = [#tpu.dimension_semantics<parallel>, #tpu.dimension_semantics<parallel>], iteration_bounds = array<i64: 2, 1>, scalar_prefetch = 0 : i64, scratch_operands = 0 : i64, tpu.core_type = #tpu.core_type<tc>, window_params = [{transform_indices = @transform_0, window_bounds = array<i64: 1, 8, 32>}, {pipeline_mode = #tpu.pipeline_mode<synchronous>, transform_indices = @transform_1, window_bounds = array<i64: 1, 32>}, {pipeline_mode = #tpu.pipeline_mode<synchronous>, transform_indices = @transform_2, window_bounds = array<i64: 1, 32>}, {pipeline_mode = #tpu.pipeline_mode<synchronous>, transform_indices = @transform_3, window_bounds = array<i64: 32, 96>}, {pipeline_mode = #tpu.pipeline_mode<synchronous>, transform_indices = @transform_4, window_bounds = array<i64: 1, 96>}, {transform_indices = @transform_5, window_bounds = array<i64: 1, 4, 8, 8>}]} {
    %c0 = arith.constant 0 : index
    %c0_0 = arith.constant 0 : index
    %c0_1 = arith.constant 0 : index
    %0 = vector.load %arg2[%c0, %c0_0, %c0_1] : memref<1x8x32xf32, #tpu.memory_space<vmem>>, vector<1x8x32xf32>
    %1 = vector.shape_cast %0 : vector<1x8x32xf32> to vector<8x32xf32>
    %c0_2 = arith.constant 0 : index
    %c0_3 = arith.constant 0 : index
    %2 = vector.load %arg3[%c0_2, %c0_3] : memref<1x32xf32, #tpu.memory_space<vmem>>, vector<1x32xf32>
    %c0_4 = arith.constant 0 : index
    %c0_5 = arith.constant 0 : index
    %3 = vector.load %arg4[%c0_4, %c0_5] : memref<1x32xf32, #tpu.memory_space<vmem>>, vector<1x32xf32>
    %cst = arith.constant dense<0.000000e+00> : vector<8xf32>
    %4 = vector.multi_reduction <add>, %1, %cst [1] : vector<8x32xf32> to vector<8xf32>
    %5 = vector.shape_cast %4 : vector<8xf32> to vector<8x1xf32>
    %cst_6 = arith.constant 3.200000e+01 : f32
    %6 = vector.broadcast %cst_6 : f32 to vector<8x1xf32>
    %7 = arith.divf %5, %6 : vector<8x1xf32>
    %8 = arith.mulf %1, %1 : vector<8x32xf32>
    %cst_7 = arith.constant dense<0.000000e+00> : vector<8xf32>
    %9 = vector.multi_reduction <add>, %8, %cst_7 [1] : vector<8x32xf32> to vector<8xf32>
    %10 = vector.shape_cast %9 : vector<8xf32> to vector<8x1xf32>
    %cst_8 = arith.constant 3.200000e+01 : f32
    %11 = vector.broadcast %cst_8 : f32 to vector<8x1xf32>
    %12 = arith.divf %10, %11 : vector<8x1xf32>
    %13 = arith.mulf %7, %7 : vector<8x1xf32>
    %14 = arith.subf %12, %13 : vector<8x1xf32>
    %15 = vector.broadcast %7 : vector<8x1xf32> to vector<8x32xf32>
    %16 = arith.subf %1, %15 : vector<8x32xf32>
    %cst_9 = arith.constant 9.99999974E-6 : f32
    %17 = vector.broadcast %cst_9 : f32 to vector<8x1xf32>
    %18 = arith.addf %14, %17 : vector<8x1xf32>
    %19 = math.rsqrt %18 : vector<8x1xf32>
    %20 = vector.broadcast %19 : vector<8x1xf32> to vector<8x32xf32>
    %21 = arith.mulf %16, %20 : vector<8x32xf32>
    %22 = vector.broadcast %2 : vector<1x32xf32> to vector<8x32xf32>
    %23 = arith.mulf %21, %22 : vector<8x32xf32>
    %24 = vector.broadcast %3 : vector<1x32xf32> to vector<8x32xf32>
    %25 = arith.addf %23, %24 : vector<8x32xf32>
    %26 = arith.truncf %25 : vector<8x32xf32> to vector<8x32xbf16>
    %c0_10 = arith.constant 0 : index
    %c0_11 = arith.constant 0 : index
    %27 = vector.load %arg5[%c0_10, %c0_11] : memref<32x96xbf16, #tpu.memory_space<vmem>>, vector<32x96xbf16>
    %cst_12 = arith.constant dense<0.000000e+00> : vector<8x96xf32>
    %28 = tpu.matmul %26, %27, %cst_12 {dimension_numbers = #tpu.dot_dimension_numbers<[1], [0], [0], [1], [0, 0, 1, 1], [], []>} : vector<8x32xbf16>, vector<32x96xbf16>, vector<8x96xf32> -> vector<8x96xf32>
    %c0_13 = arith.constant 0 : index
    %c0_14 = arith.constant 0 : index
    %29 = vector.load %arg6[%c0_13, %c0_14] : memref<1x96xf32, #tpu.memory_space<vmem>>, vector<1x96xf32>
    %30 = vector.broadcast %29 : vector<1x96xf32> to vector<8x96xf32>
    %31 = arith.addf %28, %30 : vector<8x96xf32>
    %32 = vector.extract_strided_slice %31 {offsets = [0, 0], sizes = [8, 32], strides = [1, 1]} : vector<8x96xf32> to vector<8x32xf32>
    %33 = vector.extract_strided_slice %31 {offsets = [0, 32], sizes = [8, 32], strides = [1, 1]} : vector<8x96xf32> to vector<8x32xf32>
    %34 = vector.extract_strided_slice %31 {offsets = [0, 64], sizes = [8, 32], strides = [1, 1]} : vector<8x96xf32> to vector<8x32xf32>
    %35 = tpu.iota {dimensions = array<i32: 0>} : vector<32x4xi32>
    %36 = tpu.iota {dimensions = array<i32: 1>} : vector<32x4xi32>
    %c8_i32 = arith.constant 8 : i32
    %37 = vector.broadcast %c8_i32 : i32 to vector<32x4xi32>
    %38 = arith.muli %36, %37 : vector<32x4xi32>
    %39 = arith.cmpi sge, %35, %38 : vector<32x4xi32>
    %c1_i32 = arith.constant 1 : i32
    %40 = vector.broadcast %c1_i32 : i32 to vector<32x4xi32>
    %41 = arith.addi %36, %40 : vector<32x4xi32>
    %c8_i32_15 = arith.constant 8 : i32
    %42 = vector.broadcast %c8_i32_15 : i32 to vector<32x4xi32>
    %43 = arith.muli %41, %42 : vector<32x4xi32>
    %44 = arith.cmpi slt, %35, %43 : vector<32x4xi32>
    %45 = arith.andi %39, %44 : vector<32x4xi1>
    %46 = arith.extui %45 : vector<32x4xi1> to vector<32x4xi32>
    %47 = arith.sitofp %46 : vector<32x4xi32> to vector<32x4xf32>
    %48 = tpu.iota {dimensions = array<i32: 0>} : vector<4x32xi32>
    %49 = tpu.iota {dimensions = array<i32: 1>} : vector<4x32xi32>
    %c8_i32_16 = arith.constant 8 : i32
    %50 = vector.broadcast %c8_i32_16 : i32 to vector<4x32xi32>
    %51 = arith.muli %48, %50 : vector<4x32xi32>
    %52 = arith.cmpi sge, %49, %51 : vector<4x32xi32>
    %c1_i32_17 = arith.constant 1 : i32
    %53 = vector.broadcast %c1_i32_17 : i32 to vector<4x32xi32>
    %54 = arith.addi %48, %53 : vector<4x32xi32>
    %c8_i32_18 = arith.constant 8 : i32
    %55 = vector.broadcast %c8_i32_18 : i32 to vector<4x32xi32>
    %56 = arith.muli %54, %55 : vector<4x32xi32>
    %57 = arith.cmpi slt, %49, %56 : vector<4x32xi32>
    %58 = arith.andi %52, %57 : vector<4x32xi1>
    %59 = arith.extui %58 : vector<4x32xi1> to vector<4x32xi32>
    %60 = arith.sitofp %59 : vector<4x32xi32> to vector<4x32xf32>
    %61 = vector.extract_strided_slice %33 {offsets = [0, 0], sizes = [8, 8], strides = [1, 1]} : vector<8x32xf32> to vector<8x8xf32>
    %62 = tpu.concatenate %61, %61, %61, %61 in 1 : vector<8x8xf32>, vector<8x8xf32>, vector<8x8xf32>, vector<8x8xf32> -> vector<8x32xf32>
    %63 = arith.mulf %32, %62 : vector<8x32xf32>
    %cst_19 = arith.constant dense<0.000000e+00> : vector<8x4xf32>
    %64 = tpu.matmul %63, %47, %cst_19 {dimension_numbers = #tpu.dot_dimension_numbers<[1], [0], [0], [1], [0, 0, 1, 1], [], []>} : vector<8x32xf32>, vector<32x4xf32>, vector<8x4xf32> -> vector<8x4xf32>
    %cst_20 = arith.constant 0.353553385 : f32
    %65 = vector.broadcast %cst_20 : f32 to vector<8x4xf32>
    %66 = arith.mulf %64, %65 : vector<8x4xf32>
    %67 = vector.extract_strided_slice %33 {offsets = [0, 8], sizes = [8, 8], strides = [1, 1]} : vector<8x32xf32> to vector<8x8xf32>
    %68 = tpu.concatenate %67, %67, %67, %67 in 1 : vector<8x8xf32>, vector<8x8xf32>, vector<8x8xf32>, vector<8x8xf32> -> vector<8x32xf32>
    %69 = arith.mulf %32, %68 : vector<8x32xf32>
    %cst_21 = arith.constant dense<0.000000e+00> : vector<8x4xf32>
    %70 = tpu.matmul %69, %47, %cst_21 {dimension_numbers = #tpu.dot_dimension_numbers<[1], [0], [0], [1], [0, 0, 1, 1], [], []>} : vector<8x32xf32>, vector<32x4xf32>, vector<8x4xf32> -> vector<8x4xf32>
    %cst_22 = arith.constant 0.353553385 : f32
    %71 = vector.broadcast %cst_22 : f32 to vector<8x4xf32>
    %72 = arith.mulf %70, %71 : vector<8x4xf32>
    %73 = vector.extract_strided_slice %33 {offsets = [0, 16], sizes = [8, 8], strides = [1, 1]} : vector<8x32xf32> to vector<8x8xf32>
    %74 = tpu.concatenate %73, %73, %73, %73 in 1 : vector<8x8xf32>, vector<8x8xf32>, vector<8x8xf32>, vector<8x8xf32> -> vector<8x32xf32>
    %75 = arith.mulf %32, %74 : vector<8x32xf32>
    %cst_23 = arith.constant dense<0.000000e+00> : vector<8x4xf32>
    %76 = tpu.matmul %75, %47, %cst_23 {dimension_numbers = #tpu.dot_dimension_numbers<[1], [0], [0], [1], [0, 0, 1, 1], [], []>} : vector<8x32xf32>, vector<32x4xf32>, vector<8x4xf32> -> vector<8x4xf32>
    %cst_24 = arith.constant 0.353553385 : f32
    %77 = vector.broadcast %cst_24 : f32 to vector<8x4xf32>
    %78 = arith.mulf %76, %77 : vector<8x4xf32>
    %79 = vector.extract_strided_slice %33 {offsets = [0, 24], sizes = [8, 8], strides = [1, 1]} : vector<8x32xf32> to vector<8x8xf32>
    %80 = tpu.concatenate %79, %79, %79, %79 in 1 : vector<8x8xf32>, vector<8x8xf32>, vector<8x8xf32>, vector<8x8xf32> -> vector<8x32xf32>
    %81 = arith.mulf %32, %80 : vector<8x32xf32>
    %cst_25 = arith.constant dense<0.000000e+00> : vector<8x4xf32>
    %82 = tpu.matmul %81, %47, %cst_25 {dimension_numbers = #tpu.dot_dimension_numbers<[1], [0], [0], [1], [0, 0, 1, 1], [], []>} : vector<8x32xf32>, vector<32x4xf32>, vector<8x4xf32> -> vector<8x4xf32>
    %cst_26 = arith.constant 0.353553385 : f32
    %83 = vector.broadcast %cst_26 : f32 to vector<8x4xf32>
    %84 = arith.mulf %82, %83 : vector<8x4xf32>
    %85 = tpu.concatenate %66, %72, %78, %84 in 1 : vector<8x4xf32>, vector<8x4xf32>, vector<8x4xf32>, vector<8x4xf32> -> vector<8x16xf32>
    %86 = tpu.iota {dimensions = array<i32: 1>} : vector<1x4xi32>
    %c0_i32 = arith.constant 0 : i32
    %87 = vector.broadcast %c0_i32 : i32 to vector<1x4xi32>
    %88 = arith.cmpi sge, %86, %87 : vector<1x4xi32>
    %cst_27 = arith.constant 0.000000e+00 : f32
    %cst_28 = arith.constant -1.000000e+30 : f32
    %89 = vector.broadcast %cst_27 : f32 to vector<1x4xf32>
    %90 = vector.broadcast %cst_28 : f32 to vector<1x4xf32>
    %91 = arith.select %88, %89, %90 : vector<1x4xi1>, vector<1x4xf32>
    %c1_i32_29 = arith.constant 1 : i32
    %92 = vector.broadcast %c1_i32_29 : i32 to vector<1x4xi32>
    %93 = arith.cmpi sge, %86, %92 : vector<1x4xi32>
    %cst_30 = arith.constant 0.000000e+00 : f32
    %cst_31 = arith.constant -1.000000e+30 : f32
    %94 = vector.broadcast %cst_30 : f32 to vector<1x4xf32>
    %95 = vector.broadcast %cst_31 : f32 to vector<1x4xf32>
    %96 = arith.select %93, %94, %95 : vector<1x4xi1>, vector<1x4xf32>
    %c2_i32 = arith.constant 2 : i32
    %97 = vector.broadcast %c2_i32 : i32 to vector<1x4xi32>
    %98 = arith.cmpi sge, %86, %97 : vector<1x4xi32>
    %cst_32 = arith.constant 0.000000e+00 : f32
    %cst_33 = arith.constant -1.000000e+30 : f32
    %99 = vector.broadcast %cst_32 : f32 to vector<1x4xf32>
    %100 = vector.broadcast %cst_33 : f32 to vector<1x4xf32>
    %101 = arith.select %98, %99, %100 : vector<1x4xi1>, vector<1x4xf32>
    %c3_i32 = arith.constant 3 : i32
    %102 = vector.broadcast %c3_i32 : i32 to vector<1x4xi32>
    %103 = arith.cmpi sge, %86, %102 : vector<1x4xi32>
    %cst_34 = arith.constant 0.000000e+00 : f32
    %cst_35 = arith.constant -1.000000e+30 : f32
    %104 = vector.broadcast %cst_34 : f32 to vector<1x4xf32>
    %105 = vector.broadcast %cst_35 : f32 to vector<1x4xf32>
    %106 = arith.select %103, %104, %105 : vector<1x4xi1>, vector<1x4xf32>
    %107 = tpu.concatenate %91, %96, %101, %106 in 1 : vector<1x4xf32>, vector<1x4xf32>, vector<1x4xf32>, vector<1x4xf32> -> vector<1x16xf32>
    %108 = vector.broadcast %107 : vector<1x16xf32> to vector<8x16xf32>
    %109 = arith.addf %85, %108 : vector<8x16xf32>
    %110 = vector.extract_strided_slice %109 {offsets = [0, 0], sizes = [8, 4], strides = [1, 1]} : vector<8x16xf32> to vector<8x4xf32>
    %111 = vector.extract_strided_slice %109 {offsets = [0, 4], sizes = [8, 4], strides = [1, 1]} : vector<8x16xf32> to vector<8x4xf32>
    %112 = arith.maximumf %110, %111 : vector<8x4xf32>
    %113 = vector.extract_strided_slice %109 {offsets = [0, 8], sizes = [8, 4], strides = [1, 1]} : vector<8x16xf32> to vector<8x4xf32>
    %114 = arith.maximumf %112, %113 : vector<8x4xf32>
    %115 = vector.extract_strided_slice %109 {offsets = [0, 12], sizes = [8, 4], strides = [1, 1]} : vector<8x16xf32> to vector<8x4xf32>
    %116 = arith.maximumf %114, %115 : vector<8x4xf32>
    %117 = tpu.concatenate %116, %116, %116, %116 in 1 : vector<8x4xf32>, vector<8x4xf32>, vector<8x4xf32>, vector<8x4xf32> -> vector<8x16xf32>
    %118 = arith.subf %109, %117 : vector<8x16xf32>
    %119 = math.exp %118 : vector<8x16xf32>
    %120 = vector.extract_strided_slice %119 {offsets = [0, 0], sizes = [8, 4], strides = [1, 1]} : vector<8x16xf32> to vector<8x4xf32>
    %121 = vector.extract_strided_slice %119 {offsets = [0, 4], sizes = [8, 4], strides = [1, 1]} : vector<8x16xf32> to vector<8x4xf32>
    %122 = arith.addf %120, %121 : vector<8x4xf32>
    %123 = vector.extract_strided_slice %119 {offsets = [0, 8], sizes = [8, 4], strides = [1, 1]} : vector<8x16xf32> to vector<8x4xf32>
    %124 = arith.addf %122, %123 : vector<8x4xf32>
    %125 = vector.extract_strided_slice %119 {offsets = [0, 12], sizes = [8, 4], strides = [1, 1]} : vector<8x16xf32> to vector<8x4xf32>
    %126 = arith.addf %124, %125 : vector<8x4xf32>
    %127 = tpu.reciprocal %126 {approx = true} : vector<8x4xf32> -> vector<8x4xf32>
    %128 = vector.extract_strided_slice %119 {offsets = [0, 0], sizes = [8, 4], strides = [1, 1]} : vector<8x16xf32> to vector<8x4xf32>
    %cst_36 = arith.constant dense<0.000000e+00> : vector<8x32xf32>
    %129 = tpu.matmul %128, %60, %cst_36 {dimension_numbers = #tpu.dot_dimension_numbers<[1], [0], [0], [1], [0, 0, 1, 1], [], []>} : vector<8x4xf32>, vector<4x32xf32>, vector<8x32xf32> -> vector<8x32xf32>
    %130 = vector.extract_strided_slice %34 {offsets = [0, 0], sizes = [8, 8], strides = [1, 1]} : vector<8x32xf32> to vector<8x8xf32>
    %131 = tpu.concatenate %130, %130, %130, %130 in 1 : vector<8x8xf32>, vector<8x8xf32>, vector<8x8xf32>, vector<8x8xf32> -> vector<8x32xf32>
    %132 = arith.mulf %129, %131 : vector<8x32xf32>
    %133 = vector.extract_strided_slice %119 {offsets = [0, 4], sizes = [8, 4], strides = [1, 1]} : vector<8x16xf32> to vector<8x4xf32>
    %cst_37 = arith.constant dense<0.000000e+00> : vector<8x32xf32>
    %134 = tpu.matmul %133, %60, %cst_37 {dimension_numbers = #tpu.dot_dimension_numbers<[1], [0], [0], [1], [0, 0, 1, 1], [], []>} : vector<8x4xf32>, vector<4x32xf32>, vector<8x32xf32> -> vector<8x32xf32>
    %135 = vector.extract_strided_slice %34 {offsets = [0, 8], sizes = [8, 8], strides = [1, 1]} : vector<8x32xf32> to vector<8x8xf32>
    %136 = tpu.concatenate %135, %135, %135, %135 in 1 : vector<8x8xf32>, vector<8x8xf32>, vector<8x8xf32>, vector<8x8xf32> -> vector<8x32xf32>
    %137 = arith.mulf %134, %136 : vector<8x32xf32>
    %138 = arith.addf %132, %137 : vector<8x32xf32>
    %139 = vector.extract_strided_slice %119 {offsets = [0, 8], sizes = [8, 4], strides = [1, 1]} : vector<8x16xf32> to vector<8x4xf32>
    %cst_38 = arith.constant dense<0.000000e+00> : vector<8x32xf32>
    %140 = tpu.matmul %139, %60, %cst_38 {dimension_numbers = #tpu.dot_dimension_numbers<[1], [0], [0], [1], [0, 0, 1, 1], [], []>} : vector<8x4xf32>, vector<4x32xf32>, vector<8x32xf32> -> vector<8x32xf32>
    %141 = vector.extract_strided_slice %34 {offsets = [0, 16], sizes = [8, 8], strides = [1, 1]} : vector<8x32xf32> to vector<8x8xf32>
    %142 = tpu.concatenate %141, %141, %141, %141 in 1 : vector<8x8xf32>, vector<8x8xf32>, vector<8x8xf32>, vector<8x8xf32> -> vector<8x32xf32>
    %143 = arith.mulf %140, %142 : vector<8x32xf32>
    %144 = arith.addf %138, %143 : vector<8x32xf32>
    %145 = vector.extract_strided_slice %119 {offsets = [0, 12], sizes = [8, 4], strides = [1, 1]} : vector<8x16xf32> to vector<8x4xf32>
    %cst_39 = arith.constant dense<0.000000e+00> : vector<8x32xf32>
    %146 = tpu.matmul %145, %60, %cst_39 {dimension_numbers = #tpu.dot_dimension_numbers<[1], [0], [0], [1], [0, 0, 1, 1], [], []>} : vector<8x4xf32>, vector<4x32xf32>, vector<8x32xf32> -> vector<8x32xf32>
    %147 = vector.extract_strided_slice %34 {offsets = [0, 24], sizes = [8, 8], strides = [1, 1]} : vector<8x32xf32> to vector<8x8xf32>
    %148 = tpu.concatenate %147, %147, %147, %147 in 1 : vector<8x8xf32>, vector<8x8xf32>, vector<8x8xf32>, vector<8x8xf32> -> vector<8x32xf32>
    %149 = arith.mulf %146, %148 : vector<8x32xf32>
    %150 = arith.addf %144, %149 : vector<8x32xf32>
    %cst_40 = arith.constant dense<0.000000e+00> : vector<8x32xf32>
    %151 = tpu.matmul %127, %60, %cst_40 {dimension_numbers = #tpu.dot_dimension_numbers<[1], [0], [0], [1], [0, 0, 1, 1], [], []>} : vector<8x4xf32>, vector<4x32xf32>, vector<8x32xf32> -> vector<8x32xf32>
    %152 = arith.mulf %150, %151 : vector<8x32xf32>
    %153 = vector.extract_strided_slice %152 {offsets = [0, 0], sizes = [8, 8], strides = [1, 1]} : vector<8x32xf32> to vector<8x8xf32>
    %154 = arith.truncf %153 : vector<8x8xf32> to vector<8x8xbf16>
    %c0_41 = arith.constant 0 : index
    %c0_42 = arith.constant 0 : index
    %c0_43 = arith.constant 0 : index
    %c0_44 = arith.constant 0 : index
    %155 = vector.load %arg7[%c0_41, %c0_42, %c0_43, %c0_44] : memref<1x4x8x8xbf16, #tpu.memory_space<vmem>>, vector<1x1x8x8xbf16>
    %156 = vector.shape_cast %155 : vector<1x1x8x8xbf16> to vector<8x8xbf16>
    %157 = vector.shape_cast %154 : vector<8x8xbf16> to vector<1x1x8x8xbf16>
    tpu.vector_store %arg7[%c0_41, %c0_42, %c0_43, %c0_44], %157 {strides = array<i32>} : memref<1x4x8x8xbf16, #tpu.memory_space<vmem>>, vector<1x1x8x8xbf16>,
    %158 = vector.extract_strided_slice %152 {offsets = [0, 8], sizes = [8, 8], strides = [1, 1]} : vector<8x32xf32> to vector<8x8xf32>
    %159 = arith.truncf %158 : vector<8x8xf32> to vector<8x8xbf16>
    %c0_45 = arith.constant 0 : index
    %c1 = arith.constant 1 : index
    %c0_46 = arith.constant 0 : index
    %c0_47 = arith.constant 0 : index
    %160 = vector.load %arg7[%c0_45, %c1, %c0_46, %c0_47] : memref<1x4x8x8xbf16, #tpu.memory_space<vmem>>, vector<1x1x8x8xbf16>
    %161 = vector.shape_cast %160 : vector<1x1x8x8xbf16> to vector<8x8xbf16>
    %162 = vector.shape_cast %159 : vector<8x8xbf16> to vector<1x1x8x8xbf16>
    tpu.vector_store %arg7[%c0_45, %c1, %c0_46, %c0_47], %162 {strides = array<i32>} : memref<1x4x8x8xbf16, #tpu.memory_space<vmem>>, vector<1x1x8x8xbf16>,
    %163 = vector.extract_strided_slice %152 {offsets = [0, 16], sizes = [8, 8], strides = [1, 1]} : vector<8x32xf32> to vector<8x8xf32>
    %164 = arith.truncf %163 : vector<8x8xf32> to vector<8x8xbf16>
    %c0_48 = arith.constant 0 : index
    %c2 = arith.constant 2 : index
    %c0_49 = arith.constant 0 : index
    %c0_50 = arith.constant 0 : index
    %165 = vector.load %arg7[%c0_48, %c2, %c0_49, %c0_50] : memref<1x4x8x8xbf16, #tpu.memory_space<vmem>>, vector<1x1x8x8xbf16>
    %166 = vector.shape_cast %165 : vector<1x1x8x8xbf16> to vector<8x8xbf16>
    %167 = vector.shape_cast %164 : vector<8x8xbf16> to vector<1x1x8x8xbf16>
    tpu.vector_store %arg7[%c0_48, %c2, %c0_49, %c0_50], %167 {strides = array<i32>} : memref<1x4x8x8xbf16, #tpu.memory_space<vmem>>, vector<1x1x8x8xbf16>,
    %168 = vector.extract_strided_slice %152 {offsets = [0, 24], sizes = [8, 8], strides = [1, 1]} : vector<8x32xf32> to vector<8x8xf32>
    %169 = arith.truncf %168 : vector<8x8xf32> to vector<8x8xbf16>
    %c0_51 = arith.constant 0 : index
    %c3 = arith.constant 3 : index
    %c0_52 = arith.constant 0 : index
    %c0_53 = arith.constant 0 : index
    %170 = vector.load %arg7[%c0_51, %c3, %c0_52, %c0_53] : memref<1x4x8x8xbf16, #tpu.memory_space<vmem>>, vector<1x1x8x8xbf16>
    %171 = vector.shape_cast %170 : vector<1x1x8x8xbf16> to vector<8x8xbf16>
    %172 = vector.shape_cast %169 : vector<8x8xbf16> to vector<1x1x8x8xbf16>
    tpu.vector_store %arg7[%c0_51, %c3, %c0_52, %c0_53], %172 {strides = array<i32>} : memref<1x4x8x8xbf16, #tpu.memory_space<vmem>>, vector<1x1x8x8xbf16>,
    return
  }
  func.func @transform_0(%arg0: i32, %arg1: i32) -> (i32, i32, i32) {
    %c0_i32 = arith.constant 0 : i32
    %c0_i32_0 = arith.constant 0 : i32
    return %arg0, %arg1, %c0_i32 : i32, i32, i32
  }
  func.func @transform_1(%arg0: i32, %arg1: i32) -> (i32, i32) {
    %c0_i32 = arith.constant 0 : i32
    %c0_i32_0 = arith.constant 0 : i32
    %c0_i32_1 = arith.constant 0 : i32
    return %c0_i32, %c0_i32_0 : i32, i32
  }
  func.func @transform_2(%arg0: i32, %arg1: i32) -> (i32, i32) {
    %c0_i32 = arith.constant 0 : i32
    %c0_i32_0 = arith.constant 0 : i32
    %c0_i32_1 = arith.constant 0 : i32
    return %c0_i32, %c0_i32_0 : i32, i32
  }
  func.func @transform_3(%arg0: i32, %arg1: i32) -> (i32, i32) {
    %c0_i32 = arith.constant 0 : i32
    %c0_i32_0 = arith.constant 0 : i32
    %c0_i32_1 = arith.constant 0 : i32
    return %c0_i32, %c0_i32_0 : i32, i32
  }
  func.func @transform_4(%arg0: i32, %arg1: i32) -> (i32, i32) {
    %c0_i32 = arith.constant 0 : i32
    %c0_i32_0 = arith.constant 0 : i32
    %c0_i32_1 = arith.constant 0 : i32
    return %c0_i32, %c0_i32_0 : i32, i32
  }
  func.func @transform_5(%arg0: i32, %arg1: i32) -> (i32, i32, i32, i32) {
    %c0_i32 = arith.constant 0 : i32
    %c0_i32_0 = arith.constant 0 : i32
    %c0_i32_1 = arith.constant 0 : i32
    return %arg0, %c0_i32, %arg1, %c0_i32_0 : i32, i32, i32, i32
  }
}

</mosaic_0001>

<bundles_post_ra>
// kernel: block_forward.3
= control target key start
LH: loop header
LB: loop body
LE: loop exit
PB: predicated region body
PF: predicated region fallthrough
CT: control target
= control target key end

     0   :  { %s1310_s0 = inlined_call_operand.vmem [shape: bf16[2,8,32], index: 0, kind: input, shape index: {}]   ;;  %s1311_s1 = inlined_call_operand.vmem [shape: f32[2,8,32], index: 1, kind: input, shape index: {}]   ;;  %s1312_s2 = inlined_call_operand.vmem [shape: bf16[32,32], index: 2, kind: input, shape index: {}]   ;;  %s1313_s3 = inlined_call_operand.vmem [shape: f32[1,32], index: 3, kind: input, shape index: {}]   ;;  %s1314_s4 = inlined_call_operand.vmem [shape: f32[1,32], index: 4, kind: input, shape index: {}]   ;;  %s1315_s5 = inlined_call_operand.vmem [shape: f32[1,32], index: 5, kind: input, shape index: {}]   ;;  %s1316_s6 = inlined_call_operand.vmem [shape: bf16[32,128], index: 6, kind: input, shape index: {}]   ;;  %s1317_s7 = inlined_call_operand.vmem [shape: f32[1,128], index: 7, kind: input, shape index: {}]   ;;  %s1318_s8 = inlined_call_operand.vmem [shape: bf16[128,32], index: 8, kind: input, shape index: {}]   ;;  %s1319_s9 = inlined_call_operand.vmem [shape: f32[1,32], index: 9, kind: input, shape index: {}]   ;;  %s1320_s10 = inlined_call_operand.hbm [shape: f32[2,8,32], index: 10, kind: output, shape index: {}]  }
   0x1   :  { %1321 = sst [smem:[#allocation5_spill]] %s1312_s2 }
   0x2   :  { %15 = vsyncpa [#allocation3], 0 }
   0x3   :  { %17 = vsyncpa [#allocation3 + $0x1], 0  ;;  %s1117_s13 = smov 0   ;;  %s1119_s14 = smov 0  }
   0x4   :  { %s1121_s15 = smov 0   ;;  %s1123_s16 = smov 0  }
   0x5   :  { %s1125_s17 = smov 0   ;;  %s1127_s18 = smov 0  }
   0x6 LB: > { %s822_s19 = sadd.s32 4294967295, %s1057_s18   ;;  %s823_s20 = sadd.s32 4294967294, %s1057_s18   ;;  %s1057_s18 = sphi %s1127_s18, %s23_s18   ;;  %s1053_s17 = sphi %s1125_s17, %s1329_s17   ;;  %s1049_s16 = sphi %s1123_s16, %s1328_s16   ;;  %s1045_s15 = sphi %s1121_s15, %s1327_s15   ;;  %s1041_s14 = sphi %s1119_s14, %s1326_s14   ;;  %s1037_s13 = sphi %s1117_s13, %s1325_s13  }
   0x7   : > { %s35_s21 = sadd.s32 1, %s1053_s17  ;;  %s268_s22 = sadd.s32 1, %s1045_s15 }
   0x8   : > { %p37_p0 = scmp.ge.s32.totalorder %s35_s21, 2  ;;  %p278_p1 = scmp.ne.s32.totalorder %s1045_s15, %s1041_s14 }
   0x9   : > { %p279_p2 = scmp.eq.s32.totalorder %s822_s19, 1  ;;  %p284_p3 = scmp.ne.s32.totalorder %s1041_s14, %s1037_s13 }
   0xa   : > { %s1331_s21 = smov (%p37_p0, %s35_s21), 0  ;;  %p285_p5 = scmp.eq.s32.totalorder %s823_s20, 1 }
   0xb   : > { %p1157_p4 = por %p279_p2, %p278_p1  ;;  %s263_s24 = ssub.s32 %s1053_s17, %s1331_s21 }
   0xc   : > { %p826_p6 = scmp.ge.s32.totalorder %s1057_s18, 1  ;;  %p266_p7 = scmp.eq.s32.totalorder %s263_s24, 0 }
   0xd   : > { %p1164_p8 = por %p285_p5, %p284_p3  ;;  %p347_p9 = scmp.lt.s32.totalorder %s1057_s18, 3 }
   0xe   : > { %s1170_s26 = scalar_select %p266_p7, %s1045_s15, %s268_s22  }
   0xf   : > { %p348_p10 = pnand %p826_p6, %p347_p9 }
  0x10   : > { %s1324_s2 = sld [smem:[#allocation5_spill]] (!%p348_p10)  ;;  %v1059_v1 = vmov (!%p348_p10), 0.0   ;;  %vm1060_vm0 = vmmov (!%p348_p10), 0   ;;  %p394_p11 = scmp.lt.s32.totalorder (!%p348_p10), %s1049_s16, 1  ;;  %vm427_vm1 = vcmask (!%p348_p10), 261120   ;;  %v963_v15 = vld [vmem:[%s1316_s6] sm:$0xff] (!%p348_p10)  }
  0x11   : > { %351 = sbr.rel (%p348_p10) target bundleno = 912 (0x390), region = 60  ;;  %868 = vmatprep.subr.bf16.mxu1 (!%p348_p10), %v1059_v1  ;;  %884 = vmatprep.subr.bf16.mxu0 (!%p348_p10), %v1059_v1  ;;  %v833_v6 = vld [vmem:[%s1313_s3] ss:$0 sm:$0xff] (!%p348_p10)  ;;  %v964_v16 = vld [vmem:[%s1316_s6 + $0x8] sm:$0xff] (!%p348_p10)   ;;  %v967_v34 = vld [vmem:[%s1318_s8 + $0x10] sm:$0xff] (!%p348_p10)   ;;  %s391_s20 = sand.u32 (!%p348_p10), 1, %s1041_s14  }
  0x12   : > { %872 = vmatprep.mubr.msk.bf16.mxu1 (!%p348_p10), %vm1060_vm0, %v1059_v1  ;;  %900 = vmatprep.mubr.msk.bf16.mxu0 (!%p348_p10), %vm1060_vm0, %v1059_v1  ;;  %v834_v26 = vld [vmem:[%s1314_s4] ss:$0 sm:$0xff] (!%p348_p10)  ;;  %v966_v33 = vld [vmem:[%s1318_s8 + $0x8] sm:$0xff] (!%p348_p10)   ;;  %v968_v35 = vld [vmem:[%s1318_s8 + $0x18] sm:$0xff] (!%p348_p10)   ;;  %s850_s28 = sshll.u32 (!%p348_p10), %s1049_s16, 7 }
  0x13   : > { %v835_v28 = vld [vmem:[%s1315_s5] ss:$0 sm:$0xff] (!%p348_p10)  ;;  %v970_v37 = vld [vmem:[%s1318_s8 + $0x28] sm:$0xff] (!%p348_p10)   ;;  %v971_v38 = vld [vmem:[%s1318_s8 + $0x30] sm:$0xff] (!%p348_p10)  }
  0x14   : > { %v965_v32 = vld [vmem:[%s1318_s8] sm:$0xff] (!%p348_p10)   ;;  %v972_v39 = vld [vmem:[%s1318_s8 + $0x38] sm:$0xff] (!%p348_p10)  }
  0x15   : > { %885 = vmatpush3.bf16.msra.mxu0 (!%p348_p10), %v965_v32  ;;  %v969_v36 = vld [vmem:[%s1318_s8 + $0x20] sm:$0xff] (!%p348_p10)  }
  0x16   : > { %v961_v0 = vld [vmem:[%s1324_s2] sm:$0xff] (!%p348_p10)   ;;  %v962_v2 = vld [vmem:[%s1324_s2 + $0x8] sm:$0xff] (!%p348_p10)   ;;  %886 = vmatprep.subr.bf16.mxu0 (!%p348_p10), %v1059_v1  ;;  %s1262_s2 = scalar_lea.hbm (!%p348_p10), %s1320_s10, %s850_s28 }
  0x17   : > { %869 = vmatpush3.bf16.msra.mxu1 (!%p348_p10), %v961_v0  ;;  %v836_v40 = vld [vmem:[%s1317_s7] ss:$0 sm:$0xff] (!%p348_p10) }
  0x18   : > { %870 = vmatprep.subr.bf16.mxu1 %v1059_v1  ;;  %s395_s11 = scalar_select %p394_p11, %s1049_s16, 1 }
  0x19   : > { %887 = vmatpush3.bf16.msra.mxu0 %v966_v33  ;;  %s722_s16 = scalar_lea.sflag [#allocation3], %s391_s20 }
  0x1a   : > { %s828_s12 = sshll.u32 %s395_s11, 2  ;;  %s829_s24 = sshll.u32 %s395_s11, 3  ;;  %888 = vmatprep.subr.bf16.mxu0 %v1059_v1 }
  0x1b   : > { %871 = vmatpush3.bf16.msra.mxu1 %v962_v2  ;;  %s400_s22 = scalar_lea.vmem %s1310_s0, %s828_s12  ;;  %s407_s29 = scalar_lea.vmem %s1311_s1, %s829_s24 }
  0x1c   : > { %876 = vmatprep.subr.bf16.mxu1 %v1059_v1  ;;  %v410_v3 = vld [vmem:[%s400_s22] sm:$0xf]  ;;  %s827_s22 = sshll.u32 %s391_s20, 3 }
  0x1d   : > { %v409_v4 = vld [vmem:[%s407_s29] sm:$0xff]  ;;  %889 = vmatpush3.bf16.msra.mxu0 %v967_v34  ;;  %s393_s29 = scalar_lea.vmem [#allocation2], %s827_s22  ;;  %s1061_s22 = smov [#allocation2]  }
  0x1e   : > { %873 = vmatmul.mubr.msk.bf16.vlgmr.msra.gmra.mrb[0].mxu1 %vm427_vm1, %v410_v3  ;;  %890 = vmatprep.subr.bf16.mxu0 %v1059_v1  ;;  %s736_s30 = sshll.u32 %s393_s29, 4  ;;  %s983_s24 = sshll.u32 %s1061_s22, 4  ;;  %s1264_s30 = int_to_ptr.vmem [resolvable:$true] %s736_s30  ;;  %s984_s24 = int_to_ptr.vmem [resolvable:$false] %s983_s24 }
  0x1f   : > { %880 = vmatprep.mubr.msk.bf16.mxu1 %vm1060_vm0, %v1059_v1  ;;  %877 = vmatpush3.bf16.msra.mxu1 %v963_v15  ;;  %s979_s19 = scalar_lea.vmem %s1264_s30, 128  ;;  %s985_s27 = scalar_lea.vmem %s984_s24, 256 }
  0x20   : > { %878 = vmatprep.subr.bf16.mxu1 %v1059_v1  ;;  %p980_p12 = scmp.ne.s32.totalorder %s1264_s30, %s979_s19  ;;  %p986_p1 = scmp.lt.s32.totalorder %s1264_s30, %s984_s24 }
  0x21   : > { %891 = vmatpush3.bf16.msra.mxu0 %v968_v35  ;;  %p987_p2 = scmp.lt.s32.totalorder %s985_s27, %s979_s19 }
  0x22   : > { %892 = vmatprep.subr.bf16.mxu0 %v1059_v1  ;;  %p981_p13 = pnand %p980_p12, %p1157_p4 }
  0x23   : > { %879 = vmatpush3.bf16.msra.mxu1 %v964_v16  ;;  %p988_p3 = por %p987_p2, %p986_p1 }
  0x24   : > { %p982_p0 = pneg %p981_p13 }
  0x25   : > { %893 = vmatpush3.bf16.msra.mxu0 %v969_v36 }
  0x26   : > { %894 = vmatprep.subr.bf16.mxu0 %v1059_v1  ;;  %p989_p5 = pnand %p988_p3, %p982_p0 }
  0x29   : > { %895 = vmatpush3.bf16.msra.mxu0 %v970_v37 }
  0x2a   : > { %896 = vmatprep.subr.bf16.mxu0 %v1059_v1 }
  0x2d   : > { %897 = vmatpush3.bf16.msra.mxu0 %v971_v38 }
  0x2e   : > { %898 = vmatprep.subr.bf16.mxu0 %v1059_v1 }
  0x31   : > { %899 = vmatpush3.bf16.msra.mxu0 %v972_v39 }
  0xf1   : > { %v465_v5 = vpop.f32.mrb[0].mxu1 }
  0xf2   : > { %v471_v7 = vadd.f32 %v465_v5, %v409_v4  ;;  %v874_v8 = vpop.f32.mrb[1].mxu1 }
  0xf3   : > { %v468_v9 = vpop.f32.mrb[2].mxu1 }
  0xf4   : > { %v1197_v10 = vadd.f32 %v833_v6, %v471_v7  ;;  %v875_v11 = vpop.f32.mrb[3].mxu1  ;;  %v848_v9 = vld [vmem:[%s1319_s9] ss:$0 sm:$0xff] }
  0xf6   : > { %v482_v12 = vsel %vm427_vm1, %v1197_v10, 0.0  ;;  %v487_v13 = vmul.f32 %v1197_v10, %v1197_v10 }
  0xf7   : > { %483 = vadd.xlane.f32.xlu0 %v482_v12 }
  0xf8   : > { %v488_v14 = vsel %vm427_vm1, %v487_v13, 0.0 }
  0xfb   : > { %489 = vadd.xlane.f32.xlu0 %v488_v14 }
 0x184   : > { %v484_v17 = vpop.xlane.xlu0 %483 }
 0x185   : > { %v486_v18 = vmul.f32 0.03125, %v484_v17 }
 0x187   : > { %v492_v20 = vmul.f32 %v486_v18, %v486_v18  ;;  %v494_v24 = vsub.f32 %v1197_v10, %v486_v18 }
 0x188   : > { %v490_v19 = vpop.xlane.xlu0 %489 }
 0x189   : > { %v491_v21 = vmul.f32 0.03125, %v490_v19 }
 0x18b   : > { %v493_v22 = vsub.f32 %v491_v21, %v492_v20 }
 0x18d   : > { %v495_v23 = vadd.f32 1e-05, %v493_v22 }
 0x18f   : > { %973 = vrsqrt.f32 %v495_v23 }
 0x199   : > { %v974_v25 = vpop.eup %973 }
 0x19a   : > { %v497_v27 = vmul.f32 %v974_v25, %v494_v24 }
 0x19c   : > { %v504_v29 = vmul.f32 %v834_v26, %v497_v27 }
 0x19e   : > { %v511_v30 = vadd.f32 %v835_v28, %v504_v29 }
 0x1a0   : > { %v512_v31 = vpack.c.bf16 %v511_v30, %v511_v30 }
 0x1a2   : > { %881 = vmatmul.mubr.msk.bf16.vlgmr.msra.gmra.mrb[4].mxu1 %vm427_vm1, %v512_v31 }
 0x275   : > { %v573_v41 = vpop.f32.mrb[4].mxu1 }
 0x276   : > { %v574_v42 = vadd.f32 %v836_v40, %v573_v41  ;;  %v882_v43 = vpop.f32.mrb[5].mxu1 }
 0x277   : > { %v576_v44 = vpop.f32.mrb[6].mxu1 }
 0x278   : > { %v579_v45 = vand.u32 2147483647, %v574_v42  ;;  %v883_v46 = vpop.f32.mrb[7].mxu1  ;;  %vm600_vm2 = vcmp.ge.f32.partialorder %v574_v42, 0.0  ;;  %v603_v4 = vmul.f32 0.5, %v574_v42 }
 0x27a   : > { %v580_v47 = vmul.f32 0.70710677, %v579_v45 }
 0x27c   : > { %v581_v48 = vmul.f32 0.3275911, %v580_v47  ;;  %v594_v50 = vsub.f32 0.0, %v580_v47 }
 0x27e   : > { %v582_v49 = vadd.f32 1.0, %v581_v48  ;;  %v595_v52 = vmul.f32 %v594_v50, %v580_v47 }
 0x280   : > { %975 = vrcp.f32 %v582_v49  ;;  %v596_v55 = vmul.f32 1.442695, %v595_v52 }
 0x282   : > { %977 = vpow2.f32 %v596_v55 }
 0x28a   : > { %v976_v51 = vpop.eup %975 }
 0x28b   : > { %v585_v53 = vmul.f32 1.0614054, %v976_v51 }
 0x28c   : > { %v978_v63 = vpop.eup %977 }
 0x28d   : > { %v586_v54 = vadd.f32 -1.4531521, %v585_v53 }
 0x28f   : > { %v587_v56 = vmul.f32 %v976_v51, %v586_v54 }
 0x291   : > { %v588_v57 = vadd.f32 1.4214138, %v587_v56 }
 0x293   : > { %v589_v58 = vmul.f32 %v976_v51, %v588_v57 }
 0x295   : > { %v590_v59 = vadd.f32 -0.28449672, %v589_v58 }
 0x297   : > { %v591_v60 = vmul.f32 %v976_v51, %v590_v59 }
 0x299   : > { %v592_v61 = vadd.f32 0.2548296, %v591_v60 }
 0x29b   : > { %v593_v62 = vmul.f32 %v976_v51, %v592_v61 }
 0x29d   : > { %v598_v0 = vmul.f32 %v978_v63, %v593_v62 }
 0x29f   : > { %v599_v1 = vsub.f32 1.0, %v598_v0 }
 0x2a1   : > { %v601_v2 = vsub.f32 0.0, %v599_v1 }
 0x2a3   : > { %v602_v3 = vsel %vm600_vm2, %v599_v1, %v601_v2 }
 0x2a4   : > { %v604_v5 = vadd.f32 1.0, %v602_v3 }
 0x2a6   : > { %v605_v6 = vmul.f32 %v604_v5, %v603_v4 }
 0x2a8   : > { %v606_v7 = vpack.c.bf16 %v605_v6, %v605_v6 }
 0x2aa   : > { %901 = vmatmul.mubr.bf16.vlgmr.msra.gmra.mrb[0].mxu0 %v606_v7 }
 0x37d   : > { %v705_v8 = vpop.f32.mrb[0].mxu0 }
 0x37e   : > { %v711_v11 = vadd.f32 %v705_v8, %v1197_v10  ;;  %v902_v12 = vpop.f32.mrb[1].mxu0 }
 0x37f   : > { %v708_v13 = vpop.f32.mrb[2].mxu0 }
 0x380   : > { %v719_v14 = vadd.f32 %v848_v9, %v711_v11  ;;  %v903_v15 = vpop.f32.mrb[3].mxu0 }
 0x382   : > { %720 = vst.msk [vmem:[%s393_s29] sm:$0xff] %vm427_vm1, %v719_v14 }
 0x383   : > { %992 = shalt.err (!%p989_p5)
}
 0x384   : > { %s993_s20 = scalar_lea.hbm %s1262_s2, 128  ;;  %s997_s11 = scalar_lea.hbm %s1320_s10, 256 }
 0x385   : > { %p994_p6 = scmp.ne.s32.totalorder %s1262_s2, %s993_s20  ;;  %p998_p10 = scmp.lt.u32.totalorder %s1262_s2, %s1320_s10 }
 0x386   : > { %p999_p11 = scmp.lt.u32.totalorder %s997_s11, %s993_s20  ;;  %p1001_p13 = scmp.lt.u32.totalorder %s993_s20, %s1262_s2 }
 0x387   : > { %p995_p7 = pnand %p994_p6, %p1157_p4 }
 0x388   : > { %p1000_p12 = por %p999_p11, %p998_p10 }
 0x389   : > { %p996_p9 = pneg %p995_p7 }
 0x38a   : > { %p1002_p0 = por %p1001_p13, %p1000_p12 }
 0x38c   : > { %p1003_p1 = pnand %p1002_p0, %p996_p9 }
 0x38e   : > { %1006 = shalt.err (!%p1003_p1)
}
 0x38f   : > { %904 = dma.vmem_to_hbm [thread:$0]  (%p1157_p4), %s1264_s30, 128, %s1262_s2, %s722_s16  }
 0x390 PF: > { %p910_p2 = scmp.ge.s32.totalorder %s1057_s18, 2  ;;  %s748_s19 = sand.u32 1, %s1037_s13  }
 0x391   : > { %s749_s24 = scalar_lea.sflag [#allocation3], %s748_s19 }
 0x392   : > { %p907_p3 = pnand %p910_p2, %p1164_p8 }
 0x394   : > { %1032 = dma.done.wait (!%p907_p3), %s749_s24, 128  }
 0x395   : > { %1034 = vsyncadd (!%p907_p3), %s749_s24, 4294967168  ;;  %s23_s18 = sadd.s32 1, %s1057_s18   ;;  %s1325_s13 = smov %s1041_s14 }
 0x396   : > { %p20_p5 = scmp.ge.s32.totalorder %s23_s18, 4   ;;  %s1326_s14 = smov %s1045_s15 }
 0x397   : > { %s1327_s15 = smov %s1170_s26  ;;  %s1328_s16 = smov %s1053_s17 }
 0x398   : > { %s1329_s17 = smov %s1331_s21  ;;  %22 = sbr.rel (!%p20_p5) target bundleno = 6 (0x6), region = 98 }
 0x39f   :  { %754 = vsyncpa [#allocation3], 1 }
 0x3a0   :  { %756 = vsyncpa [#allocation3 + $0x1], 1 }

// kernel: block_forward.2
= control target key start
LH: loop header
LB: loop body
LE: loop exit
PB: predicated region body
PF: predicated region fallthrough
CT: control target
= control target key end

     0   :  { %s1635_s18 = smov 0   ;;  %s1637_s19 = smov 0   ;;  %s1880_s0 = inlined_call_operand.vmem [shape: f32[2,8,32], index: 0, kind: input, shape index: {}]   ;;  %s1881_s1 = inlined_call_operand.vmem [shape: f32[1,32], index: 1, kind: input, shape index: {}]   ;;  %s1882_s2 = inlined_call_operand.vmem [shape: f32[1,32], index: 2, kind: input, shape index: {}]   ;;  %s1883_s3 = inlined_call_operand.vmem [shape: bf16[32,96], index: 3, kind: input, shape index: {}]   ;;  %s1884_s4 = inlined_call_operand.vmem [shape: f32[1,96], index: 4, kind: input, shape index: {}]   ;;  %s1885_s5 = inlined_call_operand.vmem [shape: bf16[2,4,8,8], index: 5, kind: output, shape index: {}]  }
   0x1   :  { %s1639_s20 = smov 0  }
   0x2 LB: > { %s27_s21 = sadd.s32 1, %s1578_s19  ;;  %p1320_p0 = scmp.ge.s32.totalorder %s1582_s20, 1  ;;  %s1582_s20 = sphi %s1639_s20, %s15_s20   ;;  %s1578_s19 = sphi %s1637_s19, %s1891_s19   ;;  %s1574_s18 = sphi %s1635_s18, %s1890_s18  }
   0x3   : > { %p29_p1 = scmp.ge.s32.totalorder %s27_s21, 2  ;;  %p205_p2 = scmp.lt.s32.totalorder %s1582_s20, 3 }
   0x5   : > { %s1893_s21 = smov (%p29_p1, %s27_s21), 0  ;;  %p206_p3 = pnand %p1320_p0, %p205_p2 }
   0x6   : > { %p238_p4 = scmp.lt.s32.totalorder (!%p206_p3), %s1574_s18, 1  ;;  %vm257_vm0 = vcmask (!%p206_p3), 261120   ;;  %v1552_v4 = vld [vmem:[%s1883_s3] sm:$0xff] (!%p206_p3)   ;;  %v1584_v5 = vmov (!%p206_p3), 0.0   ;;  %vm1585_vm1 = vmmov (!%p206_p3), 0   ;;  %v1553_v6 = vld [vmem:[%s1883_s3 + $0x8] sm:$0xff] (!%p206_p3)   ;;  %v355_v22 = vlaneseq (!%p206_p3) }
   0x7   : > { %209 = sbr.rel (%p206_p3) target bundleno = 1600 (0x640), region = 40  ;;  %1406 = vmatprep.subr.bf16.mxu0 (!%p206_p3), %v1584_v5  ;;  %1410 = vmatprep.mubr.msk.bf16.mxu0 (!%p206_p3), %vm1585_vm1, %v1584_v5  ;;  %v1324_v16 = vld [vmem:[%s1881_s1] ss:$0 sm:$0xff] (!%p206_p3)  ;;  %v1586_v29 = vmov (!%p206_p3), 0.0|0.0   ;;  %v1587_v33 = vmov (!%p206_p3), 1.0|1.0  }
   0x8   : > { %1407 = vmatpush3.bf16.msra.mxu0 (!%p206_p3), %v1552_v4  ;;  %1422 = vmatprep.mubr.msk.f32.mxu1 (!%p206_p3), %vm1585_vm1, %v1584_v5  ;;  %v1325_v18 = vld [vmem:[%s1882_s2] ss:$0 sm:$0xff] (!%p206_p3)  ;;  %v1682_v23 = vand.u32 (!%p206_p3), 127, %v355_v22  ;;  %v1684_v24 = vshrl.u32 (!%p206_p3), %v355_v22, 7  ;;  %s1588_s11 = smov (!%p206_p3), 112   ;;  %s1589_s12 = smov (!%p206_p3), 96  }
   0x9   : > { %1408 = vmatprep.subr.bf16.mxu0 (!%p206_p3), %v1584_v5  ;;  %1483 = vmatprep.subr.bf16.mxu1 (!%p206_p3), %v1586_v29  ;;  %v1326_v34 = vld [vmem:[%s1884_s4] ss:$0 sm:$0xff] (!%p206_p3)  ;;  %s1590_s13 = smov (!%p206_p3), 104   ;;  %s1591_s14 = smov (!%p206_p3), 88   ;;  %v1595_v41 = vmov (!%p206_p3), -1e+30  }
   0xa   : > { %v367_v25 = vadd.s32 (!%p206_p3), 1, %v1682_v23  ;;  %v357_v26 = vadd.s32 (!%p206_p3), 8, %v1684_v24  ;;  %v362_v27 = vmul.u32 (!%p206_p3), 8, %v1682_v23  ;;  %v358_v30 = vadd.s32 (!%p206_p3), 16, %v1684_v24  ;;  %s1592_s15 = smov (!%p206_p3), 120   ;;  %s1593_s16 = smov (!%p206_p3), 80  }
   0xb   : > { %v359_v31 = vadd.s32 (!%p206_p3), 24, %v1684_v24  ;;  %s1594_s17 = smov (!%p206_p3), 72   ;;  %s1597_s23 = smov (!%p206_p3), 8   ;;  %v772_v22 = vsub.s32 (!%p206_p3), 0, %v1684_v24 }
   0xc   : > { %1409 = vmatpush3.bf16.msra.mxu0 (!%p206_p3), %v1553_v6  ;;  %v368_v28 = vmul.u32 (!%p206_p3), 8, %v367_v25  ;;  %vm363_vm2 = vcmp.ge.s32.totalorder (!%p206_p3), %v1684_v24, %v362_v27  ;;  %vm364_vm3 = vcmp.ge.s32.totalorder (!%p206_p3), %v357_v26, %v362_v27  ;;  %vm365_vm9 = vcmp.ge.s32.totalorder (!%p206_p3), %v358_v30, %v362_v27  ;;  %s1598_s24 = smov (!%p206_p3), 12   ;;  %s1600_s26 = smov (!%p206_p3), 116  }
   0xd   : > { %1489 = vmatprep.subr.bf16.mxu0 (!%p206_p3), %v1586_v29  ;;  %vm366_vm10 = vcmp.ge.s32.totalorder (!%p206_p3), %v359_v31, %v362_v27  ;;  %s1601_s27 = smov (!%p206_p3), 64   ;;  %s1602_s28 = smov (!%p206_p3), 48  }
   0xe   : > { %s1895_s18 = smov (!%p238_p4, %s1574_s18), 1  ;;  %vm369_vm4 = vcmp.lt.s32.totalorder %v1684_v24, %v368_v28  ;;  %vm370_vm5 = vcmp.lt.s32.totalorder %v357_v26, %v368_v28  ;;  %vm371_vm11 = vcmp.lt.s32.totalorder %v358_v30, %v368_v28  ;;  %vm372_vm12 = vcmp.lt.s32.totalorder %v359_v31, %v368_v28  ;;  %s1603_s29 = smov 56  }
   0xf   : > { %s1321_s22 = sshll.u32 %s1895_s18, 3  ;;  %vm373_vm6 = vmand %vm363_vm2, %vm369_vm4  ;;  %vm749_vm2 = vcmp.ge.s32.totalorder %v1682_v23, 1  ;;  %vm410_vm4 = vcmask 195584   ;;  %s1604_s30 = smov 40  }
  0x10   : > { %s244_s25 = scalar_lea.vmem %s1880_s0, %s1321_s22  ;;  %vm374_vm7 = vmand %vm364_vm3, %vm370_vm5  ;;  %v750_v42 = vsel %vm749_vm2, 0.0, %v1595_v41  ;;  %s1596_s22 = smov 4   ;;  %vm406_vm3 = vcmask 64512   ;;  %vm408_vm5 = vcmask 130048  }
  0x11   : > { %v254_v0 = vld [vmem:[%s244_s25] sm:$0xff]  ;;  %vm1695_vm8 = vmpackc.low %vm374_vm7, %vm373_vm6  ;;  %vm751_vm6 = vcmp.ge.s32.totalorder %v1682_v23, 2  ;;  %vm753_vm7 = vcmp.ge.s32.totalorder %v1682_v23, 3  ;;  %s1599_s25 = smov 124   ;;  %s1371_s6 = sshll.u32 %s1895_s18, 4 }
  0x12   : > { %v258_v1 = vsel %vm257_vm0, %v254_v0, 0.0  ;;  %v263_v2 = vmul.f32 %v254_v0, %v254_v0  ;;  %1485 = vmatpush3.bf16.msk.msra.mxu1 %vm1695_vm8, %v1587_v33  ;;  %vm375_vm13 = vmand %vm365_vm9, %vm371_vm11  ;;  %vm820_vm11 = vcmask 1043456   ;;  %s252_s9 = scalar_lea.vmem %s1885_s5, %s1371_s6 }
  0x13   : > { %259 = vadd.xlane.f32.xlu0 %v258_v1  ;;  %1486 = vmatprep.subr.bf16.mxu1 %v1586_v29  ;;  %vm376_vm14 = vmand %vm366_vm10, %vm372_vm12 }
  0x14   : > { %v264_v3 = vsel %vm257_vm0, %v263_v2, 0.0  ;;  %vm1710_vm15 = vmpackc.low %vm376_vm14, %vm375_vm13  ;;  %v752_v2 = vsel %vm751_vm6, 0.0, %v1595_v41 }
  0x16   : > { %1488 = vmatpush3.bf16.msk.msra.mxu1 %vm1710_vm15, %v1587_v33 }
  0x17   : > { %265 = vadd.xlane.f32.xlu0 %v264_v3  ;;  %1495 = vmatprep.subr.bf16.mxu1 %v1586_v29  ;;  %v754_v3 = vsel %vm753_vm7, 0.0, %v1595_v41 }
  0xa0   : > { %v260_v7 = vpop.xlane.xlu0 %259 }
  0xa1   : > { %v262_v8 = vmul.f32 0.03125, %v260_v7 }
  0xa3   : > { %v268_v10 = vmul.f32 %v262_v8, %v262_v8  ;;  %v270_v14 = vsub.f32 %v254_v0, %v262_v8 }
  0xa4   : > { %v266_v9 = vpop.xlane.xlu0 %265 }
  0xa5   : > { %v267_v11 = vmul.f32 0.03125, %v266_v9 }
  0xa7   : > { %v269_v12 = vsub.f32 %v267_v11, %v268_v10 }
  0xa9   : > { %v271_v13 = vadd.f32 1e-05, %v269_v12 }
  0xab   : > { %1554 = vrsqrt.f32 %v271_v13 }
  0xb5   : > { %v1555_v15 = vpop.eup %1554 }
  0xb6   : > { %v273_v17 = vmul.f32 %v1555_v15, %v270_v14 }
  0xb8   : > { %v280_v19 = vmul.f32 %v1324_v16, %v273_v17 }
  0xba   : > { %v287_v20 = vadd.f32 %v1325_v18, %v280_v19 }
  0xbc   : > { %v288_v21 = vpack.c.bf16 %v287_v20, %v287_v20 }
  0xbe   : > { %1411 = vmatmul.mubr.msk.bf16.vlgmr.msra.gmra.mrb[0].mxu0 %vm257_vm0, %v288_v21 }
  0xbf   : > { %1433 = vmatprep.mubr.msk.f32.mxu0 %vm1585_vm1, %v1584_v5  ;;  %1491 = vmatpush3.bf16.msk.msra.mxu0 %vm1695_vm8, %v1587_v33 }
  0xc0   : > { %1492 = vmatprep.subr.bf16.mxu0 %v1586_v29 }
  0xc3   : > { %1494 = vmatpush3.bf16.msk.msra.mxu0 %vm1710_vm15, %v1587_v33 }
  0xc4   : > { %1501 = vmatprep.subr.bf16.mxu0 %v1586_v29 }
 0x191   : > { %v349_v35 = vpop.f32.mrb[0].mxu0 }
 0x192   : > { %v1714_v37 = vadd.f32 %v1326_v34, %v349_v35  ;;  %v1412_v38 = vpop.f32.mrb[1].mxu0 }
 0x193   : > { %v352_v39 = vpop.f32.mrb[2].mxu0 }
 0x194   : > { %400 = vrot.lane.b32.xlu0 %v1714_v37, %s1588_s11  ;;  %394 = vrot.lane.b32.xlu1 %v1714_v37, %s1589_s12  ;;  %v1413_v40 = vpop.f32.mrb[3].mxu0  ;;  %v385_v39 = vmul.u32 8, %v1684_v24 }
 0x195   : > { %v387_v40 = vadd.s32 1, %v1684_v24 }
 0x196   : > { %vm386_vm9 = vcmp.ge.s32.totalorder %v1682_v23, %v385_v39 }
 0x198   : > { %397 = vrot.lane.b32.xlu1 %v1714_v37, %s1590_s13 }
 0x19c   : > { %487 = vrot.lane.b32.xlu1 %v1714_v37, %s1591_s14 }
 0x1a0   : > { %403 = vrot.lane.b32.xlu1 %v1714_v37, %s1592_s15 }
 0x1a4   : > { %568 = vrot.lane.b32.xlu1 %v1714_v37, %s1593_s16 }
 0x1a8   : > { %649 = vrot.lane.b32.xlu1 %v1714_v37, %s1594_s17 }
 0x1ac   : > { %756 = vrot.lane.b32.xlu1 %v750_v42, %s1596_s22 }
 0x1b0   : > { %760 = vrot.lane.b32.xlu1 %v752_v2, %s1597_s23 }
 0x1b4   : > { %764 = vrot.lane.b32.xlu1 %v754_v3, %s1598_s24 }
 0x206   : > { %v395_v43 = vpop.permute.xlu1 %394  ;;  %v401_v48 = vpop.permute.xlu0 %400 }
 0x20a   : > { %v398_v44 = vpop.permute.xlu1 %397 }
 0x20b   : > { %v407_v46 = vsel %vm406_vm3, %v395_v43, %v398_v44 }
 0x20c   : > { %v409_v52 = vsel %vm408_vm5, %v407_v46, %v401_v48 }
 0x20e   : > { %v1736_v45 = vpop.permute.xlu1 %487 }
 0x20f   : > { %v490_v47 = vsel %vm406_vm3, %v1736_v45, %v395_v43 }
 0x210   : > { %v491_v49 = vsel %vm408_vm5, %v490_v47, %v398_v44 }
 0x211   : > { %v492_v50 = vsel %vm410_vm4, %v491_v49, %v401_v48 }
 0x212   : > { %v493_v51 = vmul.f32 %v492_v50, %v1714_v37  ;;  %v404_v53 = vpop.permute.xlu1 %403 }
 0x213   : > { %v411_v54 = vsel %vm410_vm4, %v409_v52, %v404_v53 }
 0x214   : > { %v412_v55 = vmul.f32 %v411_v54, %v1714_v37  ;;  %1434 = vmatmul.mubr.msk.f32.vlgmr.msra.gmra.mrb[4].mxu0 %vm257_vm0, %v493_v51 }
 0x215   : > { %1503 = vmatpush3.bf16.msk.msra.mxu0 %vm1695_vm8, %v1587_v33  ;;  %1455 = vmatprep.mubr.msk.f32.mxu0 %vm1585_vm1, %v1584_v5 }
 0x216   : > { %1423 = vmatmul.mubr.msk.f32.vlgmr.msra.gmra.mrb[0].mxu1 %vm257_vm0, %v412_v55  ;;  %v1754_v56 = vpop.permute.xlu1 %568  ;;  %1504 = vmatprep.subr.bf16.mxu0 %v1586_v29 }
 0x217   : > { %1497 = vmatpush3.bf16.msk.msra.mxu1 %vm1695_vm8, %v1587_v33  ;;  %v571_v57 = vsel %vm406_vm3, %v1754_v56, %v1736_v45  ;;  %1444 = vmatprep.mubr.msk.f32.mxu1 %vm1585_vm1, %v1584_v5  ;;  %vm745_vm8 = vcmask 97280  }
 0x218   : > { %v572_v58 = vsel %vm408_vm5, %v571_v57, %v395_v43  ;;  %1498 = vmatprep.subr.bf16.mxu1 %v1586_v29 }
 0x219   : > { %v573_v59 = vsel %vm410_vm4, %v572_v58, %v398_v44  ;;  %1506 = vmatpush3.bf16.msk.msra.mxu0 %vm1710_vm15, %v1587_v33 }
 0x21a   : > { %v574_v60 = vmul.f32 %v573_v59, %v1714_v37  ;;  %v1772_v61 = vpop.permute.xlu1 %649  ;;  %1468 = vmatprep.subr.mxu0 %v1584_v5 }
 0x21b   : > { %1500 = vmatpush3.bf16.msk.msra.mxu1 %vm1710_vm15, %v1587_v33  ;;  %v652_v62 = vsel %vm406_vm3, %v1772_v61, %v1754_v56 }
 0x21c   : > { %v653_v63 = vsel %vm408_vm5, %v652_v62, %v1736_v45  ;;  %1458 = vmatprep.subr.mxu1 %v1584_v5 }
 0x21d   : > { %v654_v0 = vsel %vm410_vm4, %v653_v63, %v395_v43  ;;  %v388_v43 = vmul.u32 8, %v387_v40 }
 0x21e   : > { %v655_v1 = vmul.f32 %v654_v0, %v1714_v37  ;;  %1445 = vmatmul.mubr.msk.f32.vlgmr.msra.gmra.mrb[2].mxu1 %vm257_vm0, %v574_v60  ;;  %v757_v16 = vpop.permute.xlu1 %756 }
 0x21f   : > { %1460 = vmatprep.mubr.msk.f32.mxu1 %vm1585_vm1, %v1584_v5  ;;  %vm389_vm10 = vcmp.lt.s32.totalorder %v1682_v23, %v388_v43 }
 0x220   : > { %1456 = vmatmul.mubr.msk.f32.vlgmr.msra.gmra.mrb[6].mxu0 %vm257_vm0, %v655_v1  ;;  %vm742_vm0 = vcmask 31744   ;;  %vm390_vm12 = vmand %vm386_vm9, %vm389_vm10 }
 0x221   : > { %1470 = vmatprep.mubr.msk.f32.mxu0 %vm1585_vm1, %v1584_v5  ;;  %v767_v18 = vsel %vm742_vm0, 0.0, %v757_v16  ;;  %v1334_v44 = vsel %vm390_vm12, 1.0, %v1584_v5 }
 0x222   : > { %v761_v17 = vpop.permute.xlu1 %760  ;;  %1459 = vmatpush3.msk.msra.mxu1 %vm820_vm11, %v1334_v44  ;;  %1469 = vmatpush3.msk.msra.mxu0 %vm820_vm11, %v1334_v44 }
 0x223   : > { %v768_v19 = vsel %vm406_vm3, %v767_v18, %v761_v17  ;;  %1463 = vmatprep.subr.mxu1 %v1584_v5  ;;  %1478 = vmatprep.subr.mxu0 %v1584_v5 }
 0x226   : > { %v765_v21 = vpop.permute.xlu1 %764 }
 0x227   : > { %v769_v26 = vsel %vm745_vm8, %v768_v19, %v765_v21 }
 0x228   : > { %v773_v29 = vrot.slane %v769_v26, %v772_v22 }
 0x2e7   : > { %v563_v4 = vpop.f32.mrb[4].mxu0 }
 0x2e8   : > { %v567_v6 = vmul.f32 0.35355338, %v563_v4  ;;  %v1435_v7 = vpop.f32.mrb[5].mxu0 }
 0x2e9   : > { %v482_v8 = vpop.f32.mrb[0].mxu1 }
 0x2ea   : > { %v1424_v9 = vpop.f32.mrb[1].mxu1  ;;  %731 = vrot.lane.b32.xlu0 %v567_v6, %s1596_s22  ;;  %v486_v25 = vmul.f32 0.35355338, %v482_v8 }
 0x2f1   : > { %v644_v10 = vpop.f32.mrb[2].mxu1 }
 0x2f2   : > { %v648_v11 = vmul.f32 0.35355338, %v644_v10  ;;  %v1446_v12 = vpop.f32.mrb[3].mxu1 }
 0x2f3   : > { %v725_v13 = vpop.f32.mrb[6].mxu0 }
 0x2f4   : > { %735 = vrot.lane.b32.xlu0 %v648_v11, %s1597_s23  ;;  %v729_v14 = vmul.f32 0.35355338, %v725_v13  ;;  %v1457_v15 = vpop.f32.mrb[7].mxu0 }
 0x2f6   : > { %739 = vrot.lane.b32.xlu1 %v729_v14, %s1598_s24 }
 0x35c   : > { %v732_v20 = vpop.permute.xlu0 %731 }
 0x35d   : > { %v743_v28 = vsel %vm742_vm0, %v486_v25, %v732_v20 }
 0x366   : > { %v736_v27 = vpop.permute.xlu0 %735 }
 0x367   : > { %v744_v30 = vsel %vm406_vm3, %v743_v28, %v736_v27 }
 0x368   : > { %v740_v31 = vpop.permute.xlu1 %739 }
 0x369   : > { %v746_v32 = vsel %vm745_vm8, %v744_v30, %v740_v31 }
 0x36a   : > { %v774_v33 = vadd.f32 %v773_v29, %v746_v32 }
 0x36c   : > { %780 = vrot.lane.b32.xlu1 %v774_v33, %s1592_s15  ;;  %776 = vrot.lane.b32.xlu0 %v774_v33, %s1599_s25 }
 0x370   : > { %784 = vrot.lane.b32.xlu0 %v774_v33, %s1600_s26 }
 0x3de   : > { %v777_v34 = vpop.permute.xlu0 %776  ;;  %v781_v36 = vpop.permute.xlu1 %780 }
 0x3df   : > { %v779_v35 = vmax.f32 %v774_v33, %v777_v34 }
 0x3e1   : > { %v783_v38 = vmax.f32 %v779_v35, %v781_v36 }
 0x3e2   : > { %v785_v41 = vpop.permute.xlu0 %784 }
 0x3e3   : > { %v787_v42 = vmax.f32 %v783_v38, %v785_v41 }
 0x3e5   : > { %792 = vrot.lane.b32.xlu0 %v787_v42, %s1597_s23  ;;  %789 = vrot.lane.b32.xlu1 %v787_v42, %s1596_s22 }
 0x3e9   : > { %795 = vrot.lane.b32.xlu1 %v787_v42, %s1598_s24 }
 0x457   : > { %v790_v24 = vpop.permute.xlu1 %789  ;;  %v793_v46 = vpop.permute.xlu0 %792 }
 0x458   : > { %v798_v47 = vsel %vm742_vm0, %v787_v42, %v790_v24 }
 0x459   : > { %v799_v23 = vsel %vm406_vm3, %v798_v47, %v793_v46 }
 0x45b   : > { %v796_v48 = vpop.permute.xlu1 %795 }
 0x45c   : > { %v800_v49 = vsel %vm745_vm8, %v799_v23, %v796_v48 }
 0x45d   : > { %v801_v50 = vsub.f32 %v774_v33, %v800_v49 }
 0x45f   : > { %v802_v51 = vmul.f32 1.442695, %v801_v50 }
 0x461   : > { %1556 = vpow2.f32 %v802_v51 }
 0x46b   : > { %v1557_v52 = vpop.eup %1556 }
 0x46c   : > { %809 = vrot.lane.b32.xlu1 %v1557_v52, %s1592_s15  ;;  %805 = vrot.lane.b32.xlu0 %v1557_v52, %s1599_s25 }
 0x46d   : > { %1461 = vmatmul.mubr.msk.f32.vlgmr.msra.gmra.mrb[4].mxu1 %vm742_vm0, %v1557_v52 }
 0x46e   : > { %1464 = vmatpush3.msk.msra.mxu1 %vm820_vm11, %v1334_v44  ;;  %1465 = vmatprep.mubr.msk.f32.mxu1 %vm1585_vm1, %v1584_v5 }
 0x46f   : > { %1473 = vmatprep.subr.mxu1 %v1584_v5 }
 0x470   : > { %894 = vrot.lane.b32.xlu1 %v1714_v37, %s1601_s27  ;;  %813 = vrot.lane.b32.xlu0 %v1557_v52, %s1600_s26 }
 0x474   : > { %1053 = vrot.lane.b32.xlu1 %v1714_v37, %s1602_s28  ;;  %973 = vrot.lane.b32.xlu0 %v1714_v37, %s1603_s29 }
 0x478   : > { %1133 = vrot.lane.b32.xlu0 %v1714_v37, %s1604_s30 }
 0x4de   : > { %v810_v53 = vpop.permute.xlu1 %809  ;;  %v806_v54 = vpop.permute.xlu0 %805 }
 0x4df   : > { %v808_v55 = vadd.f32 %v1557_v52, %v806_v54  ;;  %1466 = vmatmul.mubr.msk.f32.vlgmr.msra.gmra.mrb[6].mxu1 %vm742_vm0, %v806_v54  ;;  %1471 = vmatmul.mubr.msk.f32.vlgmr.msra.gmra.mrb[8].mxu0 %vm742_vm0, %v810_v53 }
 0x4e0   : > { %1474 = vmatpush3.msk.msra.mxu1 %vm820_vm11, %v1334_v44  ;;  %1475 = vmatprep.mubr.msk.f32.mxu1 %vm1585_vm1, %v1584_v5 }
 0x4e1   : > { %v812_v57 = vadd.f32 %v810_v53, %v808_v55  ;;  %1479 = vmatpush3.msk.msra.mxu0 %vm820_vm11, %v1334_v44  ;;  %1480 = vmatprep.mubr.msk.f32.mxu0 %vm1585_vm1, %v1584_v5  ;;  %vm1216_vm1 = vcmask 60416  }
 0x4e2   : > { %v814_v58 = vpop.permute.xlu0 %813  ;;  %v895_v63 = vpop.permute.xlu1 %894 }
 0x4e3   : > { %v816_v37 = vadd.f32 %v814_v58, %v812_v57  ;;  %1476 = vmatmul.mubr.msk.f32.vlgmr.msra.gmra.mrb[8].mxu1 %vm742_vm0, %v814_v58  ;;  %v897_v2 = vsel %vm406_vm3, %v895_v63, %v1772_v61 }
 0x4e4   : > { %v898_v6 = vsel %vm408_vm5, %v897_v2, %v1754_v56 }
 0x4e5   : > { %1558 = vrcp.f32 %v816_v37  ;;  %v899_v10 = vsel %vm410_vm4, %v898_v6, %v1736_v45 }
 0x4e6   : > { %v974_v0 = vpop.permute.xlu0 %973  ;;  %v1054_v1 = vpop.permute.xlu1 %1053 }
 0x4e7   : > { %v976_v3 = vsel %vm406_vm3, %v974_v0, %v895_v63  ;;  %v1056_v5 = vsel %vm406_vm3, %v1054_v1, %v974_v0 }
 0x4e8   : > { %v977_v7 = vsel %vm408_vm5, %v976_v3, %v1772_v61  ;;  %v1057_v9 = vsel %vm408_vm5, %v1056_v5, %v895_v63 }
 0x4e9   : > { %v978_v12 = vsel %vm410_vm4, %v977_v7, %v1754_v56  ;;  %v1058_v19 = vsel %vm410_vm4, %v1057_v9, %v1772_v61 }
 0x4ea   : > { %v1134_v4 = vpop.permute.xlu0 %1133 }
 0x4eb   : > { %v1136_v8 = vsel %vm406_vm3, %v1134_v4, %v1054_v1 }
 0x4ec   : > { %v1137_v18 = vsel %vm408_vm5, %v1136_v8, %v974_v0 }
 0x4ed   : > { %v1138_v45 = vsel %vm410_vm4, %v1137_v18, %v895_v63 }
 0x4ef   : > { %v1559_v59 = vpop.eup %1558 }
 0x4f0   : > { %1481 = vmatmul.mubr.msk.f32.vlgmr.msra.gmra.mrb[10].mxu0 %vm742_vm0, %v1559_v59 }
 0x540   : > { %v890_v60 = vpop.f32.mrb[4].mxu1 }
 0x541   : > { %v1462_v62 = vpop.f32.mrb[5].mxu1  ;;  %v900_v14 = vmul.f32 %v899_v10, %v890_v60 }
 0x5b2   : > { %v969_v11 = vpop.f32.mrb[6].mxu1  ;;  %v1049_v13 = vpop.f32.mrb[8].mxu0 }
 0x5b3   : > { %v979_v15 = vmul.f32 %v978_v12, %v969_v11  ;;  %v1467_v16 = vpop.f32.mrb[7].mxu1  ;;  %v1472_v17 = vpop.f32.mrb[9].mxu0  ;;  %v1059_v21 = vmul.f32 %v1058_v19, %v1049_v13 }
 0x5b5   : > { %v980_v20 = vadd.f32 %v979_v15, %v900_v14 }
 0x5b6   : > { %v1129_v22 = vpop.f32.mrb[8].mxu1 }
 0x5b7   : > { %v1060_v25 = vadd.f32 %v1059_v21, %v980_v20  ;;  %v1139_v26 = vmul.f32 %v1138_v45, %v1129_v22  ;;  %v1477_v27 = vpop.f32.mrb[9].mxu1 }
 0x5b9   : > { %v1140_v56 = vadd.f32 %v1139_v26, %v1060_v25 }
 0x5c3   : > { %v1210_v28 = vpop.f32.mrb[10].mxu0 }
 0x5c4   : > { %v1214_v29 = vmul.f32 %v1210_v28, %v1140_v56  ;;  %v1482_v30 = vpop.f32.mrb[11].mxu0 }
 0x5c6   : > { %v1215_v31 = vpack.c.bf16 %v1214_v29, %v1214_v29 }
 0x5c8   : > { %1226 = vrot.lane.b32.xlu0 %v1215_v31, %s1588_s11  ;;  %1221 = vrot.lane.b32.xlu1 %v1215_v31, %s1592_s15  ;;  %1217 = vst.msk [vmem:[%s252_s9] sm:$0xf] %vm1216_vm1, %v1215_v31 }
 0x5cc   : > { %1231 = vrot.lane.b32.xlu1 %v1215_v31, %s1590_s13 }
 0x63a   : > { %v1227_v61 = vpop.permute.xlu0 %1226  ;;  %v1222_v32 = vpop.permute.xlu1 %1221 }
 0x63b   : > { %1367 = vst.msk [vmem:[%s252_s9 + $0x8] sm:$0xf] %vm1216_vm1, %v1227_v61  ;;  %1366 = vst.msk [vmem:[%s252_s9 + $0x4] sm:$0xf] %vm1216_vm1, %v1222_v32 }
 0x63e   : > { %v1232_v33 = vpop.permute.xlu1 %1231 }
 0x63f   : > { %1368 = vst.msk [vmem:[%s252_s9 + $0xc] sm:$0xf] %vm1216_vm1, %v1232_v33 }
 0x640 PF: > { %s15_s20 = sadd.s32 1, %s1582_s20   ;;  %s1890_s18 = smov %s1578_s19 }
 0x641   : > { %p12_p5 = scmp.ge.s32.totalorder %s15_s20, 4   ;;  %s1891_s19 = smov %s1893_s21 }
 0x643   :  { %14 = sbr.rel (!%p12_p5) target bundleno = 2 (0x2), region = 73 }

// kernel: block_forward.3
= control target key start
LH: loop header
LB: loop body
LE: loop exit
PB: predicated region body
PF: predicated region fallthrough
CT: control target
= control target key end

     0   :  { %s1310_s0 = inlined_call_operand.vmem [shape: bf16[2,8,32], index: 0, kind: input, shape index: {}]   ;;  %s1311_s1 = inlined_call_operand.vmem [shape: f32[2,8,32], index: 1, kind: input, shape index: {}]   ;;  %s1312_s2 = inlined_call_operand.vmem [shape: bf16[32,32], index: 2, kind: input, shape index: {}]   ;;  %s1313_s3 = inlined_call_operand.vmem [shape: f32[1,32], index: 3, kind: input, shape index: {}]   ;;  %s1314_s4 = inlined_call_operand.vmem [shape: f32[1,32], index: 4, kind: input, shape index: {}]   ;;  %s1315_s5 = inlined_call_operand.vmem [shape: f32[1,32], index: 5, kind: input, shape index: {}]   ;;  %s1316_s6 = inlined_call_operand.vmem [shape: bf16[32,128], index: 6, kind: input, shape index: {}]   ;;  %s1317_s7 = inlined_call_operand.vmem [shape: f32[1,128], index: 7, kind: input, shape index: {}]   ;;  %s1318_s8 = inlined_call_operand.vmem [shape: bf16[128,32], index: 8, kind: input, shape index: {}]   ;;  %s1319_s9 = inlined_call_operand.vmem [shape: f32[1,32], index: 9, kind: input, shape index: {}]   ;;  %s1320_s10 = inlined_call_operand.hbm [shape: f32[2,8,32], index: 10, kind: output, shape index: {}]  }
   0x1   :  { %1321 = sst [smem:[#allocation5_spill]] %s1312_s2 }
   0x2   :  { %15 = vsyncpa [#allocation3], 0 }
   0x3   :  { %17 = vsyncpa [#allocation3 + $0x1], 0  ;;  %s1117_s13 = smov 0   ;;  %s1119_s14 = smov 0  }
   0x4   :  { %s1121_s15 = smov 0   ;;  %s1123_s16 = smov 0  }
   0x5   :  { %s1125_s17 = smov 0   ;;  %s1127_s18 = smov 0  }
   0x6 LB: > { %s822_s19 = sadd.s32 4294967295, %s1057_s18   ;;  %s823_s20 = sadd.s32 4294967294, %s1057_s18   ;;  %s1057_s18 = sphi %s1127_s18, %s23_s18   ;;  %s1053_s17 = sphi %s1125_s17, %s1329_s17   ;;  %s1049_s16 = sphi %s1123_s16, %s1328_s16   ;;  %s1045_s15 = sphi %s1121_s15, %s1327_s15   ;;  %s1041_s14 = sphi %s1119_s14, %s1326_s14   ;;  %s1037_s13 = sphi %s1117_s13, %s1325_s13  }
   0x7   : > { %s35_s21 = sadd.s32 1, %s1053_s17  ;;  %s268_s22 = sadd.s32 1, %s1045_s15 }
   0x8   : > { %p37_p0 = scmp.ge.s32.totalorder %s35_s21, 2  ;;  %p278_p1 = scmp.ne.s32.totalorder %s1045_s15, %s1041_s14 }
   0x9   : > { %p279_p2 = scmp.eq.s32.totalorder %s822_s19, 1  ;;  %p284_p3 = scmp.ne.s32.totalorder %s1041_s14, %s1037_s13 }
   0xa   : > { %s1331_s21 = smov (%p37_p0, %s35_s21), 0  ;;  %p285_p5 = scmp.eq.s32.totalorder %s823_s20, 1 }
   0xb   : > { %p1157_p4 = por %p279_p2, %p278_p1  ;;  %s263_s24 = ssub.s32 %s1053_s17, %s1331_s21 }
   0xc   : > { %p826_p6 = scmp.ge.s32.totalorder %s1057_s18, 1  ;;  %p266_p7 = scmp.eq.s32.totalorder %s263_s24, 0 }
   0xd   : > { %p1164_p8 = por %p285_p5, %p284_p3  ;;  %p347_p9 = scmp.lt.s32.totalorder %s1057_s18, 3 }
   0xe   : > { %s1170_s26 = scalar_select %p266_p7, %s1045_s15, %s268_s22  }
   0xf   : > { %p348_p10 = pnand %p826_p6, %p347_p9 }
  0x10   : > { %s1324_s2 = sld [smem:[#allocation5_spill]] (!%p348_p10)  ;;  %v1059_v1 = vmov (!%p348_p10), 0.0   ;;  %vm1060_vm0 = vmmov (!%p348_p10), 0   ;;  %p394_p11 = scmp.lt.s32.totalorder (!%p348_p10), %s1049_s16, 1  ;;  %vm427_vm1 = vcmask (!%p348_p10), 261120   ;;  %v963_v15 = vld [vmem:[%s1316_s6] sm:$0xff] (!%p348_p10)  }
  0x11   : > { %351 = sbr.rel (%p348_p10) target bundleno = 912 (0x390), region = 60  ;;  %868 = vmatprep.subr.bf16.mxu1 (!%p348_p10), %v1059_v1  ;;  %884 = vmatprep.subr.bf16.mxu0 (!%p348_p10), %v1059_v1  ;;  %v833_v6 = vld [vmem:[%s1313_s3] ss:$0 sm:$0xff] (!%p348_p10)  ;;  %v964_v16 = vld [vmem:[%s1316_s6 + $0x8] sm:$0xff] (!%p348_p10)   ;;  %v967_v34 = vld [vmem:[%s1318_s8 + $0x10] sm:$0xff] (!%p348_p10)   ;;  %s391_s20 = sand.u32 (!%p348_p10), 1, %s1041_s14  }
  0x12   : > { %872 = vmatprep.mubr.msk.bf16.mxu1 (!%p348_p10), %vm1060_vm0, %v1059_v1  ;;  %900 = vmatprep.mubr.msk.bf16.mxu0 (!%p348_p10), %vm1060_vm0, %v1059_v1  ;;  %v834_v26 = vld [vmem:[%s1314_s4] ss:$0 sm:$0xff] (!%p348_p10)  ;;  %v966_v33 = vld [vmem:[%s1318_s8 + $0x8] sm:$0xff] (!%p348_p10)   ;;  %v968_v35 = vld [vmem:[%s1318_s8 + $0x18] sm:$0xff] (!%p348_p10)   ;;  %s850_s28 = sshll.u32 (!%p348_p10), %s1049_s16, 7 }
  0x13   : > { %v835_v28 = vld [vmem:[%s1315_s5] ss:$0 sm:$0xff] (!%p348_p10)  ;;  %v970_v37 = vld [vmem:[%s1318_s8 + $0x28] sm:$0xff] (!%p348_p10)   ;;  %v971_v38 = vld [vmem:[%s1318_s8 + $0x30] sm:$0xff] (!%p348_p10)  }
  0x14   : > { %v965_v32 = vld [vmem:[%s1318_s8] sm:$0xff] (!%p348_p10)   ;;  %v972_v39 = vld [vmem:[%s1318_s8 + $0x38] sm:$0xff] (!%p348_p10)  }
  0x15   : > { %885 = vmatpush3.bf16.msra.mxu0 (!%p348_p10), %v965_v32  ;;  %v969_v36 = vld [vmem:[%s1318_s8 + $0x20] sm:$0xff] (!%p348_p10)  }
  0x16   : > { %v961_v0 = vld [vmem:[%s1324_s2] sm:$0xff] (!%p348_p10)   ;;  %v962_v2 = vld [vmem:[%s1324_s2 + $0x8] sm:$0xff] (!%p348_p10)   ;;  %886 = vmatprep.subr.bf16.mxu0 (!%p348_p10), %v1059_v1  ;;  %s1262_s2 = scalar_lea.hbm (!%p348_p10), %s1320_s10, %s850_s28 }
  0x17   : > { %869 = vmatpush3.bf16.msra.mxu1 (!%p348_p10), %v961_v0  ;;  %v836_v40 = vld [vmem:[%s1317_s7] ss:$0 sm:$0xff] (!%p348_p10) }
  0x18   : > { %870 = vmatprep.subr.bf16.mxu1 %v1059_v1  ;;  %s395_s11 = scalar_select %p394_p11, %s1049_s16, 1 }
  0x19   : > { %887 = vmatpush3.bf16.msra.mxu0 %v966_v33  ;;  %s722_s16 = scalar_lea.sflag [#allocation3], %s391_s20 }
  0x1a   : > { %s828_s12 = sshll.u32 %s395_s11, 2  ;;  %s829_s24 = sshll.u32 %s395_s11, 3  ;;  %888 = vmatprep.subr.bf16.mxu0 %v1059_v1 }
  0x1b   : > { %871 = vmatpush3.bf16.msra.mxu1 %v962_v2  ;;  %s400_s22 = scalar_lea.vmem %s1310_s0, %s828_s12  ;;  %s407_s29 = scalar_lea.vmem %s1311_s1, %s829_s24 }
  0x1c   : > { %876 = vmatprep.subr.bf16.mxu1 %v1059_v1  ;;  %v410_v3 = vld [vmem:[%s400_s22] sm:$0xf]  ;;  %s827_s22 = sshll.u32 %s391_s20, 3 }
  0x1d   : > { %v409_v4 = vld [vmem:[%s407_s29] sm:$0xff]  ;;  %889 = vmatpush3.bf16.msra.mxu0 %v967_v34  ;;  %s393_s29 = scalar_lea.vmem [#allocation2], %s827_s22  ;;  %s1061_s22 = smov [#allocation2]  }
  0x1e   : > { %873 = vmatmul.mubr.msk.bf16.vlgmr.msra.gmra.mrb[0].mxu1 %vm427_vm1, %v410_v3  ;;  %890 = vmatprep.subr.bf16.mxu0 %v1059_v1  ;;  %s736_s30 = sshll.u32 %s393_s29, 4  ;;  %s983_s24 = sshll.u32 %s1061_s22, 4  ;;  %s1264_s30 = int_to_ptr.vmem [resolvable:$true] %s736_s30  ;;  %s984_s24 = int_to_ptr.vmem [resolvable:$false] %s983_s24 }
  0x1f   : > { %880 = vmatprep.mubr.msk.bf16.mxu1 %vm1060_vm0, %v1059_v1  ;;  %877 = vmatpush3.bf16.msra.mxu1 %v963_v15  ;;  %s979_s19 = scalar_lea.vmem %s1264_s30, 128  ;;  %s985_s27 = scalar_lea.vmem %s984_s24, 256 }
  0x20   : > { %878 = vmatprep.subr.bf16.mxu1 %v1059_v1  ;;  %p980_p12 = scmp.ne.s32.totalorder %s1264_s30, %s979_s19  ;;  %p986_p1 = scmp.lt.s32.totalorder %s1264_s30, %s984_s24 }
  0x21   : > { %891 = vmatpush3.bf16.msra.mxu0 %v968_v35  ;;  %p987_p2 = scmp.lt.s32.totalorder %s985_s27, %s979_s19 }
  0x22   : > { %892 = vmatprep.subr.bf16.mxu0 %v1059_v1  ;;  %p981_p13 = pnand %p980_p12, %p1157_p4 }
  0x23   : > { %879 = vmatpush3.bf16.msra.mxu1 %v964_v16  ;;  %p988_p3 = por %p987_p2, %p986_p1 }
  0x24   : > { %p982_p0 = pneg %p981_p13 }
  0x25   : > { %893 = vmatpush3.bf16.msra.mxu0 %v969_v36 }
  0x26   : > { %894 = vmatprep.subr.bf16.mxu0 %v1059_v1  ;;  %p989_p5 = pnand %p988_p3, %p982_p0 }
  0x29   : > { %895 = vmatpush3.bf16.msra.mxu0 %v970_v37 }
  0x2a   : > { %896 = vmatprep.subr.bf16.mxu0 %v1059_v1 }
  0x2d   : > { %897 = vmatpush3.bf16.msra.mxu0 %v971_v38 }
  0x2e   : > { %898 = vmatprep.subr.bf16.mxu0 %v1059_v1 }
  0x31   : > { %899 = vmatpush3.bf16.msra.mxu0 %v972_v39 }
  0xf1   : > { %v465_v5 = vpop.f32.mrb[0].mxu1 }
  0xf2   : > { %v471_v7 = vadd.f32 %v465_v5, %v409_v4  ;;  %v874_v8 = vpop.f32.mrb[1].mxu1 }
  0xf3   : > { %v468_v9 = vpop.f32.mrb[2].mxu1 }
  0xf4   : > { %v1197_v10 = vadd.f32 %v833_v6, %v471_v7  ;;  %v875_v11 = vpop.f32.mrb[3].mxu1  ;;  %v848_v9 = vld [vmem:[%s1319_s9] ss:$0 sm:$0xff] }
  0xf6   : > { %v482_v12 = vsel %vm427_vm1, %v1197_v10, 0.0  ;;  %v487_v13 = vmul.f32 %v1197_v10, %v1197_v10 }
  0xf7   : > { %483 = vadd.xlane.f32.xlu0 %v482_v12 }
  0xf8   : > { %v488_v14 = vsel %vm427_vm1, %v487_v13, 0.0 }
  0xfb   : > { %489 = vadd.xlane.f32.xlu0 %v488_v14 }
 0x184   : > { %v484_v17 = vpop.xlane.xlu0 %483 }
 0x185   : > { %v486_v18 = vmul.f32 0.03125, %v484_v17 }
 0x187   : > { %v492_v20 = vmul.f32 %v486_v18, %v486_v18  ;;  %v494_v24 = vsub.f32 %v1197_v10, %v486_v18 }
 0x188   : > { %v490_v19 = vpop.xlane.xlu0 %489 }
 0x189   : > { %v491_v21 = vmul.f32 0.03125, %v490_v19 }
 0x18b   : > { %v493_v22 = vsub.f32 %v491_v21, %v492_v20 }
 0x18d   : > { %v495_v23 = vadd.f32 1e-05, %v493_v22 }
 0x18f   : > { %973 = vrsqrt.f32 %v495_v23 }
 0x199   : > { %v974_v25 = vpop.eup %973 }
 0x19a   : > { %v497_v27 = vmul.f32 %v974_v25, %v494_v24 }
 0x19c   : > { %v504_v29 = vmul.f32 %v834_v26, %v497_v27 }
 0x19e   : > { %v511_v30 = vadd.f32 %v835_v28, %v504_v29 }
 0x1a0   : > { %v512_v31 = vpack.c.bf16 %v511_v30, %v511_v30 }
 0x1a2   : > { %881 = vmatmul.mubr.msk.bf16.vlgmr.msra.gmra.mrb[4].mxu1 %vm427_vm1, %v512_v31 }
 0x275   : > { %v573_v41 = vpop.f32.mrb[4].mxu1 }
 0x276   : > { %v574_v42 = vadd.f32 %v836_v40, %v573_v41  ;;  %v882_v43 = vpop.f32.mrb[5].mxu1 }
 0x277   : > { %v576_v44 = vpop.f32.mrb[6].mxu1 }
 0x278   : > { %v579_v45 = vand.u32 2147483647, %v574_v42  ;;  %v883_v46 = vpop.f32.mrb[7].mxu1  ;;  %vm600_vm2 = vcmp.ge.f32.partialorder %v574_v42, 0.0  ;;  %v603_v4 = vmul.f32 0.5, %v574_v42 }
 0x27a   : > { %v580_v47 = vmul.f32 0.70710677, %v579_v45 }
 0x27c   : > { %v581_v48 = vmul.f32 0.3275911, %v580_v47  ;;  %v594_v50 = vsub.f32 0.0, %v580_v47 }
 0x27e   : > { %v582_v49 = vadd.f32 1.0, %v581_v48  ;;  %v595_v52 = vmul.f32 %v594_v50, %v580_v47 }
 0x280   : > { %975 = vrcp.f32 %v582_v49  ;;  %v596_v55 = vmul.f32 1.442695, %v595_v52 }
 0x282   : > { %977 = vpow2.f32 %v596_v55 }
 0x28a   : > { %v976_v51 = vpop.eup %975 }
 0x28b   : > { %v585_v53 = vmul.f32 1.0614054, %v976_v51 }
 0x28c   : > { %v978_v63 = vpop.eup %977 }
 0x28d   : > { %v586_v54 = vadd.f32 -1.4531521, %v585_v53 }
 0x28f   : > { %v587_v56 = vmul.f32 %v976_v51, %v586_v54 }
 0x291   : > { %v588_v57 = vadd.f32 1.4214138, %v587_v56 }
 0x293   : > { %v589_v58 = vmul.f32 %v976_v51, %v588_v57 }
 0x295   : > { %v590_v59 = vadd.f32 -0.28449672, %v589_v58 }
 0x297   : > { %v591_v60 = vmul.f32 %v976_v51, %v590_v59 }
 0x299   : > { %v592_v61 = vadd.f32 0.2548296, %v591_v60 }
 0x29b   : > { %v593_v62 = vmul.f32 %v976_v51, %v592_v61 }
 0x29d   : > { %v598_v0 = vmul.f32 %v978_v63, %v593_v62 }
 0x29f   : > { %v599_v1 = vsub.f32 1.0, %v598_v0 }
 0x2a1   : > { %v601_v2 = vsub.f32 0.0, %v599_v1 }
 0x2a3   : > { %v602_v3 = vsel %vm600_vm2, %v599_v1, %v601_v2 }
 0x2a4   : > { %v604_v5 = vadd.f32 1.0, %v602_v3 }
 0x2a6   : > { %v605_v6 = vmul.f32 %v604_v5, %v603_v4 }
 0x2a8   : > { %v606_v7 = vpack.c.bf16 %v605_v6, %v605_v6 }
 0x2aa   : > { %901 = vmatmul.mubr.bf16.vlgmr.msra.gmra.mrb[0].mxu0 %v606_v7 }
 0x37d   : > { %v705_v8 = vpop.f32.mrb[0].mxu0 }
 0x37e   : > { %v711_v11 = vadd.f32 %v705_v8, %v1197_v10  ;;  %v902_v12 = vpop.f32.mrb[1].mxu0 }
 0x37f   : > { %v708_v13 = vpop.f32.mrb[2].mxu0 }
 0x380   : > { %v719_v14 = vadd.f32 %v848_v9, %v711_v11  ;;  %v903_v15 = vpop.f32.mrb[3].mxu0 }
 0x382   : > { %720 = vst.msk [vmem:[%s393_s29] sm:$0xff] %vm427_vm1, %v719_v14 }
 0x383   : > { %992 = shalt.err (!%p989_p5)
}
 0x384   : > { %s993_s20 = scalar_lea.hbm %s1262_s2, 128  ;;  %s997_s11 = scalar_lea.hbm %s1320_s10, 256 }
 0x385   : > { %p994_p6 = scmp.ne.s32.totalorder %s1262_s2, %s993_s20  ;;  %p998_p10 = scmp.lt.u32.totalorder %s1262_s2, %s1320_s10 }
 0x386   : > { %p999_p11 = scmp.lt.u32.totalorder %s997_s11, %s993_s20  ;;  %p1001_p13 = scmp.lt.u32.totalorder %s993_s20, %s1262_s2 }
 0x387   : > { %p995_p7 = pnand %p994_p6, %p1157_p4 }
 0x388   : > { %p1000_p12 = por %p999_p11, %p998_p10 }
 0x389   : > { %p996_p9 = pneg %p995_p7 }
 0x38a   : > { %p1002_p0 = por %p1001_p13, %p1000_p12 }
 0x38c   : > { %p1003_p1 = pnand %p1002_p0, %p996_p9 }
 0x38e   : > { %1006 = shalt.err (!%p1003_p1)
}
 0x38f   : > { %904 = dma.vmem_to_hbm [thread:$0]  (%p1157_p4), %s1264_s30, 128, %s1262_s2, %s722_s16  }
 0x390 PF: > { %p910_p2 = scmp.ge.s32.totalorder %s1057_s18, 2  ;;  %s748_s19 = sand.u32 1, %s1037_s13  }
 0x391   : > { %s749_s24 = scalar_lea.sflag [#allocation3], %s748_s19 }
 0x392   : > { %p907_p3 = pnand %p910_p2, %p1164_p8 }
 0x394   : > { %1032 = dma.done.wait (!%p907_p3), %s749_s24, 128  }
 0x395   : > { %1034 = vsyncadd (!%p907_p3), %s749_s24, 4294967168  ;;  %s23_s18 = sadd.s32 1, %s1057_s18   ;;  %s1325_s13 = smov %s1041_s14 }
 0x396   : > { %p20_p5 = scmp.ge.s32.totalorder %s23_s18, 4   ;;  %s1326_s14 = smov %s1045_s15 }
 0x397   : > { %s1327_s15 = smov %s1170_s26  ;;  %s1328_s16 = smov %s1053_s17 }
 0x398   : > { %s1329_s17 = smov %s1331_s21  ;;  %22 = sbr.rel (!%p20_p5) target bundleno = 6 (0x6), region = 98 }
 0x39f   :  { %754 = vsyncpa [#allocation3], 1 }
 0x3a0   :  { %756 = vsyncpa [#allocation3 + $0x1], 1 }

// kernel: block_forward.2
= control target key start
LH: loop header
LB: loop body
LE: loop exit
PB: predicated region body
PF: predicated region fallthrough
CT: control target
= control target key end

     0   :  { %s1635_s18 = smov 0   ;;  %s1637_s19 = smov 0   ;;  %s1880_s0 = inlined_call_operand.vmem [shape: f32[2,8,32], index: 0, kind: input, shape index: {}]   ;;  %s1881_s1 = inlined_call_operand.vmem [shape: f32[1,32], index: 1, kind: input, shape index: {}]   ;;  %s1882_s2 = inlined_call_operand.vmem [shape: f32[1,32], index: 2, kind: input, shape index: {}]   ;;  %s1883_s3 = inlined_call_operand.vmem [shape: bf16[32,96], index: 3, kind: input, shape index: {}]   ;;  %s1884_s4 = inlined_call_operand.vmem [shape: f32[1,96], index: 4, kind: input, shape index: {}]   ;;  %s1885_s5 = inlined_call_operand.vmem [shape: bf16[2,4,8,8], index: 5, kind: output, shape index: {}]  }
   0x1   :  { %s1639_s20 = smov 0  }
   0x2 LB: > { %s27_s21 = sadd.s32 1, %s1578_s19  ;;  %p1320_p0 = scmp.ge.s32.totalorder %s1582_s20, 1  ;;  %s1582_s20 = sphi %s1639_s20, %s15_s20   ;;  %s1578_s19 = sphi %s1637_s19, %s1891_s19   ;;  %s1574_s18 = sphi %s1635_s18, %s1890_s18  }
   0x3   : > { %p29_p1 = scmp.ge.s32.totalorder %s27_s21, 2  ;;  %p205_p2 = scmp.lt.s32.totalorder %s1582_s20, 3 }
   0x5   : > { %s1893_s21 = smov (%p29_p1, %s27_s21), 0  ;;  %p206_p3 = pnand %p1320_p0, %p205_p2 }
   0x6   : > { %p238_p4 = scmp.lt.s32.totalorder (!%p206_p3), %s1574_s18, 1  ;;  %vm257_vm0 = vcmask (!%p206_p3), 261120   ;;  %v1552_v4 = vld [vmem:[%s1883_s3] sm:$0xff] (!%p206_p3)   ;;  %v1584_v5 = vmov (!%p206_p3), 0.0   ;;  %vm1585_vm1 = vmmov (!%p206_p3), 0   ;;  %v1553_v6 = vld [vmem:[%s1883_s3 + $0x8] sm:$0xff] (!%p206_p3)   ;;  %v355_v22 = vlaneseq (!%p206_p3) }
   0x7   : > { %209 = sbr.rel (%p206_p3) target bundleno = 1600 (0x640), region = 40  ;;  %1406 = vmatprep.subr.bf16.mxu0 (!%p206_p3), %v1584_v5  ;;  %1410 = vmatprep.mubr.msk.bf16.mxu0 (!%p206_p3), %vm1585_vm1, %v1584_v5  ;;  %v1324_v16 = vld [vmem:[%s1881_s1] ss:$0 sm:$0xff] (!%p206_p3)  ;;  %v1586_v29 = vmov (!%p206_p3), 0.0|0.0   ;;  %v1587_v33 = vmov (!%p206_p3), 1.0|1.0  }
   0x8   : > { %1407 = vmatpush3.bf16.msra.mxu0 (!%p206_p3), %v1552_v4  ;;  %1422 = vmatprep.mubr.msk.f32.mxu1 (!%p206_p3), %vm1585_vm1, %v1584_v5  ;;  %v1325_v18 = vld [vmem:[%s1882_s2] ss:$0 sm:$0xff] (!%p206_p3)  ;;  %v1682_v23 = vand.u32 (!%p206_p3), 127, %v355_v22  ;;  %v1684_v24 = vshrl.u32 (!%p206_p3), %v355_v22, 7  ;;  %s1588_s11 = smov (!%p206_p3), 112   ;;  %s1589_s12 = smov (!%p206_p3), 96  }
   0x9   : > { %1408 = vmatprep.subr.bf16.mxu0 (!%p206_p3), %v1584_v5  ;;  %1483 = vmatprep.subr.bf16.mxu1 (!%p206_p3), %v1586_v29  ;;  %v1326_v34 = vld [vmem:[%s1884_s4] ss:$0 sm:$0xff] (!%p206_p3)  ;;  %s1590_s13 = smov (!%p206_p3), 104   ;;  %s1591_s14 = smov (!%p206_p3), 88   ;;  %v1595_v41 = vmov (!%p206_p3), -1e+30  }
   0xa   : > { %v367_v25 = vadd.s32 (!%p206_p3), 1, %v1682_v23  ;;  %v357_v26 = vadd.s32 (!%p206_p3), 8, %v1684_v24  ;;  %v362_v27 = vmul.u32 (!%p206_p3), 8, %v1682_v23  ;;  %v358_v30 = vadd.s32 (!%p206_p3), 16, %v1684_v24  ;;  %s1592_s15 = smov (!%p206_p3), 120   ;;  %s1593_s16 = smov (!%p206_p3), 80  }
   0xb   : > { %v359_v31 = vadd.s32 (!%p206_p3), 24, %v1684_v24  ;;  %s1594_s17 = smov (!%p206_p3), 72   ;;  %s1597_s23 = smov (!%p206_p3), 8   ;;  %v772_v22 = vsub.s32 (!%p206_p3), 0, %v1684_v24 }
   0xc   : > { %1409 = vmatpush3.bf16.msra.mxu0 (!%p206_p3), %v1553_v6  ;;  %v368_v28 = vmul.u32 (!%p206_p3), 8, %v367_v25  ;;  %vm363_vm2 = vcmp.ge.s32.totalorder (!%p206_p3), %v1684_v24, %v362_v27  ;;  %vm364_vm3 = vcmp.ge.s32.totalorder (!%p206_p3), %v357_v26, %v362_v27  ;;  %vm365_vm9 = vcmp.ge.s32.totalorder (!%p206_p3), %v358_v30, %v362_v27  ;;  %s1598_s24 = smov (!%p206_p3), 12   ;;  %s1600_s26 = smov (!%p206_p3), 116  }
   0xd   : > { %1489 = vmatprep.subr.bf16.mxu0 (!%p206_p3), %v1586_v29  ;;  %vm366_vm10 = vcmp.ge.s32.totalorder (!%p206_p3), %v359_v31, %v362_v27  ;;  %s1601_s27 = smov (!%p206_p3), 64   ;;  %s1602_s28 = smov (!%p206_p3), 48  }
   0xe   : > { %s1895_s18 = smov (!%p238_p4, %s1574_s18), 1  ;;  %vm369_vm4 = vcmp.lt.s32.totalorder %v1684_v24, %v368_v28  ;;  %vm370_vm5 = vcmp.lt.s32.totalorder %v357_v26, %v368_v28  ;;  %vm371_vm11 = vcmp.lt.s32.totalorder %v358_v30, %v368_v28  ;;  %vm372_vm12 = vcmp.lt.s32.totalorder %v359_v31, %v368_v28  ;;  %s1603_s29 = smov 56  }
   0xf   : > { %s1321_s22 = sshll.u32 %s1895_s18, 3  ;;  %vm373_vm6 = vmand %vm363_vm2, %vm369_vm4  ;;  %vm749_vm2 = vcmp.ge.s32.totalorder %v1682_v23, 1  ;;  %vm410_vm4 = vcmask 195584   ;;  %s1604_s30 = smov 40  }
  0x10   : > { %s244_s25 = scalar_lea.vmem %s1880_s0, %s1321_s22  ;;  %vm374_vm7 = vmand %vm364_vm3, %vm370_vm5  ;;  %v750_v42 = vsel %vm749_vm2, 0.0, %v1595_v41  ;;  %s1596_s22 = smov 4   ;;  %vm406_vm3 = vcmask 64512   ;;  %vm408_vm5 = vcmask 130048  }
  0x11   : > { %v254_v0 = vld [vmem:[%s244_s25] sm:$0xff]  ;;  %vm1695_vm8 = vmpackc.low %vm374_vm7, %vm373_vm6  ;;  %vm751_vm6 = vcmp.ge.s32.totalorder %v1682_v23, 2  ;;  %vm753_vm7 = vcmp.ge.s32.totalorder %v1682_v23, 3  ;;  %s1599_s25 = smov 124   ;;  %s1371_s6 = sshll.u32 %s1895_s18, 4 }
  0x12   : > { %v258_v1 = vsel %vm257_vm0, %v254_v0, 0.0  ;;  %v263_v2 = vmul.f32 %v254_v0, %v254_v0  ;;  %1485 = vmatpush3.bf16.msk.msra.mxu1 %vm1695_vm8, %v1587_v33  ;;  %vm375_vm13 = vmand %vm365_vm9, %vm371_vm11  ;;  %vm820_vm11 = vcmask 1043456   ;;  %s252_s9 = scalar_lea.vmem %s1885_s5, %s1371_s6 }
  0x13   : > { %259 = vadd.xlane.f32.xlu0 %v258_v1  ;;  %1486 = vmatprep.subr.bf16.mxu1 %v1586_v29  ;;  %vm376_vm14 = vmand %vm366_vm10, %vm372_vm12 }
  0x14   : > { %v264_v3 = vsel %vm257_vm0, %v263_v2, 0.0  ;;  %vm1710_vm15 = vmpackc.low %vm376_vm14, %vm375_vm13  ;;  %v752_v2 = vsel %vm751_vm6, 0.0, %v1595_v41 }
  0x16   : > { %1488 = vmatpush3.bf16.msk.msra.mxu1 %vm1710_vm15, %v1587_v33 }
  0x17   : > { %265 = vadd.xlane.f32.xlu0 %v264_v3  ;;  %1495 = vmatprep.subr.bf16.mxu1 %v1586_v29  ;;  %v754_v3 = vsel %vm753_vm7, 0.0, %v1595_v41 }
  0xa0   : > { %v260_v7 = vpop.xlane.xlu0 %259 }
  0xa1   : > { %v262_v8 = vmul.f32 0.03125, %v260_v7 }
  0xa3   : > { %v268_v10 = vmul.f32 %v262_v8, %v262_v8  ;;  %v270_v14 = vsub.f32 %v254_v0, %v262_v8 }
  0xa4   : > { %v266_v9 = vpop.xlane.xlu0 %265 }
  0xa5   : > { %v267_v11 = vmul.f32 0.03125, %v266_v9 }
  0xa7   : > { %v269_v12 = vsub.f32 %v267_v11, %v268_v10 }
  0xa9   : > { %v271_v13 = vadd.f32 1e-05, %v269_v12 }
  0xab   : > { %1554 = vrsqrt.f32 %v271_v13 }
  0xb5   : > { %v1555_v15 = vpop.eup %1554 }
  0xb6   : > { %v273_v17 = vmul.f32 %v1555_v15, %v270_v14 }
  0xb8   : > { %v280_v19 = vmul.f32 %v1324_v16, %v273_v17 }
  0xba   : > { %v287_v20 = vadd.f32 %v1325_v18, %v280_v19 }
  0xbc   : > { %v288_v21 = vpack.c.bf16 %v287_v20, %v287_v20 }
  0xbe   : > { %1411 = vmatmul.mubr.msk.bf16.vlgmr.msra.gmra.mrb[0].mxu0 %vm257_vm0, %v288_v21 }
  0xbf   : > { %1433 = vmatprep.mubr.msk.f32.mxu0 %vm1585_vm1, %v1584_v5  ;;  %1491 = vmatpush3.bf16.msk.msra.mxu0 %vm1695_vm8, %v1587_v33 }
  0xc0   : > { %1492 = vmatprep.subr.bf16.mxu0 %v1586_v29 }
  0xc3   : > { %1494 = vmatpush3.bf16.msk.msra.mxu0 %vm1710_vm15, %v1587_v33 }
  0xc4   : > { %1501 = vmatprep.subr.bf16.mxu0 %v1586_v29 }
 0x191   : > { %v349_v35 = vpop.f32.mrb[0].mxu0 }
 0x192   : > { %v1714_v37 = vadd.f32 %v1326_v34, %v349_v35  ;;  %v1412_v38 = vpop.f32.mrb[1].mxu0 }
 0x193   : > { %v352_v39 = vpop.f32.mrb[2].mxu0 }
 0x194   : > { %400 = vrot.lane.b32.xlu0 %v1714_v37, %s1588_s11  ;;  %394 = vrot.lane.b32.xlu1 %v1714_v37, %s1589_s12  ;;  %v1413_v40 = vpop.f32.mrb[3].mxu0  ;;  %v385_v39 = vmul.u32 8, %v1684_v24 }
 0x195   : > { %v387_v40 = vadd.s32 1, %v1684_v24 }
 0x196   : > { %vm386_vm9 = vcmp.ge.s32.totalorder %v1682_v23, %v385_v39 }
 0x198   : > { %397 = vrot.lane.b32.xlu1 %v1714_v37, %s1590_s13 }
 0x19c   : > { %487 = vrot.lane.b32.xlu1 %v1714_v37, %s1591_s14 }
 0x1a0   : > { %403 = vrot.lane.b32.xlu1 %v1714_v37, %s1592_s15 }
 0x1a4   : > { %568 = vrot.lane.b32.xlu1 %v1714_v37, %s1593_s16 }
 0x1a8   : > { %649 = vrot.lane.b32.xlu1 %v1714_v37, %s1594_s17 }
 0x1ac   : > { %756 = vrot.lane.b32.xlu1 %v750_v42, %s1596_s22 }
 0x1b0   : > { %760 = vrot.lane.b32.xlu1 %v752_v2, %s1597_s23 }
 0x1b4   : > { %764 = vrot.lane.b32.xlu1 %v754_v3, %s1598_s24 }
 0x206   : > { %v395_v43 = vpop.permute.xlu1 %394  ;;  %v401_v48 = vpop.permute.xlu0 %400 }
 0x20a   : > { %v398_v44 = vpop.permute.xlu1 %397 }
 0x20b   : > { %v407_v46 = vsel %vm406_vm3, %v395_v43, %v398_v44 }
 0x20c   : > { %v409_v52 = vsel %vm408_vm5, %v407_v46, %v401_v48 }
 0x20e   : > { %v1736_v45 = vpop.permute.xlu1 %487 }
 0x20f   : > { %v490_v47 = vsel %vm406_vm3, %v1736_v45, %v395_v43 }
 0x210   : > { %v491_v49 = vsel %vm408_vm5, %v490_v47, %v398_v44 }
 0x211   : > { %v492_v50 = vsel %vm410_vm4, %v491_v49, %v401_v48 }
 0x212   : > { %v493_v51 = vmul.f32 %v492_v50, %v1714_v37  ;;  %v404_v53 = vpop.permute.xlu1 %403 }
 0x213   : > { %v411_v54 = vsel %vm410_vm4, %v409_v52, %v404_v53 }
 0x214   : > { %v412_v55 = vmul.f32 %v411_v54, %v1714_v37  ;;  %1434 = vmatmul.mubr.msk.f32.vlgmr.msra.gmra.mrb[4].mxu0 %vm257_vm0, %v493_v51 }
 0x215   : > { %1503 = vmatpush3.bf16.msk.msra.mxu0 %vm1695_vm8, %v1587_v33  ;;  %1455 = vmatprep.mubr.msk.f32.mxu0 %vm1585_vm1, %v1584_v5 }
 0x216   : > { %1423 = vmatmul.mubr.msk.f32.vlgmr.msra.gmra.mrb[0].mxu1 %vm257_vm0, %v412_v55  ;;  %v1754_v56 = vpop.permute.xlu1 %568  ;;  %1504 = vmatprep.subr.bf16.mxu0 %v1586_v29 }
 0x217   : > { %1497 = vmatpush3.bf16.msk.msra.mxu1 %vm1695_vm8, %v1587_v33  ;;  %v571_v57 = vsel %vm406_vm3, %v1754_v56, %v1736_v45  ;;  %1444 = vmatprep.mubr.msk.f32.mxu1 %vm1585_vm1, %v1584_v5  ;;  %vm745_vm8 = vcmask 97280  }
 0x218   : > { %v572_v58 = vsel %vm408_vm5, %v571_v57, %v395_v43  ;;  %1498 = vmatprep.subr.bf16.mxu1 %v1586_v29 }
 0x219   : > { %v573_v59 = vsel %vm410_vm4, %v572_v58, %v398_v44  ;;  %1506 = vmatpush3.bf16.msk.msra.mxu0 %vm1710_vm15, %v1587_v33 }
 0x21a   : > { %v574_v60 = vmul.f32 %v573_v59, %v1714_v37  ;;  %v1772_v61 = vpop.permute.xlu1 %649  ;;  %1468 = vmatprep.subr.mxu0 %v1584_v5 }
 0x21b   : > { %1500 = vmatpush3.bf16.msk.msra.mxu1 %vm1710_vm15, %v1587_v33  ;;  %v652_v62 = vsel %vm406_vm3, %v1772_v61, %v1754_v56 }
 0x21c   : > { %v653_v63 = vsel %vm408_vm5, %v652_v62, %v1736_v45  ;;  %1458 = vmatprep.subr.mxu1 %v1584_v5 }
 0x21d   : > { %v654_v0 = vsel %vm410_vm4, %v653_v63, %v395_v43  ;;  %v388_v43 = vmul.u32 8, %v387_v40 }
 0x21e   : > { %v655_v1 = vmul.f32 %v654_v0, %v1714_v37  ;;  %1445 = vmatmul.mubr.msk.f32.vlgmr.msra.gmra.mrb[2].mxu1 %vm257_vm0, %v574_v60  ;;  %v757_v16 = vpop.permute.xlu1 %756 }
 0x21f   : > { %1460 = vmatprep.mubr.msk.f32.mxu1 %vm1585_vm1, %v1584_v5  ;;  %vm389_vm10 = vcmp.lt.s32.totalorder %v1682_v23, %v388_v43 }
 0x220   : > { %1456 = vmatmul.mubr.msk.f32.vlgmr.msra.gmra.mrb[6].mxu0 %vm257_vm0, %v655_v1  ;;  %vm742_vm0 = vcmask 31744   ;;  %vm390_vm12 = vmand %vm386_vm9, %vm389_vm10 }
 0x221   : > { %1470 = vmatprep.mubr.msk.f32.mxu0 %vm1585_vm1, %v1584_v5  ;;  %v767_v18 = vsel %vm742_vm0, 0.0, %v757_v16  ;;  %v1334_v44 = vsel %vm390_vm12, 1.0, %v1584_v5 }
 0x222   : > { %v761_v17 = vpop.permute.xlu1 %760  ;;  %1459 = vmatpush3.msk.msra.mxu1 %vm820_vm11, %v1334_v44  ;;  %1469 = vmatpush3.msk.msra.mxu0 %vm820_vm11, %v1334_v44 }
 0x223   : > { %v768_v19 = vsel %vm406_vm3, %v767_v18, %v761_v17  ;;  %1463 = vmatprep.subr.mxu1 %v1584_v5  ;;  %1478 = vmatprep.subr.mxu0 %v1584_v5 }
 0x226   : > { %v765_v21 = vpop.permute.xlu1 %764 }
 0x227   : > { %v769_v26 = vsel %vm745_vm8, %v768_v19, %v765_v21 }
 0x228   : > { %v773_v29 = vrot.slane %v769_v26, %v772_v22 }
 0x2e7   : > { %v563_v4 = vpop.f32.mrb[4].mxu0 }
 0x2e8   : > { %v567_v6 = vmul.f32 0.35355338, %v563_v4  ;;  %v1435_v7 = vpop.f32.mrb[5].mxu0 }
 0x2e9   : > { %v482_v8 = vpop.f32.mrb[0].mxu1 }
 0x2ea   : > { %v1424_v9 = vpop.f32.mrb[1].mxu1  ;;  %731 = vrot.lane.b32.xlu0 %v567_v6, %s1596_s22  ;;  %v486_v25 = vmul.f32 0.35355338, %v482_v8 }
 0x2f1   : > { %v644_v10 = vpop.f32.mrb[2].mxu1 }
 0x2f2   : > { %v648_v11 = vmul.f32 0.35355338, %v644_v10  ;;  %v1446_v12 = vpop.f32.mrb[3].mxu1 }
 0x2f3   : > { %v725_v13 = vpop.f32.mrb[6].mxu0 }
 0x2f4   : > { %735 = vrot.lane.b32.xlu0 %v648_v11, %s1597_s23  ;;  %v729_v14 = vmul.f32 0.35355338, %v725_v13  ;;  %v1457_v15 = vpop.f32.mrb[7].mxu0 }
 0x2f6   : > { %739 = vrot.lane.b32.xlu1 %v729_v14, %s1598_s24 }
 0x35c   : > { %v732_v20 = vpop.permute.xlu0 %731 }
 0x35d   : > { %v743_v28 = vsel %vm742_vm0, %v486_v25, %v732_v20 }
 0x366   : > { %v736_v27 = vpop.permute.xlu0 %735 }
 0x367   : > { %v744_v30 = vsel %vm406_vm3, %v743_v28, %v736_v27 }
 0x368   : > { %v740_v31 = vpop.permute.xlu1 %739 }
 0x369   : > { %v746_v32 = vsel %vm745_vm8, %v744_v30, %v740_v31 }
 0x36a   : > { %v774_v33 = vadd.f32 %v773_v29, %v746_v32 }
 0x36c   : > { %780 = vrot.lane.b32.xlu1 %v774_v33, %s1592_s15  ;;  %776 = vrot.lane.b32.xlu0 %v774_v33, %s1599_s25 }
 0x370   : > { %784 = vrot.lane.b32.xlu0 %v774_v33, %s1600_s26 }
 0x3de   : > { %v777_v34 = vpop.permute.xlu0 %776  ;;  %v781_v36 = vpop.permute.xlu1 %780 }
 0x3df   : > { %v779_v35 = vmax.f32 %v774_v33, %v777_v34 }
 0x3e1   : > { %v783_v38 = vmax.f32 %v779_v35, %v781_v36 }
 0x3e2   : > { %v785_v41 = vpop.permute.xlu0 %784 }
 0x3e3   : > { %v787_v42 = vmax.f32 %v783_v38, %v785_v41 }
 0x3e5   : > { %792 = vrot.lane.b32.xlu0 %v787_v42, %s1597_s23  ;;  %789 = vrot.lane.b32.xlu1 %v787_v42, %s1596_s22 }
 0x3e9   : > { %795 = vrot.lane.b32.xlu1 %v787_v42, %s1598_s24 }
 0x457   : > { %v790_v24 = vpop.permute.xlu1 %789  ;;  %v793_v46 = vpop.permute.xlu0 %792 }
 0x458   : > { %v798_v47 = vsel %vm742_vm0, %v787_v42, %v790_v24 }
 0x459   : > { %v799_v23 = vsel %vm406_vm3, %v798_v47, %v793_v46 }
 0x45b   : > { %v796_v48 = vpop.permute.xlu1 %795 }
 0x45c   : > { %v800_v49 = vsel %vm745_vm8, %v799_v23, %v796_v48 }
 0x45d   : > { %v801_v50 = vsub.f32 %v774_v33, %v800_v49 }
 0x45f   : > { %v802_v51 = vmul.f32 1.442695, %v801_v50 }
 0x461   : > { %1556 = vpow2.f32 %v802_v51 }
 0x46b   : > { %v1557_v52 = vpop.eup %1556 }
 0x46c   : > { %809 = vrot.lane.b32.xlu1 %v1557_v52, %s1592_s15  ;;  %805 = vrot.lane.b32.xlu0 %v1557_v52, %s1599_s25 }
 0x46d   : > { %1461 = vmatmul.mubr.msk.f32.vlgmr.msra.gmra.mrb[4].mxu1 %vm742_vm0, %v1557_v52 }
 0x46e   : > { %1464 = vmatpush3.msk.msra.mxu1 %vm820_vm11, %v1334_v44  ;;  %1465 = vmatprep.mubr.msk.f32.mxu1 %vm1585_vm1, %v1584_v5 }
 0x46f   : > { %1473 = vmatprep.subr.mxu1 %v1584_v5 }
 0x470   : > { %894 = vrot.lane.b32.xlu1 %v1714_v37, %s1601_s27  ;;  %813 = vrot.lane.b32.xlu0 %v1557_v52, %s1600_s26 }
 0x474   : > { %1053 = vrot.lane.b32.xlu1 %v1714_v37, %s1602_s28  ;;  %973 = vrot.lane.b32.xlu0 %v1714_v37, %s1603_s29 }
 0x478   : > { %1133 = vrot.lane.b32.xlu0 %v1714_v37, %s1604_s30 }
 0x4de   : > { %v810_v53 = vpop.permute.xlu1 %809  ;;  %v806_v54 = vpop.permute.xlu0 %805 }
 0x4df   : > { %v808_v55 = vadd.f32 %v1557_v52, %v806_v54  ;;  %1466 = vmatmul.mubr.msk.f32.vlgmr.msra.gmra.mrb[6].mxu1 %vm742_vm0, %v806_v54  ;;  %1471 = vmatmul.mubr.msk.f32.vlgmr.msra.gmra.mrb[8].mxu0 %vm742_vm0, %v810_v53 }
 0x4e0   : > { %1474 = vmatpush3.msk.msra.mxu1 %vm820_vm11, %v1334_v44  ;;  %1475 = vmatprep.mubr.msk.f32.mxu1 %vm1585_vm1, %v1584_v5 }
 0x4e1   : > { %v812_v57 = vadd.f32 %v810_v53, %v808_v55  ;;  %1479 = vmatpush3.msk.msra.mxu0 %vm820_vm11, %v1334_v44  ;;  %1480 = vmatprep.mubr.msk.f32.mxu0 %vm1585_vm1, %v1584_v5  ;;  %vm1216_vm1 = vcmask 60416  }
 0x4e2   : > { %v814_v58 = vpop.permute.xlu0 %813  ;;  %v895_v63 = vpop.permute.xlu1 %894 }
 0x4e3   : > { %v816_v37 = vadd.f32 %v814_v58, %v812_v57  ;;  %1476 = vmatmul.mubr.msk.f32.vlgmr.msra.gmra.mrb[8].mxu1 %vm742_vm0, %v814_v58  ;;  %v897_v2 = vsel %vm406_vm3, %v895_v63, %v1772_v61 }
 0x4e4   : > { %v898_v6 = vsel %vm408_vm5, %v897_v2, %v1754_v56 }
 0x4e5   : > { %1558 = vrcp.f32 %v816_v37  ;;  %v899_v10 = vsel %vm410_vm4, %v898_v6, %v1736_v45 }
 0x4e6   : > { %v974_v0 = vpop.permute.xlu0 %973  ;;  %v1054_v1 = vpop.permute.xlu1 %1053 }
 0x4e7   : > { %v976_v3 = vsel %vm406_vm3, %v974_v0, %v895_v63  ;;  %v1056_v5 = vsel %vm406_vm3, %v1054_v1, %v974_v0 }
 0x4e8   : > { %v977_v7 = vsel %vm408_vm5, %v976_v3, %v1772_v61  ;;  %v1057_v9 = vsel %vm408_vm5, %v1056_v5, %v895_v63 }
 0x4e9   : > { %v978_v12 = vsel %vm410_vm4, %v977_v7, %v1754_v56  ;;  %v1058_v19 = vsel %vm410_vm4, %v1057_v9, %v1772_v61 }
 0x4ea   : > { %v1134_v4 = vpop.permute.xlu0 %1133 }
 0x4eb   : > { %v1136_v8 = vsel %vm406_vm3, %v1134_v4, %v1054_v1 }
 0x4ec   : > { %v1137_v18 = vsel %vm408_vm5, %v1136_v8, %v974_v0 }
 0x4ed   : > { %v1138_v45 = vsel %vm410_vm4, %v1137_v18, %v895_v63 }
 0x4ef   : > { %v1559_v59 = vpop.eup %1558 }
 0x4f0   : > { %1481 = vmatmul.mubr.msk.f32.vlgmr.msra.gmra.mrb[10].mxu0 %vm742_vm0, %v1559_v59 }
 0x540   : > { %v890_v60 = vpop.f32.mrb[4].mxu1 }
 0x541   : > { %v1462_v62 = vpop.f32.mrb[5].mxu1  ;;  %v900_v14 = vmul.f32 %v899_v10, %v890_v60 }
 0x5b2   : > { %v969_v11 = vpop.f32.mrb[6].mxu1  ;;  %v1049_v13 = vpop.f32.mrb[8].mxu0 }
 0x5b3   : > { %v979_v15 = vmul.f32 %v978_v12, %v969_v11  ;;  %v1467_v16 = vpop.f32.mrb[7].mxu1  ;;  %v1472_v17 = vpop.f32.mrb[9].mxu0  ;;  %v1059_v21 = vmul.f32 %v1058_v19, %v1049_v13 }
 0x5b5   : > { %v980_v20 = vadd.f32 %v979_v15, %v900_v14 }
 0x5b6   : > { %v1129_v22 = vpop.f32.mrb[8].mxu1 }
 0x5b7   : > { %v1060_v25 = vadd.f32 %v1059_v21, %v980_v20  ;;  %v1139_v26 = vmul.f32 %v1138_v45, %v1129_v22  ;;  %v1477_v27 = vpop.f32.mrb[9].mxu1 }
 0x5b9   : > { %v1140_v56 = vadd.f32 %v1139_v26, %v1060_v25 }
 0x5c3   : > { %v1210_v28 = vpop.f32.mrb[10].mxu0 }
 0x5c4   : > { %v1214_v29 = vmul.f32 %v1210_v28, %v1140_v56  ;;  %v1482_v30 = vpop.f32.mrb[11].mxu0 }
 0x5c6   : > { %v1215_v31 = vpack.c.bf16 %v1214_v29, %v1214_v29 }
 0x5c8   : > { %1226 = vrot.lane.b32.xlu0 %v1215_v31, %s1588_s11  ;;  %1221 = vrot.lane.b32.xlu1 %v1215_v31, %s1592_s15  ;;  %1217 = vst.msk [vmem:[%s252_s9] sm:$0xf] %vm1216_vm1, %v1215_v31 }
 0x5cc   : > { %1231 = vrot.lane.b32.xlu1 %v1215_v31, %s1590_s13 }
 0x63a   : > { %v1227_v61 = vpop.permute.xlu0 %1226  ;;  %v1222_v32 = vpop.permute.xlu1 %1221 }
 0x63b   : > { %1367 = vst.msk [vmem:[%s252_s9 + $0x8] sm:$0xf] %vm1216_vm1, %v1227_v61  ;;  %1366 = vst.msk [vmem:[%s252_s9 + $0x4] sm:$0xf] %vm1216_vm1, %v1222_v32 }
 0x63e   : > { %v1232_v33 = vpop.permute.xlu1 %1231 }
 0x63f   : > { %1368 = vst.msk [vmem:[%s252_s9 + $0xc] sm:$0xf] %vm1216_vm1, %v1232_v33 }
 0x640 PF: > { %s15_s20 = sadd.s32 1, %s1582_s20   ;;  %s1890_s18 = smov %s1578_s19 }
 0x641   : > { %p12_p5 = scmp.ge.s32.totalorder %s15_s20, 4   ;;  %s1891_s19 = smov %s1893_s21 }
 0x643   :  { %14 = sbr.rel (!%p12_p5) target bundleno = 2 (0x2), region = 73 }

</bundles_post_ra>
